<compile_context>
chip_gen: v7x
topology: tpu7x:2x2x1
jax: 0.10.0
libtpu: 0.0.40
codegen_flags: <defaults>
</compile_context>

<pallas_src>
import functools

import jax
import jax.numpy as jnp
from jax.experimental import pallas as pl
from jax.experimental.pallas import tpu as pltpu

NEG_SLOPE = 0.01   # PyTorch nn.LeakyReLU default
BN_EPS = 1e-5      # PyTorch nn.BatchNorm2d default


# ----------------------------------------------------------------------------
# Pallas kernels (each kernel = one fully fused layer, whole layer in VMEM)
# ----------------------------------------------------------------------------
def _conv_bn_lrelu_kernel(cols_ref, w_ref, bias_ref, gamma_ref, beta_ref, o_ref):
    """rows = LeakyReLU(BN_train(cols @ W + b)).  cols:[M,K] bf16, W:[K,C] bf16."""
    acc = jnp.dot(cols_ref[...], w_ref[...], preferred_element_type=jnp.float32)
    acc = acc + bias_ref[...]
    m = acc.shape[0]
    mean = jnp.sum(acc, axis=0, keepdims=True) * (1.0 / m)
    diff = acc - mean
    var = jnp.sum(diff * diff, axis=0, keepdims=True) * (1.0 / m)   # biased var (train BN)
    scale = gamma_ref[...] * jax.lax.rsqrt(var + BN_EPS)
    y = diff * scale + beta_ref[...]
    y = jnp.where(y >= 0.0, y, NEG_SLOPE * y)
    o_ref[...] = y.astype(o_ref.dtype)


def _convt_bn_lrelu_kernel(cols_ref, w_ref, bias_ref, gamma_ref, beta_ref, o_ref, *,
                           cout):
    """Sub-pixel ConvTranspose2d(k=3,s=2,p=1,op=1) + bias + train-BN + LeakyReLU.

    cols: [M, 4*Cin] (2x2 neighbour taps of the un-dilated input),
    W:    [4*Cin, 4*Cout] (the 4 output phases stacked along lanes).
    BN statistics are per channel over all output positions = over all M rows AND all
    4 phase blocks, so the per-phase column stats are combined in-kernel.
    """
    acc = jnp.dot(cols_ref[...], w_ref[...], preferred_element_type=jnp.float32)
    acc = acc + bias_ref[...]                      # bias pre-tiled to [1, 4*Cout]
    m = acc.shape[0]
    inv_cnt = 1.0 / (4 * m)
    s1 = jnp.sum(acc, axis=0, keepdims=True)       # [1, 4*Cout]
    s1 = (s1[:, 0:cout] + s1[:, cout:2 * cout]
          + s1[:, 2 * cout:3 * cout] + s1[:, 3 * cout:4 * cout])
    mean = s1 * inv_cnt                            # [1, Cout]
    mean4 = jnp.concatenate([mean] * 4, axis=-1)
    diff = acc - mean4
    s2 = jnp.sum(diff * diff, axis=0, keepdims=True)
    s2 = (s2[:, 0:cout] + s2[:, cout:2 * cout]
          + s2[:, 2 * cout:3 * cout] + s2[:, 3 * cout:4 * cout])
    var = s2 * inv_cnt
    scale = gamma_ref[...] * jax.lax.rsqrt(var + BN_EPS)
    shift = beta_ref[...] - mean * scale
    scale4 = jnp.concatenate([scale] * 4, axis=-1)
    shift4 = jnp.concatenate([shift] * 4, axis=-1)
    y = acc * scale4 + shift4
    y = jnp.where(y >= 0.0, y, NEG_SLOPE * y)
    o_ref[...] = y.astype(o_ref.dtype)


def _bottleneck_kernel(flat_ref, wmv_ref, bmv_ref, wd_ref, bd_ref,
                       mu_ref, lv_ref, d_ref, *, latent):
    """Fused fc_mu + fc_var (+ z = mu) + decoder_input: two chained MXU matmuls."""
    mv = jnp.dot(flat_ref[...], wmv_ref[...], preferred_element_type=jnp.float32)
    mv = mv + bmv_ref[...]
    mu = mv[:, :latent]
    mu_ref[...] = mu
    lv_ref[...] = mv[:, latent:]
    d = jnp.dot(mu.astype(jnp.bfloat16), wd_ref[...],
                preferred_element_type=jnp.float32) + bd_ref[...]
    d_ref[...] = d.astype(d_ref.dtype)


def _final_conv_kernel(cols_ref, w_ref, bias_ref, logit_ref, sig_ref):
    """Final Conv2d: emits logit and sigmoid(logit) from the same VMEM-resident acc."""
    acc = jnp.dot(cols_ref[...], w_ref[...], preferred_element_type=jnp.float32)
    acc = acc + bias_ref[...]
    logit_ref[...] = acc
    sig_ref[...] = jax.nn.sigmoid(acc)             # sigmoid -> EUP slot, free next to MXU


# ----------------------------------------------------------------------------
# pallas_call helper: whole-array blocks in VMEM, no grid (single-step layers)
# ----------------------------------------------------------------------------
_VMEM = pl.BlockSpec(memory_space=pltpu.MemorySpace.VMEM)


def _vmem_call(kernel, out_shape, *inputs):
    multi = isinstance(out_shape, tuple)
    return pl.pallas_call(
        kernel,
        out_shape=out_shape,
        in_specs=[_VMEM] * len(inputs),
        out_specs=tuple([_VMEM] * len(out_shape)) if multi else _VMEM,
    )(*inputs)


# ----------------------------------------------------------------------------
# Thin XLA glue: NHWC patch extraction (channels stay on the lane axis)
# ----------------------------------------------------------------------------
def _im2col_nhwc(x, k, stride, pad):
    """NHWC patch extraction -> rows [B*Ho*Wo, k*k*C] in (ky, kx, ci) column order."""
    B, H, W, C = x.shape
    xp = jnp.pad(x, ((0, 0), (pad, pad), (pad, pad), (0, 0)))
    Ho = (H + 2 * pad - k) // stride + 1
    Wo = (W + 2 * pad - k) // stride + 1
    taps = []
    for ky in range(k):
        for kx in range(k):
            taps.append(xp[:, ky:ky + stride * (Ho - 1) + 1:stride,
                           kx:kx + stride * (Wo - 1) + 1:stride, :])
    cols = jnp.concatenate(taps, axis=-1)          # [B, Ho, Wo, k*k*C]
    return cols.reshape(B * Ho * Wo, k * k * C), Ho, Wo


# ----------------------------------------------------------------------------
# Layer wrappers
# ----------------------------------------------------------------------------
def conv_bn_lrelu(x, p, *, stride=2, pad=1):
    """Conv2d(k=3) + BatchNorm2d(train stats) + LeakyReLU.  NHWC in / NHWC out."""
    B = x.shape[0]
    cout = p["gamma"].shape[1]
    cols, Ho, Wo = _im2col_nhwc(x, 3, stride, pad)
    y = _vmem_call(
        _conv_bn_lrelu_kernel,
        jax.ShapeDtypeStruct((cols.shape[0], cout), jnp.bfloat16),
        cols.astype(jnp.bfloat16), p["w"], p["bias"], p["gamma"], p["beta"])
    return y.reshape(B, Ho, Wo, cout)


def convt_bn_lrelu(x, p):
    """ConvTranspose2d(k=3,s=2,p=1,op=1) + BN(train) + LeakyReLU via sub-pixel matmul."""
    B, H, W, cin = x.shape
    cout = p["gamma"].shape[1]
    xp = jnp.pad(x, ((0, 0), (0, 1), (0, 1), (0, 0)))   # one zero row/col for boundary taps
    cols = jnp.concatenate(                             # 2x2 neighbour taps, t = dy*2+dx
        [xp[:, 0:H, 0:W, :], xp[:, 0:H, 1:W + 1, :],
         xp[:, 1:H + 1, 0:W, :], xp[:, 1:H + 1, 1:W + 1, :]], axis=-1)
    cols = cols.reshape(B * H * W, 4 * cin).astype(jnp.bfloat16)
    y = _vmem_call(
        functools.partial(_convt_bn_lrelu_kernel, cout=cout),
        jax.ShapeDtypeStruct((B * H * W, 4 * cout), jnp.bfloat16),
        cols, p["w"], p["bias4"], p["gamma"], p["beta"])
    # Interleave the 4 phases: (b, iy, ix, py, px, c) -> (b, 2*iy+py, 2*ix+px, c).
    y = y.reshape(B, H, W, 2, 2, cout).transpose(0, 1, 3, 2, 4, 5)
    return y.reshape(B, 2 * H, 2 * W, cout)


# ----------------------------------------------------------------------------
# Parameters: deterministic init, pre-packed once into matmul-ready layouts.
# (Only jnp arrays go in the pytree; all hyperparameters live in the static cfg.)
# ----------------------------------------------------------------------------
def init_params(key, cfg):
    hidden = cfg["hidden_dims"]
    latent = cfg["latent_dim"]
    in_ch = cfg["in_channels"]
    out_ch = cfg["out_channels"]
    spatial = cfg["spatial"]
    keys = iter(jax.random.split(key, 64))

    def zeros_row(n):
        return jnp.zeros((1, n), jnp.float32)

    def ones_row(n):
        return jnp.ones((1, n), jnp.float32)

    def conv_pack(cout, cin, k=3):
        # PyTorch Conv2d weight (cout, cin, k, k) -> [k*k*cin, cout] matmul matrix
        # matching the NHWC im2col column order (ky, kx, ci).
        w = jax.random.normal(next(keys), (cout, cin, k, k), jnp.float32)
        w = w / jnp.sqrt(cin * k * k)
        return w.transpose(2, 3, 1, 0).reshape(k * k * cin, cout).astype(jnp.bfloat16)

    def convt_pack(cin, cout, k=3):
        # PyTorch ConvTranspose2d weight (cin, cout, k, k) -> sub-pixel matrix
        # [4*cin (2x2 input taps), 4*cout (2x2 output phases)].
        w = jax.random.normal(next(keys), (cin, cout, k, k), jnp.float32)
        w = w / jnp.sqrt(cin * k * k)
        wb = jnp.zeros((4 * cin, 4 * cout), jnp.float32)
        # (output parity, input tap offset) -> kernel index; (parity 0, tap 1) unused.
        kmap = {(0, 0): 1, (1, 0): 2, (1, 1): 0}
        for py in (0, 1):
            for dy in (0, 1):
                if (py, dy) not in kmap:
                    continue
                ky = kmap[(py, dy)]
                for px in (0, 1):
                    for dx in (0, 1):
                        if (px, dx) not in kmap:
                            continue
                        kx = kmap[(px, dx)]
                        t, ph = dy * 2 + dx, py * 2 + px
                        wb = wb.at[t * cin:(t + 1) * cin,
                                   ph * cout:(ph + 1) * cout].set(w[:, :, ky, kx])
        return wb.astype(jnp.bfloat16)

    def lin_pack(n_in, n_out):
        # nn.Linear weight (out, in) pre-transposed to [in, out].
        w = jax.random.normal(next(keys), (n_out, n_in), jnp.float32) / jnp.sqrt(n_in)
        return w.T.astype(jnp.bfloat16)

    params = {"encoder": [], "decoder": []}
    prev = in_ch
    for hdim in hidden:
        params["encoder"].append({"w": conv_pack(hdim, prev), "bias": zeros_row(hdim),
                                  "gamma": ones_row(hdim), "beta": zeros_row(hdim)})
        prev = hdim

    s_last = spatial // (2 ** len(hidden))
    flat = hidden[-1] * s_last * s_last
    # fc_mu and fc_var fused into one [flat, 2*latent] matmul.
    params["fc_mu_var"] = {
        "w": jnp.concatenate([lin_pack(flat, latent), lin_pack(flat, latent)], axis=1),
        "bias": zeros_row(2 * latent)}
    params["decoder_input"] = {"w": lin_pack(latent, flat), "bias": zeros_row(flat)}

    rev = hidden[::-1]
    for i in range(len(rev) - 1):
        c = rev[i + 1]
        params["decoder"].append({"w": convt_pack(rev[i], c), "bias4": zeros_row(4 * c),
                                  "gamma": ones_row(c), "beta": zeros_row(c)})

    c = rev[-1]
    params["final"] = {
        "convt": {"w": convt_pack(c, c), "bias4": zeros_row(4 * c),
                  "gamma": ones_row(c), "beta": zeros_row(c)},
        "conv_w": conv_pack(out_ch, c), "conv_bias": zeros_row(out_ch)}
    return params


# ----------------------------------------------------------------------------
# VanillaVAE + CompressDbWrapper2d.forward  (static cfg captured by closure)
# ----------------------------------------------------------------------------
def make_forward(cfg):
    hidden = cfg["hidden_dims"]
    latent = cfg["latent_dim"]
    s0 = cfg["spatial"] // (2 ** len(hidden))
    c0 = hidden[-1]
    flat_dim = c0 * s0 * s0
    label_count = cfg["label_count"]

    def forward(params, image, label):
        # --- CompressDbWrapper2d.forward (mix-channel path) ---
        label = label.astype(jnp.float32) / (label_count - 1)
        x = jnp.concatenate([jnp.transpose(image, (0, 2, 3, 1)), label[..., None]],
                            axis=-1)                       # NHWC, C = m_in_channels
        x = x.astype(jnp.bfloat16)                         # bf16 activations end-to-end
        B = x.shape[0]

        # --- VanillaVAE.encode ---
        h = x
        for p in params["encoder"]:
            h = conv_bn_lrelu(h, p)
        flat = h.reshape(B, -1)      # NHWC-order flatten; fc weights are packed to match

        # --- fused bottleneck: fc_mu / fc_var, z = mu (use_reparameterize=False),
        #     and decoder_input, all from one VMEM-resident kernel ---
        pmv, pdi = params["fc_mu_var"], params["decoder_input"]
        mu, log_var, d = _vmem_call(
            functools.partial(_bottleneck_kernel, latent=latent),
            (jax.ShapeDtypeStruct((B, latent), jnp.float32),
             jax.ShapeDtypeStruct((B, latent), jnp.float32),
             jax.ShapeDtypeStruct((B, flat_dim), jnp.bfloat16)),
            flat.astype(jnp.bfloat16), pmv["w"], pmv["bias"], pdi["w"], pdi["bias"])

        # --- VanillaVAE.decode ---
        h = d.reshape(B, s0, s0, c0)
        for p in params["decoder"]:
            h = convt_bn_lrelu(h, p)
        fp = params["final"]
        h = convt_bn_lrelu(h, fp["convt"])
        cols, Ho, Wo = _im2col_nhwc(h, 3, 1, 1)
        out_ch = fp["conv_bias"].shape[1]
        logit_rows, sig_rows = _vmem_call(
            _final_conv_kernel,
            (jax.ShapeDtypeStruct((cols.shape[0], out_ch), jnp.float32),
             jax.ShapeDtypeStruct((cols.shape[0], out_ch), jnp.float32)),
            cols.astype(jnp.bfloat16), fp["conv_w"], fp["conv_bias"])

        # back to NCHW only at the module boundary
        logit = logit_rows.reshape(B, Ho, Wo, out_ch).transpose(0, 3, 1, 2)
        after_softmax = sig_rows.reshape(B, Ho, Wo, out_ch).transpose(0, 3, 1, 2)
        # Result fields: pred_softmax (= sigmoid(logit)), logit, aux_data={'mu','log_var'}
        return after_softmax, logit, mu, log_var

    return forward


# ----------------------------------------------------------------------------
if __name__ == "__main__":
    # Small config consistent with the module: m_in_channels=2 (1 image channel +
    # 1 normalized label channel), label_count=4 -> out_channel=5,
    # hidden_dims=[8,16,32], latent_dim=32, shape=(16,16), batch=2.
    label_count = 4
    cfg = dict(in_channels=2, label_count=label_count, out_channels=1 + label_count,
               hidden_dims=[8, 16, 32], latent_dim=32, spatial=16)
    B, H, W = 2, cfg["spatial"], cfg["spatial"]

    key = jax.random.PRNGKey(0)
    k_param, k_img, k_lbl = jax.random.split(key, 3)
    params = init_params(k_param, cfg)

    image = jax.random.normal(k_img, (B, cfg["in_channels"] - 1, H, W), jnp.float32)
    label = jax.random.randint(k_lbl, (B, H, W), 0, label_count, jnp.int32)

    fwd = jax.jit(make_forward(cfg))
    after_softmax, logit, mu, log_var = fwd(params, image, label)
    jax.block_until_ready((after_softmax, logit, mu, log_var))

    assert after_softmax.shape == (B, cfg["out_channels"], H, W)
    assert logit.shape == (B, cfg["out_channels"], H, W)
    assert mu.shape == (B, cfg["latent_dim"]) and log_var.shape == (B, cfg["latent_dim"])
    assert bool(jnp.all(jnp.isfinite(after_softmax)))
    assert bool(jnp.all(jnp.isfinite(logit)))
    print("KERNEL_OK")
</pallas_src>

<mosaic_0001>
module attributes {stable_mosaic.version = 11 : i64} {
  func.func @_conv_bn_lrelu_kernel(%arg0: memref<128x18xbf16, #tpu.memory_space<vmem>>, %arg1: memref<18x8xbf16, #tpu.memory_space<vmem>>, %arg2: memref<1x8xf32, #tpu.memory_space<vmem>>, %arg3: memref<1x8xf32, #tpu.memory_space<vmem>>, %arg4: memref<1x8xf32, #tpu.memory_space<vmem>>, %arg5: memref<128x8xbf16, #tpu.memory_space<vmem>>) attributes {dimension_semantics = [], scalar_prefetch = 0 : i64, scratch_operands = 0 : i64, tpu.core_type = #tpu.core_type<tc>} {
    %c0 = arith.constant 0 : index
    %c0_0 = arith.constant 0 : index
    %0 = vector.load %arg0[%c0, %c0_0] : memref<128x18xbf16, #tpu.memory_space<vmem>>, vector<128x18xbf16>
    %c0_1 = arith.constant 0 : index
    %c0_2 = arith.constant 0 : index
    %1 = vector.load %arg1[%c0_1, %c0_2] : memref<18x8xbf16, #tpu.memory_space<vmem>>, vector<18x8xbf16>
    %cst = arith.constant dense<0.000000e+00> : vector<128x8xf32>
    %2 = tpu.matmul %0, %1, %cst {dimension_numbers = #tpu.dot_dimension_numbers<[1], [0], [0], [1], [0, 0, 1, 1], [], []>} : vector<128x18xbf16>, vector<18x8xbf16>, vector<128x8xf32> -> vector<128x8xf32>
    %c0_3 = arith.constant 0 : index
    %c0_4 = arith.constant 0 : index
    %3 = vector.load %arg2[%c0_3, %c0_4] : memref<1x8xf32, #tpu.memory_space<vmem>>, vector<1x8xf32>
    %4 = vector.broadcast %3 : vector<1x8xf32> to vector<128x8xf32>
    %5 = arith.addf %2, %4 : vector<128x8xf32>
    %cst_5 = arith.constant dense<0.000000e+00> : vector<8xf32>
    %6 = vector.multi_reduction <add>, %5, %cst_5 [0] : vector<128x8xf32> to vector<8xf32>
    %7 = vector.shape_cast %6 : vector<8xf32> to vector<1x8xf32>
    %cst_6 = arith.constant 7.812500e-03 : f32
    %8 = vector.broadcast %cst_6 : f32 to vector<1x8xf32>
    %9 = arith.mulf %7, %8 : vector<1x8xf32>
    %10 = vector.broadcast %9 : vector<1x8xf32> to vector<128x8xf32>
    %11 = arith.subf %5, %10 : vector<128x8xf32>
    %12 = arith.mulf %11, %11 : vector<128x8xf32>
    %cst_7 = arith.constant dense<0.000000e+00> : vector<8xf32>
    %13 = vector.multi_reduction <add>, %12, %cst_7 [0] : vector<128x8xf32> to vector<8xf32>
    %14 = vector.shape_cast %13 : vector<8xf32> to vector<1x8xf32>
    %cst_8 = arith.constant 7.812500e-03 : f32
    %15 = vector.broadcast %cst_8 : f32 to vector<1x8xf32>
    %16 = arith.mulf %14, %15 : vector<1x8xf32>
    %c0_9 = arith.constant 0 : index
    %c0_10 = arith.constant 0 : index
    %17 = vector.load %arg3[%c0_9, %c0_10] : memref<1x8xf32, #tpu.memory_space<vmem>>, vector<1x8xf32>
    %cst_11 = arith.constant 9.99999974E-6 : f32
    %18 = vector.broadcast %cst_11 : f32 to vector<1x8xf32>
    %19 = arith.addf %16, %18 : vector<1x8xf32>
    %20 = math.rsqrt %19 : vector<1x8xf32>
    %21 = arith.mulf %17, %20 : vector<1x8xf32>
    %22 = vector.broadcast %21 : vector<1x8xf32> to vector<128x8xf32>
    %23 = arith.mulf %11, %22 : vector<128x8xf32>
    %c0_12 = arith.constant 0 : index
    %c0_13 = arith.constant 0 : index
    %24 = vector.load %arg4[%c0_12, %c0_13] : memref<1x8xf32, #tpu.memory_space<vmem>>, vector<1x8xf32>
    %25 = vector.broadcast %24 : vector<1x8xf32> to vector<128x8xf32>
    %26 = arith.addf %23, %25 : vector<128x8xf32>
    %cst_14 = arith.constant 0.000000e+00 : f32
    %27 = vector.broadcast %cst_14 : f32 to vector<128x8xf32>
    %28 = arith.cmpf oge, %26, %27 : vector<128x8xf32>
    %cst_15 = arith.constant 0.00999999977 : f32
    %29 = vector.broadcast %cst_15 : f32 to vector<128x8xf32>
    %30 = arith.mulf %29, %26 : vector<128x8xf32>
    %31 = arith.select %28, %26, %30 : vector<128x8xi1>, vector<128x8xf32>
    %32 = arith.truncf %31 : vector<128x8xf32> to vector<128x8xbf16>
    %c0_16 = arith.constant 0 : index
    %c0_17 = arith.constant 0 : index
    %33 = vector.load %arg5[%c0_16, %c0_17] : memref<128x8xbf16, #tpu.memory_space<vmem>>, vector<128x8xbf16>
    tpu.vector_store %arg5[%c0_16, %c0_17], %32 {strides = array<i32>} : memref<128x8xbf16, #tpu.memory_space<vmem>>, vector<128x8xbf16>,
    return
  }
}

module attributes {stable_mosaic.version = 11 : i64} {
  func.func @_conv_bn_lrelu_kernel(%arg0: memref<32x72xbf16, #tpu.memory_space<vmem>>, %arg1: memref<72x16xbf16, #tpu.memory_space<vmem>>, %arg2: memref<1x16xf32, #tpu.memory_space<vmem>>, %arg3: memref<1x16xf32, #tpu.memory_space<vmem>>, %arg4: memref<1x16xf32, #tpu.memory_space<vmem>>, %arg5: memref<32x16xbf16, #tpu.memory_space<vmem>>) attributes {dimension_semantics = [], scalar_prefetch = 0 : i64, scratch_operands = 0 : i64, tpu.core_type = #tpu.core_type<tc>} {
    %c0 = arith.constant 0 : index
    %c0_0 = arith.constant 0 : index
    %0 = vector.load %arg0[%c0, %c0_0] : memref<32x72xbf16, #tpu.memory_space<vmem>>, vector<32x72xbf16>
    %c0_1 = arith.constant 0 : index
    %c0_2 = arith.constant 0 : index
    %1 = vector.load %arg1[%c0_1, %c0_2] : memref<72x16xbf16, #tpu.memory_space<vmem>>, vector<72x16xbf16>
    %cst = arith.constant dense<0.000000e+00> : vector<32x16xf32>
    %2 = tpu.matmul %0, %1, %cst {dimension_numbers = #tpu.dot_dimension_numbers<[1], [0], [0], [1], [0, 0, 1, 1], [], []>} : vector<32x72xbf16>, vector<72x16xbf16>, vector<32x16xf32> -> vector<32x16xf32>
    %c0_3 = arith.constant 0 : index
    %c0_4 = arith.constant 0 : index
    %3 = vector.load %arg2[%c0_3, %c0_4] : memref<1x16xf32, #tpu.memory_space<vmem>>, vector<1x16xf32>
    %4 = vector.broadcast %3 : vector<1x16xf32> to vector<32x16xf32>
    %5 = arith.addf %2, %4 : vector<32x16xf32>
    %cst_5 = arith.constant dense<0.000000e+00> : vector<16xf32>
    %6 = vector.multi_reduction <add>, %5, %cst_5 [0] : vector<32x16xf32> to vector<16xf32>
    %7 = vector.shape_cast %6 : vector<16xf32> to vector<1x16xf32>
    %cst_6 = arith.constant 3.125000e-02 : f32
    %8 = vector.broadcast %cst_6 : f32 to vector<1x16xf32>
    %9 = arith.mulf %7, %8 : vector<1x16xf32>
    %10 = vector.broadcast %9 : vector<1x16xf32> to vector<32x16xf32>
    %11 = arith.subf %5, %10 : vector<32x16xf32>
    %12 = arith.mulf %11, %11 : vector<32x16xf32>
    %cst_7 = arith.constant dense<0.000000e+00> : vector<16xf32>
    %13 = vector.multi_reduction <add>, %12, %cst_7 [0] : vector<32x16xf32> to vector<16xf32>
    %14 = vector.shape_cast %13 : vector<16xf32> to vector<1x16xf32>
    %cst_8 = arith.constant 3.125000e-02 : f32
    %15 = vector.broadcast %cst_8 : f32 to vector<1x16xf32>
    %16 = arith.mulf %14, %15 : vector<1x16xf32>
    %c0_9 = arith.constant 0 : index
    %c0_10 = arith.constant 0 : index
    %17 = vector.load %arg3[%c0_9, %c0_10] : memref<1x16xf32, #tpu.memory_space<vmem>>, vector<1x16xf32>
    %cst_11 = arith.constant 9.99999974E-6 : f32
    %18 = vector.broadcast %cst_11 : f32 to vector<1x16xf32>
    %19 = arith.addf %16, %18 : vector<1x16xf32>
    %20 = math.rsqrt %19 : vector<1x16xf32>
    %21 = arith.mulf %17, %20 : vector<1x16xf32>
    %22 = vector.broadcast %21 : vector<1x16xf32> to vector<32x16xf32>
    %23 = arith.mulf %11, %22 : vector<32x16xf32>
    %c0_12 = arith.constant 0 : index
    %c0_13 = arith.constant 0 : index
    %24 = vector.load %arg4[%c0_12, %c0_13] : memref<1x16xf32, #tpu.memory_space<vmem>>, vector<1x16xf32>
    %25 = vector.broadcast %24 : vector<1x16xf32> to vector<32x16xf32>
    %26 = arith.addf %23, %25 : vector<32x16xf32>
    %cst_14 = arith.constant 0.000000e+00 : f32
    %27 = vector.broadcast %cst_14 : f32 to vector<32x16xf32>
    %28 = arith.cmpf oge, %26, %27 : vector<32x16xf32>
    %cst_15 = arith.constant 0.00999999977 : f32
    %29 = vector.broadcast %cst_15 : f32 to vector<32x16xf32>
    %30 = arith.mulf %29, %26 : vector<32x16xf32>
    %31 = arith.select %28, %26, %30 : vector<32x16xi1>, vector<32x16xf32>
    %32 = arith.truncf %31 : vector<32x16xf32> to vector<32x16xbf16>
    %c0_16 = arith.constant 0 : index
    %c0_17 = arith.constant 0 : index
    %33 = vector.load %arg5[%c0_16, %c0_17] : memref<32x16xbf16, #tpu.memory_space<vmem>>, vector<32x16xbf16>
    tpu.vector_store %arg5[%c0_16, %c0_17], %32 {strides = array<i32>} : memref<32x16xbf16, #tpu.memory_space<vmem>>, vector<32x16xbf16>,
    return
  }
}

module attributes {stable_mosaic.version = 11 : i64} {
  func.func @_bottleneck_kernel(%arg0: memref<2x128xbf16, #tpu.memory_space<vmem>>, %arg1: memref<128x64xbf16, #tpu.memory_space<vmem>>, %arg2: memref<1x64xf32, #tpu.memory_space<vmem>>, %arg3: memref<32x128xbf16, #tpu.memory_space<vmem>>, %arg4: memref<1x128xf32, #tpu.memory_space<vmem>>, %arg5: memref<2x32xf32, #tpu.memory_space<vmem>>, %arg6: memref<2x32xf32, #tpu.memory_space<vmem>>, %arg7: memref<2x128xbf16, #tpu.memory_space<vmem>>) attributes {dimension_semantics = [], scalar_prefetch = 0 : i64, scratch_operands = 0 : i64, tpu.core_type = #tpu.core_type<tc>} {
    %c0 = arith.constant 0 : index
    %c0_0 = arith.constant 0 : index
    %0 = vector.load %arg0[%c0, %c0_0] : memref<2x128xbf16, #tpu.memory_space<vmem>>, vector<2x128xbf16>
    %c0_1 = arith.constant 0 : index
    %c0_2 = arith.constant 0 : index
    %1 = vector.load %arg1[%c0_1, %c0_2] : memref<128x64xbf16, #tpu.memory_space<vmem>>, vector<128x64xbf16>
    %cst = arith.constant dense<0.000000e+00> : vector<2x64xf32>
    %2 = tpu.matmul %0, %1, %cst {dimension_numbers = #tpu.dot_dimension_numbers<[1], [0], [0], [1], [0, 0, 1, 1], [], []>} : vector<2x128xbf16>, vector<128x64xbf16>, vector<2x64xf32> -> vector<2x64xf32>
    %c0_3 = arith.constant 0 : index
    %c0_4 = arith.constant 0 : index
    %3 = vector.load %arg2[%c0_3, %c0_4] : memref<1x64xf32, #tpu.memory_space<vmem>>, vector<1x64xf32>
    %4 = vector.broadcast %3 : vector<1x64xf32> to vector<2x64xf32>
    %5 = arith.addf %2, %4 : vector<2x64xf32>
    %6 = vector.extract_strided_slice %5 {offsets = [0, 0], sizes = [2, 32], strides = [1, 1]} : vector<2x64xf32> to vector<2x32xf32>
    %c0_5 = arith.constant 0 : index
    %c0_6 = arith.constant 0 : index
    %7 = vector.load %arg5[%c0_5, %c0_6] : memref<2x32xf32, #tpu.memory_space<vmem>>, vector<2x32xf32>
    tpu.vector_store %arg5[%c0_5, %c0_6], %6 {strides = array<i32>} : memref<2x32xf32, #tpu.memory_space<vmem>>, vector<2x32xf32>,
    %8 = vector.extract_strided_slice %5 {offsets = [0, 32], sizes = [2, 32], strides = [1, 1]} : vector<2x64xf32> to vector<2x32xf32>
    %c0_7 = arith.constant 0 : index
    %c0_8 = arith.constant 0 : index
    %9 = vector.load %arg6[%c0_7, %c0_8] : memref<2x32xf32, #tpu.memory_space<vmem>>, vector<2x32xf32>
    tpu.vector_store %arg6[%c0_7, %c0_8], %8 {strides = array<i32>} : memref<2x32xf32, #tpu.memory_space<vmem>>, vector<2x32xf32>,
    %10 = arith.truncf %6 : vector<2x32xf32> to vector<2x32xbf16>
    %c0_9 = arith.constant 0 : index
    %c0_10 = arith.constant 0 : index
    %11 = vector.load %arg3[%c0_9, %c0_10] : memref<32x128xbf16, #tpu.memory_space<vmem>>, vector<32x128xbf16>
    %cst_11 = arith.constant dense<0.000000e+00> : vector<2x128xf32>
    %12 = tpu.matmul %10, %11, %cst_11 {dimension_numbers = #tpu.dot_dimension_numbers<[1], [0], [0], [1], [0, 0, 1, 1], [], []>} : vector<2x32xbf16>, vector<32x128xbf16>, vector<2x128xf32> -> vector<2x128xf32>
    %c0_12 = arith.constant 0 : index
    %c0_13 = arith.constant 0 : index
    %13 = vector.load %arg4[%c0_12, %c0_13] : memref<1x128xf32, #tpu.memory_space<vmem>>, vector<1x128xf32>
    %14 = vector.broadcast %13 : vector<1x128xf32> to vector<2x128xf32>
    %15 = arith.addf %12, %14 : vector<2x128xf32>
    %16 = arith.truncf %15 : vector<2x128xf32> to vector<2x128xbf16>
    %c0_14 = arith.constant 0 : index
    %c0_15 = arith.constant 0 : index
    %17 = vector.load %arg7[%c0_14, %c0_15] : memref<2x128xbf16, #tpu.memory_space<vmem>>, vector<2x128xbf16>
    tpu.vector_store %arg7[%c0_14, %c0_15], %16 {strides = array<i32>} : memref<2x128xbf16, #tpu.memory_space<vmem>>, vector<2x128xbf16>,
    return
  }
}

module attributes {stable_mosaic.version = 11 : i64} {
  func.func @_conv_bn_lrelu_kernel(%arg0: memref<8x144xbf16, #tpu.memory_space<vmem>>, %arg1: memref<144x32xbf16, #tpu.memory_space<vmem>>, %arg2: memref<1x32xf32, #tpu.memory_space<vmem>>, %arg3: memref<1x32xf32, #tpu.memory_space<vmem>>, %arg4: memref<1x32xf32, #tpu.memory_space<vmem>>, %arg5: memref<8x32xbf16, #tpu.memory_space<vmem>>) attributes {dimension_semantics = [], scalar_prefetch = 0 : i64, scratch_operands = 0 : i64, tpu.core_type = #tpu.core_type<tc>} {
    %c0 = arith.constant 0 : index
    %c0_0 = arith.constant 0 : index
    %0 = vector.load %arg0[%c0, %c0_0] : memref<8x144xbf16, #tpu.memory_space<vmem>>, vector<8x144xbf16>
    %c0_1 = arith.constant 0 : index
    %c0_2 = arith.constant 0 : index
    %1 = vector.load %arg1[%c0_1, %c0_2] : memref<144x32xbf16, #tpu.memory_space<vmem>>, vector<144x32xbf16>
    %cst = arith.constant dense<0.000000e+00> : vector<8x32xf32>
    %2 = tpu.matmul %0, %1, %cst {dimension_numbers = #tpu.dot_dimension_numbers<[1], [0], [0], [1], [0, 0, 1, 1], [], []>} : vector<8x144xbf16>, vector<144x32xbf16>, vector<8x32xf32> -> vector<8x32xf32>
    %c0_3 = arith.constant 0 : index
    %c0_4 = arith.constant 0 : index
    %3 = vector.load %arg2[%c0_3, %c0_4] : memref<1x32xf32, #tpu.memory_space<vmem>>, vector<1x32xf32>
    %4 = vector.broadcast %3 : vector<1x32xf32> to vector<8x32xf32>
    %5 = arith.addf %2, %4 : vector<8x32xf32>
    %cst_5 = arith.constant dense<0.000000e+00> : vector<32xf32>
    %6 = vector.multi_reduction <add>, %5, %cst_5 [0] : vector<8x32xf32> to vector<32xf32>
    %7 = vector.shape_cast %6 : vector<32xf32> to vector<1x32xf32>
    %cst_6 = arith.constant 1.250000e-01 : f32
    %8 = vector.broadcast %cst_6 : f32 to vector<1x32xf32>
    %9 = arith.mulf %7, %8 : vector<1x32xf32>
    %10 = vector.broadcast %9 : vector<1x32xf32> to vector<8x32xf32>
    %11 = arith.subf %5, %10 : vector<8x32xf32>
    %12 = arith.mulf %11, %11 : vector<8x32xf32>
    %cst_7 = arith.constant dense<0.000000e+00> : vector<32xf32>
    %13 = vector.multi_reduction <add>, %12, %cst_7 [0] : vector<8x32xf32> to vector<32xf32>
    %14 = vector.shape_cast %13 : vector<32xf32> to vector<1x32xf32>
    %cst_8 = arith.constant 1.250000e-01 : f32
    %15 = vector.broadcast %cst_8 : f32 to vector<1x32xf32>
    %16 = arith.mulf %14, %15 : vector<1x32xf32>
    %c0_9 = arith.constant 0 : index
    %c0_10 = arith.constant 0 : index
    %17 = vector.load %arg3[%c0_9, %c0_10] : memref<1x32xf32, #tpu.memory_space<vmem>>, vector<1x32xf32>
    %cst_11 = arith.constant 9.99999974E-6 : f32
    %18 = vector.broadcast %cst_11 : f32 to vector<1x32xf32>
    %19 = arith.addf %16, %18 : vector<1x32xf32>
    %20 = math.rsqrt %19 : vector<1x32xf32>
    %21 = arith.mulf %17, %20 : vector<1x32xf32>
    %22 = vector.broadcast %21 : vector<1x32xf32> to vector<8x32xf32>
    %23 = arith.mulf %11, %22 : vector<8x32xf32>
    %c0_12 = arith.constant 0 : index
    %c0_13 = arith.constant 0 : index
    %24 = vector.load %arg4[%c0_12, %c0_13] : memref<1x32xf32, #tpu.memory_space<vmem>>, vector<1x32xf32>
    %25 = vector.broadcast %24 : vector<1x32xf32> to vector<8x32xf32>
    %26 = arith.addf %23, %25 : vector<8x32xf32>
    %cst_14 = arith.constant 0.000000e+00 : f32
    %27 = vector.broadcast %cst_14 : f32 to vector<8x32xf32>
    %28 = arith.cmpf oge, %26, %27 : vector<8x32xf32>
    %cst_15 = arith.constant 0.00999999977 : f32
    %29 = vector.broadcast %cst_15 : f32 to vector<8x32xf32>
    %30 = arith.mulf %29, %26 : vector<8x32xf32>
    %31 = arith.select %28, %26, %30 : vector<8x32xi1>, vector<8x32xf32>
    %32 = arith.truncf %31 : vector<8x32xf32> to vector<8x32xbf16>
    %c0_16 = arith.constant 0 : index
    %c0_17 = arith.constant 0 : index
    %33 = vector.load %arg5[%c0_16, %c0_17] : memref<8x32xbf16, #tpu.memory_space<vmem>>, vector<8x32xbf16>
    tpu.vector_store %arg5[%c0_16, %c0_17], %32 {strides = array<i32>} : memref<8x32xbf16, #tpu.memory_space<vmem>>, vector<8x32xbf16>,
    return
  }
}

module attributes {stable_mosaic.version = 11 : i64} {
  func.func @_convt_bn_lrelu_kernel(%arg0: memref<8x128xbf16, #tpu.memory_space<vmem>>, %arg1: memref<128x64xbf16, #tpu.memory_space<vmem>>, %arg2: memref<1x64xf32, #tpu.memory_space<vmem>>, %arg3: memref<1x16xf32, #tpu.memory_space<vmem>>, %arg4: memref<1x16xf32, #tpu.memory_space<vmem>>, %arg5: memref<8x64xbf16, #tpu.memory_space<vmem>>) attributes {dimension_semantics = [], scalar_prefetch = 0 : i64, scratch_operands = 0 : i64, tpu.core_type = #tpu.core_type<tc>} {
    %c0 = arith.constant 0 : index
    %c0_0 = arith.constant 0 : index
    %0 = vector.load %arg0[%c0, %c0_0] : memref<8x128xbf16, #tpu.memory_space<vmem>>, vector<8x128xbf16>
    %c0_1 = arith.constant 0 : index
    %c0_2 = arith.constant 0 : index
    %1 = vector.load %arg1[%c0_1, %c0_2] : memref<128x64xbf16, #tpu.memory_space<vmem>>, vector<128x64xbf16>
    %cst = arith.constant dense<0.000000e+00> : vector<8x64xf32>
    %2 = tpu.matmul %0, %1, %cst {dimension_numbers = #tpu.dot_dimension_numbers<[1], [0], [0], [1], [0, 0, 1, 1], [], []>} : vector<8x128xbf16>, vector<128x64xbf16>, vector<8x64xf32> -> vector<8x64xf32>
    %c0_3 = arith.constant 0 : index
    %c0_4 = arith.constant 0 : index
    %3 = vector.load %arg2[%c0_3, %c0_4] : memref<1x64xf32, #tpu.memory_space<vmem>>, vector<1x64xf32>
    %4 = vector.broadcast %3 : vector<1x64xf32> to vector<8x64xf32>
    %5 = arith.addf %2, %4 : vector<8x64xf32>
    %cst_5 = arith.constant dense<0.000000e+00> : vector<64xf32>
    %6 = vector.multi_reduction <add>, %5, %cst_5 [0] : vector<8x64xf32> to vector<64xf32>
    %7 = vector.shape_cast %6 : vector<64xf32> to vector<1x64xf32>
    %8 = vector.extract_strided_slice %7 {offsets = [0, 0], sizes = [1, 16], strides = [1, 1]} : vector<1x64xf32> to vector<1x16xf32>
    %9 = vector.extract_strided_slice %7 {offsets = [0, 16], sizes = [1, 16], strides = [1, 1]} : vector<1x64xf32> to vector<1x16xf32>
    %10 = arith.addf %8, %9 : vector<1x16xf32>
    %11 = vector.extract_strided_slice %7 {offsets = [0, 32], sizes = [1, 16], strides = [1, 1]} : vector<1x64xf32> to vector<1x16xf32>
    %12 = arith.addf %10, %11 : vector<1x16xf32>
    %13 = vector.extract_strided_slice %7 {offsets = [0, 48], sizes = [1, 16], strides = [1, 1]} : vector<1x64xf32> to vector<1x16xf32>
    %14 = arith.addf %12, %13 : vector<1x16xf32>
    %cst_6 = arith.constant 3.125000e-02 : f32
    %15 = vector.broadcast %cst_6 : f32 to vector<1x16xf32>
    %16 = arith.mulf %14, %15 : vector<1x16xf32>
    %17 = tpu.concatenate %16, %16, %16, %16 in 1 : vector<1x16xf32>, vector<1x16xf32>, vector<1x16xf32>, vector<1x16xf32> -> vector<1x64xf32>
    %18 = vector.broadcast %17 : vector<1x64xf32> to vector<8x64xf32>
    %19 = arith.subf %5, %18 : vector<8x64xf32>
    %20 = arith.mulf %19, %19 : vector<8x64xf32>
    %cst_7 = arith.constant dense<0.000000e+00> : vector<64xf32>
    %21 = vector.multi_reduction <add>, %20, %cst_7 [0] : vector<8x64xf32> to vector<64xf32>
    %22 = vector.shape_cast %21 : vector<64xf32> to vector<1x64xf32>
    %23 = vector.extract_strided_slice %22 {offsets = [0, 0], sizes = [1, 16], strides = [1, 1]} : vector<1x64xf32> to vector<1x16xf32>
    %24 = vector.extract_strided_slice %22 {offsets = [0, 16], sizes = [1, 16], strides = [1, 1]} : vector<1x64xf32> to vector<1x16xf32>
    %25 = arith.addf %23, %24 : vector<1x16xf32>
    %26 = vector.extract_strided_slice %22 {offsets = [0, 32], sizes = [1, 16], strides = [1, 1]} : vector<1x64xf32> to vector<1x16xf32>
    %27 = arith.addf %25, %26 : vector<1x16xf32>
    %28 = vector.extract_strided_slice %22 {offsets = [0, 48], sizes = [1, 16], strides = [1, 1]} : vector<1x64xf32> to vector<1x16xf32>
    %29 = arith.addf %27, %28 : vector<1x16xf32>
    %cst_8 = arith.constant 3.125000e-02 : f32
    %30 = vector.broadcast %cst_8 : f32 to vector<1x16xf32>
    %31 = arith.mulf %29, %30 : vector<1x16xf32>
    %c0_9 = arith.constant 0 : index
    %c0_10 = arith.constant 0 : index
    %32 = vector.load %arg3[%c0_9, %c0_10] : memref<1x16xf32, #tpu.memory_space<vmem>>, vector<1x16xf32>
    %cst_11 = arith.constant 9.99999974E-6 : f32
    %33 = vector.broadcast %cst_11 : f32 to vector<1x16xf32>
    %34 = arith.addf %31, %33 : vector<1x16xf32>
    %35 = math.rsqrt %34 : vector<1x16xf32>
    %36 = arith.mulf %32, %35 : vector<1x16xf32>
    %c0_12 = arith.constant 0 : index
    %c0_13 = arith.constant 0 : index
    %37 = vector.load %arg4[%c0_12, %c0_13] : memref<1x16xf32, #tpu.memory_space<vmem>>, vector<1x16xf32>
    %38 = arith.mulf %16, %36 : vector<1x16xf32>
    %39 = arith.subf %37, %38 : vector<1x16xf32>
    %40 = tpu.concatenate %36, %36, %36, %36 in 1 : vector<1x16xf32>, vector<1x16xf32>, vector<1x16xf32>, vector<1x16xf32> -> vector<1x64xf32>
    %41 = tpu.concatenate %39, %39, %39, %39 in 1 : vector<1x16xf32>, vector<1x16xf32>, vector<1x16xf32>, vector<1x16xf32> -> vector<1x64xf32>
    %42 = vector.broadcast %40 : vector<1x64xf32> to vector<8x64xf32>
    %43 = arith.mulf %5, %42 : vector<8x64xf32>
    %44 = vector.broadcast %41 : vector<1x64xf32> to vector<8x64xf32>
    %45 = arith.addf %43, %44 : vector<8x64xf32>
    %cst_14 = arith.constant 0.000000e+00 : f32
    %46 = vector.broadcast %cst_14 : f32 to vector<8x64xf32>
    %47 = arith.cmpf oge, %45, %46 : vector<8x64xf32>
    %cst_15 = arith.constant 0.00999999977 : f32
    %48 = vector.broadcast %cst_15 : f32 to vector<8x64xf32>
    %49 = arith.mulf %48, %45 : vector<8x64xf32>
    %50 = arith.select %47, %45, %49 : vector<8x64xi1>, vector<8x64xf32>
    %51 = arith.truncf %50 : vector<8x64xf32> to vector<8x64xbf16>
    %c0_16 = arith.constant 0 : index
    %c0_17 = arith.constant 0 : index
    %52 = vector.load %arg5[%c0_16, %c0_17] : memref<8x64xbf16, #tpu.memory_space<vmem>>, vector<8x64xbf16>
    tpu.vector_store %arg5[%c0_16, %c0_17], %51 {strides = array<i32>} : memref<8x64xbf16, #tpu.memory_space<vmem>>, vector<8x64xbf16>,
    return
  }
}

module attributes {stable_mosaic.version = 11 : i64} {
  func.func @_convt_bn_lrelu_kernel(%arg0: memref<128x32xbf16, #tpu.memory_space<vmem>>, %arg1: memref<32x32xbf16, #tpu.memory_space<vmem>>, %arg2: memref<1x32xf32, #tpu.memory_space<vmem>>, %arg3: memref<1x8xf32, #tpu.memory_space<vmem>>, %arg4: memref<1x8xf32, #tpu.memory_space<vmem>>, %arg5: memref<128x32xbf16, #tpu.memory_space<vmem>>) attributes {dimension_semantics = [], scalar_prefetch = 0 : i64, scratch_operands = 0 : i64, tpu.core_type = #tpu.core_type<tc>} {
    %c0 = arith.constant 0 : index
    %c0_0 = arith.constant 0 : index
    %0 = vector.load %arg0[%c0, %c0_0] : memref<128x32xbf16, #tpu.memory_space<vmem>>, vector<128x32xbf16>
    %c0_1 = arith.constant 0 : index
    %c0_2 = arith.constant 0 : index
    %1 = vector.load %arg1[%c0_1, %c0_2] : memref<32x32xbf16, #tpu.memory_space<vmem>>, vector<32x32xbf16>
    %cst = arith.constant dense<0.000000e+00> : vector<128x32xf32>
    %2 = tpu.matmul %0, %1, %cst {dimension_numbers = #tpu.dot_dimension_numbers<[1], [0], [0], [1], [0, 0, 1, 1], [], []>} : vector<128x32xbf16>, vector<32x32xbf16>, vector<128x32xf32> -> vector<128x32xf32>
    %c0_3 = arith.constant 0 : index
    %c0_4 = arith.constant 0 : index
    %3 = vector.load %arg2[%c0_3, %c0_4] : memref<1x32xf32, #tpu.memory_space<vmem>>, vector<1x32xf32>
    %4 = vector.broadcast %3 : vector<1x32xf32> to vector<128x32xf32>
    %5 = arith.addf %2, %4 : vector<128x32xf32>
    %cst_5 = arith.constant dense<0.000000e+00> : vector<32xf32>
    %6 = vector.multi_reduction <add>, %5, %cst_5 [0] : vector<128x32xf32> to vector<32xf32>
    %7 = vector.shape_cast %6 : vector<32xf32> to vector<1x32xf32>
    %8 = vector.extract_strided_slice %7 {offsets = [0, 0], sizes = [1, 8], strides = [1, 1]} : vector<1x32xf32> to vector<1x8xf32>
    %9 = vector.extract_strided_slice %7 {offsets = [0, 8], sizes = [1, 8], strides = [1, 1]} : vector<1x32xf32> to vector<1x8xf32>
    %10 = arith.addf %8, %9 : vector<1x8xf32>
    %11 = vector.extract_strided_slice %7 {offsets = [0, 16], sizes = [1, 8], strides = [1, 1]} : vector<1x32xf32> to vector<1x8xf32>
    %12 = arith.addf %10, %11 : vector<1x8xf32>
    %13 = vector.extract_strided_slice %7 {offsets = [0, 24], sizes = [1, 8], strides = [1, 1]} : vector<1x32xf32> to vector<1x8xf32>
    %14 = arith.addf %12, %13 : vector<1x8xf32>
    %cst_6 = arith.constant 0.001953125 : f32
    %15 = vector.broadcast %cst_6 : f32 to vector<1x8xf32>
    %16 = arith.mulf %14, %15 : vector<1x8xf32>
    %17 = tpu.concatenate %16, %16, %16, %16 in 1 : vector<1x8xf32>, vector<1x8xf32>, vector<1x8xf32>, vector<1x8xf32> -> vector<1x32xf32>
    %18 = vector.broadcast %17 : vector<1x32xf32> to vector<128x32xf32>
    %19 = arith.subf %5, %18 : vector<128x32xf32>
    %20 = arith.mulf %19, %19 : vector<128x32xf32>
    %cst_7 = arith.constant dense<0.000000e+00> : vector<32xf32>
    %21 = vector.multi_reduction <add>, %20, %cst_7 [0] : vector<128x32xf32> to vector<32xf32>
    %22 = vector.shape_cast %21 : vector<32xf32> to vector<1x32xf32>
    %23 = vector.extract_strided_slice %22 {offsets = [0, 0], sizes = [1, 8], strides = [1, 1]} : vector<1x32xf32> to vector<1x8xf32>
    %24 = vector.extract_strided_slice %22 {offsets = [0, 8], sizes = [1, 8], strides = [1, 1]} : vector<1x32xf32> to vector<1x8xf32>
    %25 = arith.addf %23, %24 : vector<1x8xf32>
    %26 = vector.extract_strided_slice %22 {offsets = [0, 16], sizes = [1, 8], strides = [1, 1]} : vector<1x32xf32> to vector<1x8xf32>
    %27 = arith.addf %25, %26 : vector<1x8xf32>
    %28 = vector.extract_strided_slice %22 {offsets = [0, 24], sizes = [1, 8], strides = [1, 1]} : vector<1x32xf32> to vector<1x8xf32>
    %29 = arith.addf %27, %28 : vector<1x8xf32>
    %cst_8 = arith.constant 0.001953125 : f32
    %30 = vector.broadcast %cst_8 : f32 to vector<1x8xf32>
    %31 = arith.mulf %29, %30 : vector<1x8xf32>
    %c0_9 = arith.constant 0 : index
    %c0_10 = arith.constant 0 : index
    %32 = vector.load %arg3[%c0_9, %c0_10] : memref<1x8xf32, #tpu.memory_space<vmem>>, vector<1x8xf32>
    %cst_11 = arith.constant 9.99999974E-6 : f32
    %33 = vector.broadcast %cst_11 : f32 to vector<1x8xf32>
    %34 = arith.addf %31, %33 : vector<1x8xf32>
    %35 = math.rsqrt %34 : vector<1x8xf32>
    %36 = arith.mulf %32, %35 : vector<1x8xf32>
    %c0_12 = arith.constant 0 : index
    %c0_13 = arith.constant 0 : index
    %37 = vector.load %arg4[%c0_12, %c0_13] : memref<1x8xf32, #tpu.memory_space<vmem>>, vector<1x8xf32>
    %38 = arith.mulf %16, %36 : vector<1x8xf32>
    %39 = arith.subf %37, %38 : vector<1x8xf32>
    %40 = tpu.concatenate %36, %36, %36, %36 in 1 : vector<1x8xf32>, vector<1x8xf32>, vector<1x8xf32>, vector<1x8xf32> -> vector<1x32xf32>
    %41 = tpu.concatenate %39, %39, %39, %39 in 1 : vector<1x8xf32>, vector<1x8xf32>, vector<1x8xf32>, vector<1x8xf32> -> vector<1x32xf32>
    %42 = vector.broadcast %40 : vector<1x32xf32> to vector<128x32xf32>
    %43 = arith.mulf %5, %42 : vector<128x32xf32>
    %44 = vector.broadcast %41 : vector<1x32xf32> to vector<128x32xf32>
    %45 = arith.addf %43, %44 : vector<128x32xf32>
    %cst_14 = arith.constant 0.000000e+00 : f32
    %46 = vector.broadcast %cst_14 : f32 to vector<128x32xf32>
    %47 = arith.cmpf oge, %45, %46 : vector<128x32xf32>
    %cst_15 = arith.constant 0.00999999977 : f32
    %48 = vector.broadcast %cst_15 : f32 to vector<128x32xf32>
    %49 = arith.mulf %48, %45 : vector<128x32xf32>
    %50 = arith.select %47, %45, %49 : vector<128x32xi1>, vector<128x32xf32>
    %51 = arith.truncf %50 : vector<128x32xf32> to vector<128x32xbf16>
    %c0_16 = arith.constant 0 : index
    %c0_17 = arith.constant 0 : index
    %52 = vector.load %arg5[%c0_16, %c0_17] : memref<128x32xbf16, #tpu.memory_space<vmem>>, vector<128x32xbf16>
    tpu.vector_store %arg5[%c0_16, %c0_17], %51 {strides = array<i32>} : memref<128x32xbf16, #tpu.memory_space<vmem>>, vector<128x32xbf16>,
    return
  }
}

module attributes {stable_mosaic.version = 11 : i64} {
  func.func @_convt_bn_lrelu_kernel(%arg0: memref<32x64xbf16, #tpu.memory_space<vmem>>, %arg1: memref<64x32xbf16, #tpu.memory_space<vmem>>, %arg2: memref<1x32xf32, #tpu.memory_space<vmem>>, %arg3: memref<1x8xf32, #tpu.memory_space<vmem>>, %arg4: memref<1x8xf32, #tpu.memory_space<vmem>>, %arg5: memref<32x32xbf16, #tpu.memory_space<vmem>>) attributes {dimension_semantics = [], scalar_prefetch = 0 : i64, scratch_operands = 0 : i64, tpu.core_type = #tpu.core_type<tc>} {
    %c0 = arith.constant 0 : index
    %c0_0 = arith.constant 0 : index
    %0 = vector.load %arg0[%c0, %c0_0] : memref<32x64xbf16, #tpu.memory_space<vmem>>, vector<32x64xbf16>
    %c0_1 = arith.constant 0 : index
    %c0_2 = arith.constant 0 : index
    %1 = vector.load %arg1[%c0_1, %c0_2] : memref<64x32xbf16, #tpu.memory_space<vmem>>, vector<64x32xbf16>
    %cst = arith.constant dense<0.000000e+00> : vector<32x32xf32>
    %2 = tpu.matmul %0, %1, %cst {dimension_numbers = #tpu.dot_dimension_numbers<[1], [0], [0], [1], [0, 0, 1, 1], [], []>} : vector<32x64xbf16>, vector<64x32xbf16>, vector<32x32xf32> -> vector<32x32xf32>
    %c0_3 = arith.constant 0 : index
    %c0_4 = arith.constant 0 : index
    %3 = vector.load %arg2[%c0_3, %c0_4] : memref<1x32xf32, #tpu.memory_space<vmem>>, vector<1x32xf32>
    %4 = vector.broadcast %3 : vector<1x32xf32> to vector<32x32xf32>
    %5 = arith.addf %2, %4 : vector<32x32xf32>
    %cst_5 = arith.constant dense<0.000000e+00> : vector<32xf32>
    %6 = vector.multi_reduction <add>, %5, %cst_5 [0] : vector<32x32xf32> to vector<32xf32>
    %7 = vector.shape_cast %6 : vector<32xf32> to vector<1x32xf32>
    %8 = vector.extract_strided_slice %7 {offsets = [0, 0], sizes = [1, 8], strides = [1, 1]} : vector<1x32xf32> to vector<1x8xf32>
    %9 = vector.extract_strided_slice %7 {offsets = [0, 8], sizes = [1, 8], strides = [1, 1]} : vector<1x32xf32> to vector<1x8xf32>
    %10 = arith.addf %8, %9 : vector<1x8xf32>
    %11 = vector.extract_strided_slice %7 {offsets = [0, 16], sizes = [1, 8], strides = [1, 1]} : vector<1x32xf32> to vector<1x8xf32>
    %12 = arith.addf %10, %11 : vector<1x8xf32>
    %13 = vector.extract_strided_slice %7 {offsets = [0, 24], sizes = [1, 8], strides = [1, 1]} : vector<1x32xf32> to vector<1x8xf32>
    %14 = arith.addf %12, %13 : vector<1x8xf32>
    %cst_6 = arith.constant 7.812500e-03 : f32
    %15 = vector.broadcast %cst_6 : f32 to vector<1x8xf32>
    %16 = arith.mulf %14, %15 : vector<1x8xf32>
    %17 = tpu.concatenate %16, %16, %16, %16 in 1 : vector<1x8xf32>, vector<1x8xf32>, vector<1x8xf32>, vector<1x8xf32> -> vector<1x32xf32>
    %18 = vector.broadcast %17 : vector<1x32xf32> to vector<32x32xf32>
    %19 = arith.subf %5, %18 : vector<32x32xf32>
    %20 = arith.mulf %19, %19 : vector<32x32xf32>
    %cst_7 = arith.constant dense<0.000000e+00> : vector<32xf32>
    %21 = vector.multi_reduction <add>, %20, %cst_7 [0] : vector<32x32xf32> to vector<32xf32>
    %22 = vector.shape_cast %21 : vector<32xf32> to vector<1x32xf32>
    %23 = vector.extract_strided_slice %22 {offsets = [0, 0], sizes = [1, 8], strides = [1, 1]} : vector<1x32xf32> to vector<1x8xf32>
    %24 = vector.extract_strided_slice %22 {offsets = [0, 8], sizes = [1, 8], strides = [1, 1]} : vector<1x32xf32> to vector<1x8xf32>
    %25 = arith.addf %23, %24 : vector<1x8xf32>
    %26 = vector.extract_strided_slice %22 {offsets = [0, 16], sizes = [1, 8], strides = [1, 1]} : vector<1x32xf32> to vector<1x8xf32>
    %27 = arith.addf %25, %26 : vector<1x8xf32>
    %28 = vector.extract_strided_slice %22 {offsets = [0, 24], sizes = [1, 8], strides = [1, 1]} : vector<1x32xf32> to vector<1x8xf32>
    %29 = arith.addf %27, %28 : vector<1x8xf32>
    %cst_8 = arith.constant 7.812500e-03 : f32
    %30 = vector.broadcast %cst_8 : f32 to vector<1x8xf32>
    %31 = arith.mulf %29, %30 : vector<1x8xf32>
    %c0_9 = arith.constant 0 : index
    %c0_10 = arith.constant 0 : index
    %32 = vector.load %arg3[%c0_9, %c0_10] : memref<1x8xf32, #tpu.memory_space<vmem>>, vector<1x8xf32>
    %cst_11 = arith.constant 9.99999974E-6 : f32
    %33 = vector.broadcast %cst_11 : f32 to vector<1x8xf32>
    %34 = arith.addf %31, %33 : vector<1x8xf32>
    %35 = math.rsqrt %34 : vector<1x8xf32>
    %36 = arith.mulf %32, %35 : vector<1x8xf32>
    %c0_12 = arith.constant 0 : index
    %c0_13 = arith.constant 0 : index
    %37 = vector.load %arg4[%c0_12, %c0_13] : memref<1x8xf32, #tpu.memory_space<vmem>>, vector<1x8xf32>
    %38 = arith.mulf %16, %36 : vector<1x8xf32>
    %39 = arith.subf %37, %38 : vector<1x8xf32>
    %40 = tpu.concatenate %36, %36, %36, %36 in 1 : vector<1x8xf32>, vector<1x8xf32>, vector<1x8xf32>, vector<1x8xf32> -> vector<1x32xf32>
    %41 = tpu.concatenate %39, %39, %39, %39 in 1 : vector<1x8xf32>, vector<1x8xf32>, vector<1x8xf32>, vector<1x8xf32> -> vector<1x32xf32>
    %42 = vector.broadcast %40 : vector<1x32xf32> to vector<32x32xf32>
    %43 = arith.mulf %5, %42 : vector<32x32xf32>
    %44 = vector.broadcast %41 : vector<1x32xf32> to vector<32x32xf32>
    %45 = arith.addf %43, %44 : vector<32x32xf32>
    %cst_14 = arith.constant 0.000000e+00 : f32
    %46 = vector.broadcast %cst_14 : f32 to vector<32x32xf32>
    %47 = arith.cmpf oge, %45, %46 : vector<32x32xf32>
    %cst_15 = arith.constant 0.00999999977 : f32
    %48 = vector.broadcast %cst_15 : f32 to vector<32x32xf32>
    %49 = arith.mulf %48, %45 : vector<32x32xf32>
    %50 = arith.select %47, %45, %49 : vector<32x32xi1>, vector<32x32xf32>
    %51 = arith.truncf %50 : vector<32x32xf32> to vector<32x32xbf16>
    %c0_16 = arith.constant 0 : index
    %c0_17 = arith.constant 0 : index
    %52 = vector.load %arg5[%c0_16, %c0_17] : memref<32x32xbf16, #tpu.memory_space<vmem>>, vector<32x32xbf16>
    tpu.vector_store %arg5[%c0_16, %c0_17], %51 {strides = array<i32>} : memref<32x32xbf16, #tpu.memory_space<vmem>>, vector<32x32xbf16>,
    return
  }
}

module attributes {stable_mosaic.version = 11 : i64} {
  func.func @_final_conv_kernel(%arg0: memref<512x72xbf16, #tpu.memory_space<vmem>>, %arg1: memref<72x5xbf16, #tpu.memory_space<vmem>>, %arg2: memref<1x5xf32, #tpu.memory_space<vmem>>, %arg3: memref<512x5xf32, #tpu.memory_space<vmem>>, %arg4: memref<512x5xf32, #tpu.memory_space<vmem>>) attributes {dimension_semantics = [], scalar_prefetch = 0 : i64, scratch_operands = 0 : i64, tpu.core_type = #tpu.core_type<tc>} {
    %c0 = arith.constant 0 : index
    %c0_0 = arith.constant 0 : index
    %0 = vector.load %arg0[%c0, %c0_0] : memref<512x72xbf16, #tpu.memory_space<vmem>>, vector<512x72xbf16>
    %c0_1 = arith.constant 0 : index
    %c0_2 = arith.constant 0 : index
    %1 = vector.load %arg1[%c0_1, %c0_2] : memref<72x5xbf16, #tpu.memory_space<vmem>>, vector<72x5xbf16>
    %cst = arith.constant dense<0.000000e+00> : vector<512x5xf32>
    %2 = tpu.matmul %0, %1, %cst {dimension_numbers = #tpu.dot_dimension_numbers<[1], [0], [0], [1], [0, 0, 1, 1], [], []>} : vector<512x72xbf16>, vector<72x5xbf16>, vector<512x5xf32> -> vector<512x5xf32>
    %c0_3 = arith.constant 0 : index
    %c0_4 = arith.constant 0 : index
    %3 = vector.load %arg2[%c0_3, %c0_4] : memref<1x5xf32, #tpu.memory_space<vmem>>, vector<1x5xf32>
    %4 = vector.broadcast %3 : vector<1x5xf32> to vector<512x5xf32>
    %5 = arith.addf %2, %4 : vector<512x5xf32>
    %c0_5 = arith.constant 0 : index
    %c0_6 = arith.constant 0 : index
    %6 = vector.load %arg3[%c0_5, %c0_6] : memref<512x5xf32, #tpu.memory_space<vmem>>, vector<512x5xf32>
    tpu.vector_store %arg3[%c0_5, %c0_6], %5 {strides = array<i32>} : memref<512x5xf32, #tpu.memory_space<vmem>>, vector<512x5xf32>,
    %7 = arith.negf %5 : vector<512x5xf32>
    %8 = math.exp %7 : vector<512x5xf32>
    %cst_7 = arith.constant 1.000000e+00 : f32
    %9 = vector.broadcast %cst_7 : f32 to vector<512x5xf32>
    %10 = arith.addf %9, %8 : vector<512x5xf32>
    %11 = arith.divf %9, %10 : vector<512x5xf32>
    %c0_8 = arith.constant 0 : index
    %c0_9 = arith.constant 0 : index
    %12 = vector.load %arg4[%c0_8, %c0_9] : memref<512x5xf32, #tpu.memory_space<vmem>>, vector<512x5xf32>
    tpu.vector_store %arg4[%c0_8, %c0_9], %11 {strides = array<i32>} : memref<512x5xf32, #tpu.memory_space<vmem>>, vector<512x5xf32>,
    return
  }
}

</mosaic_0001>

<bundles_post_ra>
// kernel: forward.8
= control target key start
LH: loop header
LB: loop body
LE: loop exit
PB: predicated region body
PF: predicated region fallthrough
CT: control target
= control target key end

     0   :  { %vm121_vm0 = vcmask 1040384   ;;  %vm96_vm1 = vcmask 146432   ;;  %vm222_vm2 = vcmask 64512   ;;  %s890_s1 = inlined_call_operand.vmem [shape: bf16[18,8], index: 1, kind: input, shape index: {}]   ;;  %s891_s0 = inlined_call_operand.vmem [shape: bf16[128,18], index: 0, kind: input, shape index: {}]   ;;  %s892_s2 = inlined_call_operand.vmem [shape: f32[1,8], index: 2, kind: input, shape index: {}]   ;;  %s893_s3 = inlined_call_operand.vmem [shape: f32[1,8], index: 3, kind: input, shape index: {}]   ;;  %s894_s4 = inlined_call_operand.vmem [shape: f32[1,8], index: 4, kind: input, shape index: {}]   ;;  %s895_s5 = inlined_call_operand.vmem [shape: bf16[128,8], index: 5, kind: output, shape index: {}]  }
   0x1   :  { %v601_v0 = vld [vmem:[%s890_s1] sm:$0xff]   ;;  %v602_v1 = vld [vmem:[%s890_s1 + $0x8] ss:$0 sps:$4 sm:$0x11]   ;;  %v605_v5 = vld [vmem:[%s891_s0 + $0x10] sm:$0xff]  }
   0x2   :  { %v603_v2 = vld [vmem:[%s891_s0] sm:$0xff]   ;;  %575 = vmatprep.subr.bf16.mxu0 %v601_v0  ;;  %595 = vmatprep.subr.bf16.mxu1 %v601_v0  ;;  %v123_v3 = vsel %vm121_vm0, %v602_v1, 0  ;;  %v604_v4 = vld [vmem:[%s891_s0 + $0x8] sm:$0xff]   ;;  %v609_v8 = vld [vmem:[%s891_s0 + $0x30] sm:$0xff]  }
   0x3   :  { %576 = vmatpush3.bf16.msra.mxu0 %v601_v0  ;;  %579 = vmatprep.mubr.msk.bf16.mxu0 %vm96_vm1, %v603_v2  ;;  %v607_v6 = vld [vmem:[%s891_s0 + $0x20] sm:$0xff]   ;;  %v608_v7 = vld [vmem:[%s891_s0 + $0x28] sm:$0xff]   ;;  %v606_v9 = vld [vmem:[%s891_s0 + $0x18] sm:$0xff]  }
   0x4   :  { %599 = vmatprep.subr.msk.bf16.mxu0 %vm121_vm0, %v602_v1  ;;  %597 = vmatpush3.bf16.msra.mxu1 %v601_v0  ;;  %v610_v10 = vld [vmem:[%s891_s0 + $0x38] sm:$0xff]   ;;  %v513_v11 = vld [vmem:[%s892_s2] ss:$0 sm:$0xff] }
   0x5   :  { %600 = vmatprep.subr.msk.bf16.mxu1 %vm121_vm0, %v602_v1  ;;  %587 = vmatprep.mubr.msk.bf16.mxu1 %vm96_vm1, %v607_v6 }
   0x7   :  { %578 = vmatpush3.bf16.msra.mxu0 %v123_v3 }
   0x8   :  { %598 = vmatpush3.bf16.msra.mxu1 %v123_v3 }
   0xa   :  { %580 = vmatmul.mubr.msk.bf16.vlgmr.msra.gmra.mrb[0].mxu0 %vm96_vm1, %v604_v4 }
   0xb   :  { %583 = vmatprep.mubr.msk.bf16.mxu0 %vm96_vm1, %v605_v5  ;;  %588 = vmatmul.mubr.msk.bf16.vlgmr.msra.gmra.mrb[0].mxu1 %vm96_vm1, %v608_v7 }
   0xc   :  { %591 = vmatprep.mubr.msk.bf16.mxu1 %vm96_vm1, %v609_v8 }
  0x12   :  { %584 = vmatmul.mubr.msk.bf16.gmra.mrb[4].mxu0 %vm96_vm1, %v606_v9 }
  0x13   :  { %592 = vmatmul.mubr.msk.bf16.gmra.mrb[4].mxu1 %vm96_vm1, %v610_v10 }
  0xdd   :  { %v581_v12 = vpop.f32.mrb[0].mxu0 }
  0xde   :  { %v159_v13 = vpop.f32.mrb[1].mxu0  ;;  %v589_v14 = vpop.f32.mrb[0].mxu1  ;;  %v686_v20 = vadd.f32 %v581_v12, %v513_v11 }
  0xdf   :  { %v684_v15 = vadd.f32 %v513_v11, %v159_v13  ;;  %v582_v16 = vpop.f32.mrb[2].mxu0  ;;  %v191_v17 = vpop.f32.mrb[1].mxu1  ;;  %v200_v54 = vadd.f32 %v589_v14, %v513_v11 }
  0xe0   :  { %v162_v18 = vpop.f32.mrb[3].mxu0  ;;  %v590_v19 = vpop.f32.mrb[2].mxu1  ;;  %v171_v24 = vadd.f32 %v582_v16, %v513_v11  ;;  %v226_v27 = vsel %vm222_vm2, %v686_v20, 0.0  ;;  %v192_v46 = vadd.f32 %v513_v11, %v191_v17 }
  0xe1   :  { %v163_v21 = vadd.f32 %v513_v11, %v162_v18  ;;  %v194_v22 = vpop.f32.mrb[3].mxu1  ;;  %v223_v23 = vsel %vm222_vm2, %v684_v15, 0.0  ;;  %v203_v56 = vadd.f32 %v590_v19, %v513_v11  ;;  %v242_v60 = vsel %vm222_vm2, %v200_v54, 0.0 }
  0xe2   :  { %v228_v32 = vsel %vm222_vm2, %v171_v24, 0.0  ;;  %v238_v51 = vsel %vm222_vm2, %v192_v46, 0.0  ;;  %v195_v52 = vadd.f32 %v513_v11, %v194_v22 }
  0xe3   :  { %v224_v25 = vsel %vm222_vm2, %v163_v21, 0.0  ;;  %v244_v62 = vsel %vm222_vm2, %v203_v56, 0.0 }
  0xe4   :  { %v225_v26 = vadd.f32 %v224_v25, %v223_v23  ;;  %v240_v57 = vsel %vm222_vm2, %v195_v52, 0.0 }
  0xe5   :  { %v585_v28 = vpop.f32.mrb[4].mxu0 }
  0xe6   :  { %v227_v29 = vadd.f32 %v226_v27, %v225_v26  ;;  %v175_v30 = vpop.f32.mrb[5].mxu0  ;;  %v593_v31 = vpop.f32.mrb[4].mxu1  ;;  %v184_v39 = vadd.f32 %v585_v28, %v513_v11 }
  0xe7   :  { %v176_v33 = vadd.f32 %v513_v11, %v175_v30  ;;  %v586_v34 = vpop.f32.mrb[6].mxu0  ;;  %v207_v35 = vpop.f32.mrb[5].mxu1  ;;  %v216_v2 = vadd.f32 %v593_v31, %v513_v11 }
  0xe8   :  { %v229_v36 = vadd.f32 %v228_v32, %v227_v29  ;;  %v178_v37 = vpop.f32.mrb[7].mxu0  ;;  %v594_v38 = vpop.f32.mrb[6].mxu1  ;;  %v187_v44 = vadd.f32 %v586_v34, %v513_v11  ;;  %v234_v48 = vsel %vm222_vm2, %v184_v39, 0.0  ;;  %v208_v58 = vadd.f32 %v513_v11, %v207_v35 }
  0xe9   :  { %v230_v40 = vsel %vm222_vm2, %v176_v33, 0.0  ;;  %v179_v41 = vadd.f32 %v513_v11, %v178_v37  ;;  %v210_v42 = vpop.f32.mrb[7].mxu1  ;;  %v219_v4 = vadd.f32 %v594_v38, %v513_v11  ;;  %v250_v7 = vsel %vm222_vm2, %v216_v2, 0.0 }
  0xea   :  { %v231_v43 = vadd.f32 %v230_v40, %v229_v36  ;;  %v236_v50 = vsel %vm222_vm2, %v187_v44, 0.0  ;;  %v246_v63 = vsel %vm222_vm2, %v208_v58, 0.0  ;;  %v211_v0 = vadd.f32 %v513_v11, %v210_v42 }
  0xeb   :  { %v232_v45 = vsel %vm222_vm2, %v179_v41, 0.0  ;;  %v252_v9 = vsel %vm222_vm2, %v219_v4, 0.0 }
  0xec   :  { %v233_v47 = vadd.f32 %v232_v45, %v231_v43  ;;  %v248_v5 = vsel %vm222_vm2, %v211_v0, 0.0 }
  0xee   :  { %v235_v49 = vadd.f32 %v234_v48, %v233_v47 }
  0xf0   :  { %v237_v53 = vadd.f32 %v236_v50, %v235_v49 }
  0xf2   :  { %v239_v55 = vadd.f32 %v238_v51, %v237_v53 }
  0xf4   :  { %v241_v59 = vadd.f32 %v240_v57, %v239_v55 }
  0xf6   :  { %v243_v61 = vadd.f32 %v242_v60, %v241_v59 }
  0xf8   :  { %v245_v1 = vadd.f32 %v244_v62, %v243_v61 }
  0xfa   :  { %v247_v3 = vadd.f32 %v246_v63, %v245_v1 }
  0xfc   :  { %v249_v6 = vadd.f32 %v248_v5, %v247_v3 }
  0xfe   :  { %v251_v8 = vadd.f32 %v250_v7, %v249_v6 }
 0x100   :  { %v253_v10 = vadd.f32 %v252_v9, %v251_v8 }
 0x102   :  { %v254_v12 = vrot.slane %v253_v10, 4 }
 0x104   :  { %v255_v13 = vadd.f32 %v254_v12, %v253_v10 }
 0x106   :  { %v256_v14 = vrot.slane %v255_v13, 2 }
 0x108   :  { %v257_v16 = vadd.f32 %v256_v14, %v255_v13 }
 0x10a   :  { %v258_v17 = vrot.slane %v257_v16, 1 }
 0x10c   :  { %v259_v18 = vadd.f32 %v258_v17, %v257_v16 }
 0x10e   :  { %v260_v19 = vmul.f32 0.0078125, %v259_v18 }
 0x110   :  { %v707_v22 = vsub.f32 %v684_v15, %v260_v19  ;;  %v709_v11 = vsub.f32 %v163_v21, %v260_v19  ;;  %v712_v23 = vsub.f32 %v686_v20, %v260_v19  ;;  %v714_v25 = vsub.f32 %v171_v24, %v260_v19 }
 0x111   :  { %v716_v26 = vsub.f32 %v176_v33, %v260_v19  ;;  %v718_v27 = vsub.f32 %v179_v41, %v260_v19  ;;  %v720_v28 = vsub.f32 %v184_v39, %v260_v19  ;;  %v722_v29 = vsub.f32 %v187_v44, %v260_v19 }
 0x112   :  { %v724_v30 = vsub.f32 %v192_v46, %v260_v19  ;;  %v726_v31 = vsub.f32 %v195_v52, %v260_v19  ;;  %v728_v15 = vsub.f32 %v200_v54, %v260_v19  ;;  %v730_v21 = vsub.f32 %v203_v56, %v260_v19 }
 0x113   :  { %v732_v20 = vsub.f32 %v208_v58, %v260_v19  ;;  %v734_v24 = vsub.f32 %v211_v0, %v260_v19  ;;  %v736_v32 = vsub.f32 %v216_v2, %v260_v19  ;;  %v738_v33 = vsub.f32 %v219_v4, %v260_v19 }
 0x114   :  { %v277_v34 = vmul.f32 %v707_v22, %v707_v22  ;;  %v278_v35 = vmul.f32 %v709_v11, %v709_v11  ;;  %v279_v36 = vmul.f32 %v712_v23, %v712_v23  ;;  %v286_v37 = vmul.f32 %v726_v31, %v726_v31 }
 0x115   :  { %v287_v38 = vmul.f32 %v728_v15, %v728_v15  ;;  %v280_v39 = vmul.f32 %v714_v25, %v714_v25  ;;  %v288_v40 = vmul.f32 %v730_v21, %v730_v21  ;;  %v289_v41 = vmul.f32 %v732_v20, %v732_v20 }
 0x116   :  { %v290_v42 = vmul.f32 %v734_v24, %v734_v24  ;;  %v291_v43 = vmul.f32 %v736_v32, %v736_v32  ;;  %v292_v44 = vmul.f32 %v738_v33, %v738_v33  ;;  %v293_v45 = vsel %vm222_vm2, %v277_v34, 0.0 }
 0x117   :  { %v294_v46 = vsel %vm222_vm2, %v278_v35, 0.0  ;;  %v281_v48 = vmul.f32 %v716_v26, %v716_v26  ;;  %v296_v49 = vsel %vm222_vm2, %v279_v36, 0.0  ;;  %v310_v50 = vsel %vm222_vm2, %v286_v37, 0.0 }
 0x118   :  { %v295_v47 = vadd.f32 %v294_v46, %v293_v45  ;;  %v312_v51 = vsel %vm222_vm2, %v287_v38, 0.0  ;;  %v314_v53 = vsel %vm222_vm2, %v288_v40, 0.0  ;;  %v316_v54 = vsel %vm222_vm2, %v289_v41, 0.0 }
 0x119   :  { %v318_v55 = vsel %vm222_vm2, %v290_v42, 0.0  ;;  %v282_v56 = vmul.f32 %v718_v27, %v718_v27  ;;  %v298_v57 = vsel %vm222_vm2, %v280_v39, 0.0  ;;  %v320_v58 = vsel %vm222_vm2, %v291_v43, 0.0  ;;  %v331_v43 = vld [vmem:[%s893_s3] sm:$0x1] }
 0x11a   :  { %v297_v52 = vadd.f32 %v296_v49, %v295_v47  ;;  %v322_v59 = vsel %vm222_vm2, %v292_v44, 0.0  ;;  %v283_v61 = vmul.f32 %v720_v28, %v720_v28  ;;  %v300_v62 = vsel %vm222_vm2, %v281_v48, 0.0 }
 0x11b   :  { %v284_v0 = vmul.f32 %v722_v29, %v722_v29  ;;  %v302_v1 = vsel %vm222_vm2, %v282_v56, 0.0  ;;  %v285_v3 = vmul.f32 %v724_v30, %v724_v30  ;;  %v336_v41 = vlaneseq  ;;  %v532_v56 = vld [vmem:[%s894_s4] ss:$0 sm:$0xff] }
 0x11c   :  { %v299_v60 = vadd.f32 %v298_v57, %v297_v52  ;;  %v304_v4 = vsel %vm222_vm2, %v283_v61, 0.0 }
 0x11d   :  { %v306_v6 = vsel %vm222_vm2, %v284_v0, 0.0  ;;  %v308_v8 = vsel %vm222_vm2, %v285_v3, 0.0  ;;  %v337_v42 = vshrl.u32 %v336_v41, 7 }
 0x11e   :  { %v301_v63 = vadd.f32 %v300_v62, %v299_v60 }
 0x11f   :  { %v338_v44 = vsub.s32 0, %v337_v42 }
 0x120   :  { %v303_v2 = vadd.f32 %v302_v1, %v301_v63 }
 0x122   :  { %v305_v5 = vadd.f32 %v304_v4, %v303_v2 }
 0x124   :  { %v307_v7 = vadd.f32 %v306_v6, %v305_v5 }
 0x126   :  { %v309_v9 = vadd.f32 %v308_v8, %v307_v7 }
 0x128   :  { %v311_v10 = vadd.f32 %v310_v50, %v309_v9 }
 0x12a   :  { %v313_v12 = vadd.f32 %v312_v51, %v311_v10 }
 0x12c   :  { %v315_v13 = vadd.f32 %v314_v53, %v313_v12 }
 0x12e   :  { %v317_v14 = vadd.f32 %v316_v54, %v315_v13 }
 0x130   :  { %v319_v16 = vadd.f32 %v318_v55, %v317_v14 }
 0x132   :  { %v321_v17 = vadd.f32 %v320_v58, %v319_v16 }
 0x134   :  { %v323_v18 = vadd.f32 %v322_v59, %v321_v17 }
 0x136   :  { %v324_v19 = vrot.slane %v323_v18, 4 }
 0x138   :  { %v325_v34 = vadd.f32 %v324_v19, %v323_v18 }
 0x13a   :  { %v326_v35 = vrot.slane %v325_v34, 2 }
 0x13c   :  { %v327_v36 = vadd.f32 %v326_v35, %v325_v34 }
 0x13e   :  { %v328_v37 = vrot.slane %v327_v36, 1 }
 0x140   :  { %v329_v38 = vadd.f32 %v328_v37, %v327_v36 }
 0x142   :  { %v330_v39 = vmul.f32 0.0078125, %v329_v38 }
 0x144   :  { %v332_v40 = vadd.f32 1e-05, %v330_v39 }
 0x146   :  { %611 = vrsqrt.f32 %v332_v40 }
 0x150   :  { %v612_v45 = vpop.eup %611 }
 0x151   :  { %v334_v46 = vmul.f32 %v612_v45, %v331_v43 }
 0x153   :  { %v339_v47 = vrot.slane %v334_v46, %v338_v44 }
 0x155   :  { %v341_v48 = vmul.f32 %v339_v47, %v707_v22  ;;  %v342_v49 = vmul.f32 %v339_v47, %v709_v11  ;;  %v343_v50 = vmul.f32 %v339_v47, %v712_v23  ;;  %v344_v51 = vmul.f32 %v339_v47, %v714_v25 }
 0x156   :  { %v345_v52 = vmul.f32 %v339_v47, %v716_v26  ;;  %v346_v53 = vmul.f32 %v339_v47, %v718_v27  ;;  %v347_v54 = vmul.f32 %v339_v47, %v720_v28  ;;  %v348_v55 = vmul.f32 %v339_v47, %v722_v29 }
 0x157   :  { %v349_v22 = vmul.f32 %v339_v47, %v724_v30  ;;  %v350_v11 = vmul.f32 %v339_v47, %v726_v31  ;;  %v351_v23 = vmul.f32 %v339_v47, %v728_v15  ;;  %v352_v25 = vmul.f32 %v339_v47, %v730_v21 }
 0x158   :  { %v353_v26 = vmul.f32 %v339_v47, %v732_v20  ;;  %v354_v27 = vmul.f32 %v339_v47, %v734_v24  ;;  %v355_v28 = vmul.f32 %v339_v47, %v736_v32  ;;  %v356_v29 = vmul.f32 %v339_v47, %v738_v33 }
 0x159   :  { %v364_v57 = vadd.f32 %v532_v56, %v341_v48  ;;  %v365_v58 = vadd.f32 %v532_v56, %v342_v49  ;;  %v366_v59 = vadd.f32 %v532_v56, %v343_v50  ;;  %v367_v60 = vadd.f32 %v532_v56, %v344_v51 }
 0x15a   :  { %v368_v61 = vadd.f32 %v532_v56, %v345_v52  ;;  %v369_v30 = vadd.f32 %v532_v56, %v346_v53  ;;  %v370_v62 = vadd.f32 %v532_v56, %v347_v54  ;;  %v371_v31 = vadd.f32 %v532_v56, %v348_v55 }
 0x15b   :  { %v372_v63 = vadd.f32 %v532_v56, %v349_v22  ;;  %v373_v15 = vadd.f32 %v532_v56, %v350_v11  ;;  %v374_v0 = vadd.f32 %v532_v56, %v351_v23  ;;  %v375_v21 = vadd.f32 %v532_v56, %v352_v25 }
 0x15c   :  { %v376_v1 = vadd.f32 %v532_v56, %v353_v26  ;;  %v377_v20 = vadd.f32 %v532_v56, %v354_v27  ;;  %v378_v2 = vadd.f32 %v532_v56, %v355_v28  ;;  %v379_v24 = vadd.f32 %v532_v56, %v356_v29 }
 0x15d   :  { %vm381_vm4 = vcmp.ge.f32.partialorder %v365_v58, 0.0  ;;  %vm382_vm5 = vcmp.ge.f32.partialorder %v366_v59, 0.0  ;;  %vm383_vm6 = vcmp.ge.f32.partialorder %v367_v60, 0.0  ;;  %vm384_vm7 = vcmp.ge.f32.partialorder %v368_v61, 0.0 }
 0x15e   :  { %vm385_vm8 = vcmp.ge.f32.partialorder %v369_v30, 0.0  ;;  %vm387_vm10 = vcmp.ge.f32.partialorder %v371_v31, 0.0  ;;  %vm388_vm11 = vcmp.ge.f32.partialorder %v372_v63, 0.0  ;;  %vm389_vm12 = vcmp.ge.f32.partialorder %v373_v15, 0.0 }
 0x15f   :  { %vm390_vm13 = vcmp.ge.f32.partialorder %v374_v0, 0.0  ;;  %vm391_vm14 = vcmp.ge.f32.partialorder %v375_v21, 0.0  ;;  %vm392_vm15 = vcmp.ge.f32.partialorder %v376_v1, 0.0  ;;  %vm393_vm0 = vcmp.ge.f32.partialorder %v377_v20, 0.0 }
 0x160   :  { %vm394_vm1 = vcmp.ge.f32.partialorder %v378_v2, 0.0  ;;  %vm395_vm2 = vcmp.ge.f32.partialorder %v379_v24, 0.0  ;;  %v396_v32 = vmul.f32 0.01, %v364_v57  ;;  %v397_v33 = vmul.f32 0.01, %v365_v58 }
 0x161   :  { %v398_v3 = vmul.f32 0.01, %v366_v59  ;;  %v399_v4 = vmul.f32 0.01, %v367_v60  ;;  %v400_v5 = vmul.f32 0.01, %v368_v61 }
 0x162   :  { %v401_v6 = vmul.f32 0.01, %v369_v30  ;;  %v402_v7 = vmul.f32 0.01, %v370_v62  ;;  %v403_v8 = vmul.f32 0.01, %v371_v31  ;;  %v413_v16 = vsel %vm381_vm4, %v365_v58, %v397_v33 }
 0x163   :  { %v404_v9 = vmul.f32 0.01, %v372_v63  ;;  %vm896_vm9 = vcmp.ge.f32.partialorder %v364_v57, 0.0  ;;  %v405_v12 = vmul.f32 0.01, %v373_v15  ;;  %v414_v34 = vsel %vm382_vm5, %v366_v59, %v398_v3 }
 0x164   :  { %v412_v10 = vsel %vm896_vm9, %v364_v57, %v396_v32  ;;  %v406_v13 = vmul.f32 0.01, %v374_v0  ;;  %v407_v14 = vmul.f32 0.01, %v375_v21  ;;  %v408_v17 = vmul.f32 0.01, %v376_v1 }
 0x165   :  { %v409_v18 = vmul.f32 0.01, %v377_v20  ;;  %v410_v19 = vmul.f32 0.01, %v378_v2  ;;  %v411_v35 = vmul.f32 0.01, %v379_v24  ;;  %v415_v36 = vsel %vm383_vm6, %v367_v60, %v399_v4 }
 0x166   :  { %v416_v37 = vsel %vm384_vm7, %v368_v61, %v400_v5  ;;  %v417_v38 = vsel %vm385_vm8, %v369_v30, %v401_v6  ;;  %vm897_vm3 = vcmp.ge.f32.partialorder %v370_v62, 0.0  ;;  %v419_v40 = vsel %vm387_vm10, %v371_v31, %v403_v8 }
 0x167   :  { %v418_v39 = vsel %vm897_vm3, %v370_v62, %v402_v7  ;;  %v420_v41 = vsel %vm388_vm11, %v372_v63, %v404_v9  ;;  %v421_v42 = vsel %vm389_vm12, %v373_v15, %v405_v12  ;;  %v422_v43 = vsel %vm390_vm13, %v374_v0, %v406_v13 }
 0x168   :  { %v423_v44 = vsel %vm391_vm14, %v375_v21, %v407_v14  ;;  %v424_v45 = vsel %vm392_vm15, %v376_v1, %v408_v17  ;;  %v425_v46 = vsel %vm393_vm0, %v377_v20, %v409_v18  ;;  %v426_v47 = vsel %vm394_vm1, %v378_v2, %v410_v19 }
 0x169   :  { %v427_v48 = vsel %vm395_vm2, %v379_v24, %v411_v35  ;;  %v549_v49 = vpack.c.bf16 %v412_v10, %v412_v10  ;;  %v550_v50 = vpack.c.bf16 %v413_v16, %v413_v16  ;;  %v551_v51 = vpack.c.bf16 %v414_v34, %v414_v34 }
 0x16a   :  { %v552_v52 = vpack.c.bf16 %v415_v36, %v415_v36  ;;  %v553_v53 = vpack.c.bf16 %v416_v37, %v416_v37  ;;  %v554_v54 = vpack.c.bf16 %v417_v38, %v417_v38  ;;  %v555_v55 = vpack.c.bf16 %v418_v39, %v418_v39 }
 0x16b   :  { %v556_v56 = vpack.c.bf16 %v419_v40, %v419_v40  ;;  %v557_v22 = vpack.c.bf16 %v420_v41, %v420_v41  ;;  %v558_v11 = vpack.c.bf16 %v421_v42, %v421_v42  ;;  %vm898_vm3 = vcmask 60416  }
 0x16c   :  { %493 = vst.msk [vmem:[%s895_s5] sm:$0xf] %vm898_vm3, %v549_v49  ;;  %vm899_vm4 = vmmov %vm898_vm3  ;;  %v559_v23 = vpack.c.bf16 %v422_v43, %v422_v43  ;;  %v560_v25 = vpack.c.bf16 %v423_v44, %v423_v44  ;;  %v561_v26 = vpack.c.bf16 %v424_v45, %v424_v45  ;;  %v562_v27 = vpack.c.bf16 %v425_v46, %v425_v46 }
 0x16d   :  { %494 = vst.msk [vmem:[%s895_s5 + $0x4] sm:$0xf] %vm899_vm4, %v550_v50  ;;  %vm900_vm5 = vmmov %vm898_vm3  ;;  %v563_v28 = vpack.c.bf16 %v426_v47, %v426_v47  ;;  %v564_v29 = vpack.c.bf16 %v427_v48, %v427_v48 }
 0x16e   :  { %495 = vst.msk [vmem:[%s895_s5 + $0x8] sm:$0xf] %vm900_vm5, %v551_v51  ;;  %vm901_vm6 = vmmov %vm898_vm3 }
 0x16f   :  { %496 = vst.msk [vmem:[%s895_s5 + $0xc] sm:$0xf] %vm901_vm6, %v552_v52  ;;  %vm902_vm7 = vmmov %vm898_vm3 }
 0x170   :  { %497 = vst.msk [vmem:[%s895_s5 + $0x10] sm:$0xf] %vm902_vm7, %v553_v53  ;;  %vm903_vm8 = vmmov %vm898_vm3 }
 0x171   :  { %498 = vst.msk [vmem:[%s895_s5 + $0x14] sm:$0xf] %vm903_vm8, %v554_v54  ;;  %vm904_vm9 = vmmov %vm898_vm3 }
 0x172   :  { %499 = vst.msk [vmem:[%s895_s5 + $0x18] sm:$0xf] %vm904_vm9, %v555_v55  ;;  %vm905_vm10 = vmmov %vm898_vm3 }
 0x173   :  { %500 = vst.msk [vmem:[%s895_s5 + $0x1c] sm:$0xf] %vm905_vm10, %v556_v56  ;;  %vm906_vm11 = vmmov %vm898_vm3 }
 0x174   :  { %501 = vst.msk [vmem:[%s895_s5 + $0x20] sm:$0xf] %vm906_vm11, %v557_v22  ;;  %vm907_vm12 = vmmov %vm898_vm3 }
 0x175   :  { %502 = vst.msk [vmem:[%s895_s5 + $0x24] sm:$0xf] %vm907_vm12, %v558_v11  ;;  %vm908_vm13 = vmmov %vm898_vm3 }
 0x176   :  { %503 = vst.msk [vmem:[%s895_s5 + $0x28] sm:$0xf] %vm908_vm13, %v559_v23  ;;  %vm909_vm14 = vmmov %vm898_vm3 }
 0x177   :  { %504 = vst.msk [vmem:[%s895_s5 + $0x2c] sm:$0xf] %vm909_vm14, %v560_v25  ;;  %vm910_vm15 = vmmov %vm898_vm3 }
 0x178   :  { %505 = vst.msk [vmem:[%s895_s5 + $0x30] sm:$0xf] %vm910_vm15, %v561_v26  ;;  %vm911_vm0 = vmmov %vm898_vm3 }
 0x179   :  { %506 = vst.msk [vmem:[%s895_s5 + $0x34] sm:$0xf] %vm911_vm0, %v562_v27  ;;  %vm912_vm1 = vmmov %vm911_vm0 }
 0x17a   :  { %507 = vst.msk [vmem:[%s895_s5 + $0x38] sm:$0xf] %vm912_vm1, %v563_v28  ;;  %vm913_vm2 = vmmov %vm911_vm0 }
 0x17b   :  { %508 = vst.msk [vmem:[%s895_s5 + $0x3c] sm:$0xf] %vm913_vm2, %v564_v29 }

// kernel: forward.9
= control target key start
LH: loop header
LB: loop body
LE: loop exit
PB: predicated region body
PF: predicated region fallthrough
CT: control target
= control target key end

     0   :  { %vm78_vm0 = vcmask 588800   ;;  %vm85_vm1 = vcmask 1043456   ;;  %vm138_vm2 = vcmask 130048   ;;  %v180_v54 = vlaneseq  ;;  %s367_s1 = inlined_call_operand.vmem [shape: bf16[72,16], index: 1, kind: input, shape index: {}]   ;;  %s368_s0 = inlined_call_operand.vmem [shape: bf16[32,72], index: 0, kind: input, shape index: {}]   ;;  %s369_s2 = inlined_call_operand.vmem [shape: f32[1,16], index: 2, kind: input, shape index: {}]   ;;  %s370_s3 = inlined_call_operand.vmem [shape: f32[1,16], index: 3, kind: input, shape index: {}]   ;;  %s371_s4 = inlined_call_operand.vmem [shape: f32[1,16], index: 4, kind: input, shape index: {}]   ;;  %s372_s5 = inlined_call_operand.vmem [shape: bf16[32,16], index: 5, kind: output, shape index: {}]  }
   0x1   :  { %v278_v0 = vld [vmem:[%s367_s1] sm:$0xff]   ;;  %v279_v1 = vld [vmem:[%s367_s1 + $0x8] sm:$0xff]   ;;  %v280_v2 = vld [vmem:[%s367_s1 + $0x10] sm:$0xff]   ;;  %vm228_vm7 = vcmask 125952  }
   0x2   :  { %263 = vmatprep.subr.bf16.mxu0 %v278_v0  ;;  %v283_v3 = vld [vmem:[%s368_s0] sm:$0xff]   ;;  %v281_v4 = vld [vmem:[%s367_s1 + $0x18] sm:$0xff]   ;;  %v284_v7 = vld [vmem:[%s368_s0 + $0x8] sm:$0xff]   ;;  %v181_v55 = vshrl.u32 %v180_v54, 7 }
   0x3   :  { %264 = vmatpush3.bf16.msra.mxu0 %v278_v0  ;;  %273 = vmatprep.mubr.msk.bf16.mxu0 %vm78_vm0, %v283_v3  ;;  %v282_v5 = vld [vmem:[%s367_s1 + $0x20] ss:$0 sps:$4 sm:$0xff]  }
   0x4   :  { %265 = vmatprep.subr.bf16.mxu0 %v279_v1  ;;  %v87_v6 = vsel %vm85_vm1, %v282_v5, 0  ;;  %v237_v8 = vld [vmem:[%s369_s2] ss:$0 sm:$0xff]  ;;  %v182_v57 = vsub.s32 0, %v181_v55 }
   0x5   :  { %v175_v56 = vld [vmem:[%s370_s3] sm:$0x1] }
   0x6   :  { %v247_v61 = vld [vmem:[%s371_s4] ss:$0 sm:$0xff] }
   0x7   :  { %266 = vmatpush3.bf16.msra.mxu0 %v279_v1 }
   0x8   :  { %267 = vmatprep.subr.bf16.mxu0 %v280_v2 }
   0xb   :  { %268 = vmatpush3.bf16.msra.mxu0 %v280_v2 }
   0xc   :  { %269 = vmatprep.subr.bf16.mxu0 %v281_v4 }
   0xf   :  { %270 = vmatpush3.bf16.msra.mxu0 %v281_v4 }
  0x10   :  { %277 = vmatprep.subr.msk.bf16.mxu0 %vm85_vm1, %v282_v5 }
  0x13   :  { %272 = vmatpush3.bf16.msra.mxu0 %v87_v6 }
  0x16   :  { %274 = vmatmul.mubr.msk.bf16.vlgmr.msra.gmra.mrb[0].mxu0 %vm78_vm0, %v284_v7 }
  0xe9   :  { %v275_v9 = vpop.f32.mrb[0].mxu0 }
  0xea   :  { %v123_v10 = vpop.f32.mrb[1].mxu0  ;;  %v132_v14 = vadd.f32 %v275_v9, %v237_v8 }
  0xeb   :  { %v124_v11 = vadd.f32 %v237_v8, %v123_v10  ;;  %v276_v12 = vpop.f32.mrb[2].mxu0 }
  0xec   :  { %v126_v13 = vpop.f32.mrb[3].mxu0  ;;  %v135_v17 = vadd.f32 %v276_v12, %v237_v8  ;;  %v142_v20 = vsel %vm138_vm2, %v132_v14, 0.0 }
  0xed   :  { %v127_v15 = vadd.f32 %v237_v8, %v126_v13  ;;  %v139_v16 = vsel %vm138_vm2, %v124_v11, 0.0 }
  0xee   :  { %v144_v22 = vsel %vm138_vm2, %v135_v17, 0.0 }
  0xef   :  { %v140_v18 = vsel %vm138_vm2, %v127_v15, 0.0 }
  0xf0   :  { %v141_v19 = vadd.f32 %v140_v18, %v139_v16 }
  0xf2   :  { %v143_v21 = vadd.f32 %v142_v20, %v141_v19 }
  0xf4   :  { %v145_v23 = vadd.f32 %v144_v22, %v143_v21 }
  0xf6   :  { %v146_v24 = vrot.slane %v145_v23, 4 }
  0xf8   :  { %v147_v25 = vadd.f32 %v146_v24, %v145_v23 }
  0xfa   :  { %v148_v26 = vrot.slane %v147_v25, 2 }
  0xfc   :  { %v149_v27 = vadd.f32 %v148_v26, %v147_v25 }
  0xfe   :  { %v150_v28 = vrot.slane %v149_v27, 1 }
 0x100   :  { %v151_v29 = vadd.f32 %v150_v28, %v149_v27 }
 0x102   :  { %v152_v30 = vmul.f32 0.03125, %v151_v29 }
 0x104   :  { %v153_v31 = vsub.f32 %v124_v11, %v152_v30  ;;  %v154_v32 = vsub.f32 %v127_v15, %v152_v30  ;;  %v155_v33 = vsub.f32 %v132_v14, %v152_v30  ;;  %v156_v34 = vsub.f32 %v135_v17, %v152_v30 }
 0x106   :  { %v157_v35 = vmul.f32 %v153_v31, %v153_v31  ;;  %v158_v36 = vmul.f32 %v154_v32, %v154_v32  ;;  %v159_v37 = vmul.f32 %v155_v33, %v155_v33  ;;  %v160_v38 = vmul.f32 %v156_v34, %v156_v34 }
 0x108   :  { %v161_v39 = vsel %vm138_vm2, %v157_v35, 0.0  ;;  %v162_v40 = vsel %vm138_vm2, %v158_v36, 0.0  ;;  %v164_v42 = vsel %vm138_vm2, %v159_v37, 0.0  ;;  %v166_v44 = vsel %vm138_vm2, %v160_v38, 0.0 }
 0x109   :  { %v163_v41 = vadd.f32 %v162_v40, %v161_v39 }
 0x10b   :  { %v165_v43 = vadd.f32 %v164_v42, %v163_v41 }
 0x10d   :  { %v167_v45 = vadd.f32 %v166_v44, %v165_v43 }
 0x10f   :  { %v168_v46 = vrot.slane %v167_v45, 4 }
 0x111   :  { %v169_v47 = vadd.f32 %v168_v46, %v167_v45 }
 0x113   :  { %v170_v48 = vrot.slane %v169_v47, 2 }
 0x115   :  { %v171_v49 = vadd.f32 %v170_v48, %v169_v47 }
 0x117   :  { %v172_v50 = vrot.slane %v171_v49, 1 }
 0x119   :  { %v173_v51 = vadd.f32 %v172_v50, %v171_v49 }
 0x11b   :  { %v174_v52 = vmul.f32 0.03125, %v173_v51 }
 0x11d   :  { %v176_v53 = vadd.f32 1e-05, %v174_v52 }
 0x11f   :  { %285 = vrsqrt.f32 %v176_v53 }
 0x129   :  { %v286_v58 = vpop.eup %285 }
 0x12a   :  { %v178_v59 = vmul.f32 %v286_v58, %v175_v56 }
 0x12c   :  { %v183_v60 = vrot.slane %v178_v59, %v182_v57 }
 0x12e   :  { %v185_v62 = vmul.f32 %v183_v60, %v153_v31  ;;  %v186_v63 = vmul.f32 %v183_v60, %v154_v32  ;;  %v187_v0 = vmul.f32 %v183_v60, %v155_v33  ;;  %v188_v1 = vmul.f32 %v183_v60, %v156_v34 }
 0x130   :  { %v196_v2 = vadd.f32 %v247_v61, %v185_v62  ;;  %v197_v3 = vadd.f32 %v247_v61, %v186_v63  ;;  %v198_v4 = vadd.f32 %v247_v61, %v187_v0  ;;  %v199_v5 = vadd.f32 %v247_v61, %v188_v1 }
 0x132   :  { %vm200_vm3 = vcmp.ge.f32.partialorder %v196_v2, 0.0  ;;  %vm201_vm4 = vcmp.ge.f32.partialorder %v197_v3, 0.0  ;;  %vm202_vm5 = vcmp.ge.f32.partialorder %v198_v4, 0.0  ;;  %vm203_vm6 = vcmp.ge.f32.partialorder %v199_v5, 0.0 }
 0x133   :  { %v204_v6 = vmul.f32 0.01, %v196_v2  ;;  %v205_v7 = vmul.f32 0.01, %v197_v3  ;;  %v206_v8 = vmul.f32 0.01, %v198_v4 }
 0x134   :  { %v207_v9 = vmul.f32 0.01, %v199_v5 }
 0x135   :  { %v208_v10 = vsel %vm200_vm3, %v196_v2, %v204_v6  ;;  %v209_v11 = vsel %vm201_vm4, %v197_v3, %v205_v7  ;;  %v210_v12 = vsel %vm202_vm5, %v198_v4, %v206_v8 }
 0x136   :  { %v211_v13 = vsel %vm203_vm6, %v199_v5, %v207_v9  ;;  %v252_v14 = vpack.c.bf16 %v208_v10, %v208_v10  ;;  %v253_v15 = vpack.c.bf16 %v209_v11, %v209_v11  ;;  %v254_v16 = vpack.c.bf16 %v210_v12, %v210_v12 }
 0x137   :  { %v255_v17 = vpack.c.bf16 %v211_v13, %v211_v13 }
 0x138   :  { %229 = vst.msk [vmem:[%s372_s5] sm:$0xf] %vm228_vm7, %v252_v14  ;;  %230 = vst.msk [vmem:[%s372_s5 + $0x4] sm:$0xf] %vm228_vm7, %v253_v15 }
 0x139   :  { %231 = vst.msk [vmem:[%s372_s5 + $0x8] sm:$0xf] %vm228_vm7, %v254_v16  ;;  %232 = vst.msk [vmem:[%s372_s5 + $0xc] sm:$0xf] %vm228_vm7, %v255_v17 }

// kernel: forward.11
= control target key start
LH: loop header
LB: loop body
LE: loop exit
PB: predicated region body
PF: predicated region fallthrough
CT: control target
= control target key end

     0   :  { %13 = vsyncpa [#allocation3], 0  ;;  %v363_v1 = vmov 0.0   ;;  %vm364_vm0 = vmmov 0   ;;  %s476_s0 = inlined_call_operand.vmem [shape: bf16[2,128], index: 0, kind: input, shape index: {}]   ;;  %s477_s1 = inlined_call_operand.vmem [shape: bf16[128,64], index: 1, kind: input, shape index: {}]   ;;  %s478_s2 = inlined_call_operand.vmem [shape: f32[1,64], index: 2, kind: input, shape index: {}]   ;;  %s479_s3 = inlined_call_operand.vmem [shape: bf16[32,128], index: 3, kind: input, shape index: {}]   ;;  %s480_s4 = inlined_call_operand.vmem [shape: f32[1,128], index: 4, kind: input, shape index: {}]   ;;  %s481_s5 = inlined_call_operand.hbm [shape: f32[2,32], index: 5, kind: output, shape index: {0}]   ;;  %s482_s6 = inlined_call_operand.hbm [shape: f32[2,32], index: 6, kind: output, shape index: {1}]   ;;  %s483_s7 = inlined_call_operand.vmem [shape: bf16[2,128], index: 7, kind: output, shape index: {2}]  }
   0x1   :  { %v305_v0 = vld [vmem:[%s477_s1] sm:$0xff]   ;;  %272 = vmatprep.subr.bf16.mxu0 %v363_v1  ;;  %292 = vmatprep.subr.bf16.mxu1 %v363_v1  ;;  %v306_v2 = vld [vmem:[%s477_s1 + $0x8] sm:$0xff]   ;;  %v307_v3 = vld [vmem:[%s477_s1 + $0x10] sm:$0xff]  }
   0x2   :  { %273 = vmatpush3.bf16.msra.mxu0 %v305_v0  ;;  %288 = vmatprep.mubr.msk.bf16.mxu0 %vm364_vm0, %v363_v1  ;;  %v313_v4 = vld [vmem:[%s479_s3] sm:$0xff]   ;;  %v308_v5 = vld [vmem:[%s477_s1 + $0x18] sm:$0xff]  }
   0x3   :  { %274 = vmatprep.subr.bf16.mxu0 %v363_v1  ;;  %296 = vmatprep.mubr.msk.bf16.mxu1 %vm364_vm0, %v363_v1 }
   0x6   :  { %275 = vmatpush3.bf16.msra.mxu0 %v306_v2 }
   0x7   :  { %276 = vmatprep.subr.bf16.mxu0 %v363_v1 }
   0xa   :  { %277 = vmatpush3.bf16.msra.mxu0 %v307_v3 }
   0xb   :  { %14 = vsyncpa [#allocation5], 0  ;;  %278 = vmatprep.subr.bf16.mxu0 %v363_v1  ;;  %293 = vmatpush3.bf16.msra.mxu1 %v313_v4  ;;  %v309_v6 = vld [vmem:[%s477_s1 + $0x20] sm:$0xff]   ;;  %v310_v7 = vld [vmem:[%s477_s1 + $0x28] sm:$0xff]   ;;  %vm138_vm1 = vcmask 254976   ;;  %vm169_vm2 = vcmask 261120  }
   0xc   :  { %294 = vmatprep.subr.bf16.mxu1 %v363_v1  ;;  %v311_v8 = vld [vmem:[%s477_s1 + $0x30] sm:$0xff]   ;;  %v312_v9 = vld [vmem:[%s477_s1 + $0x38] sm:$0xff]   ;;  %v26_v10 = vld [vmem:[%s476_s0] sm:$0x1]  ;;  %s365_s1 = smov 96   ;;  %s366_s0 = smov [#allocation2]  }
   0xd   :  { %v314_v11 = vld [vmem:[%s479_s3 + $0x8] sm:$0xff]   ;;  %v247_v12 = vld [vmem:[%s478_s2] ss:$0 sm:$0xff]  ;;  %s221_s3 = sshll.u32 %s366_s0, 4  ;;  %s222_s3 = int_to_ptr.vmem [resolvable:$true] %s221_s3 }
   0xe   :  { %279 = vmatpush3.bf16.msra.mxu0 %v308_v5  ;;  %s315_s25 = scalar_lea.vmem %s222_s3, 32  ;;  %p320_p1 = scmp.lt.s32.totalorder %s222_s3, %s222_s3 }
   0xf   :  { %280 = vmatprep.subr.bf16.mxu0 %v363_v1  ;;  %295 = vmatpush3.bf16.msra.mxu1 %v314_v11  ;;  %p316_p0 = scmp.ne.s32.totalorder %s222_s3, %s315_s25  ;;  %p321_p2 = scmp.lt.s32.totalorder %s315_s25, %s315_s25 }
  0x11   :  { %p322_p3 = por %p321_p2, %p320_p1 }
  0x12   :  { %281 = vmatpush3.bf16.msra.mxu0 %v309_v6 }
  0x13   :  { %282 = vmatprep.subr.bf16.mxu0 %v363_v1  ;;  %p323_p4 = pnand %p322_p3, %p316_p0 }
  0x16   :  { %283 = vmatpush3.bf16.msra.mxu0 %v310_v7 }
  0x17   :  { %284 = vmatprep.subr.bf16.mxu0 %v363_v1 }
  0x1a   :  { %285 = vmatpush3.bf16.msra.mxu0 %v311_v8 }
  0x1b   :  { %286 = vmatprep.subr.bf16.mxu0 %v363_v1 }
  0x1e   :  { %287 = vmatpush3.bf16.msra.mxu0 %v312_v9 }
  0x21   :  { %289 = vmatmul.mubr.bf16.vlgmr.msra.gmra.mrb[0].mxu0 %v26_v10 }
  0xf4   :  { %v132_v13 = vpop.f32.mrb[0].mxu0 }
  0xf5   :  { %v133_v14 = vadd.f32 %v247_v12, %v132_v13  ;;  %v290_v15 = vpop.f32.mrb[1].mxu0 }
  0xf6   :  { %v135_v16 = vpop.f32.mrb[2].mxu0 }
  0xf7   :  { %v145_v17 = vpack.c.bf16 %v133_v14, %v133_v14  ;;  %v291_v18 = vpop.f32.mrb[3].mxu0  ;;  %141 = vrot.lane.b32.xlu0 %v133_v14, %s365_s1  ;;  %139 = vst.msk [vmem:[#allocation2] sm:$0x3] %vm138_vm1, %v133_v14 }
  0xf9   :  { %297 = vmatmul.mubr.msk.bf16.vlgmr.msra.gmra.mrb[0].mxu1 %vm169_vm2, %v145_v17 }
  0xfa   :  { %326 = shalt.err (!%p323_p4)
}
  0xfb   :  { %s327_s27 = scalar_lea.hbm %s481_s5, 32 }
  0xfc   :  { %p328_p5 = scmp.ne.s32.totalorder %s481_s5, %s327_s27  ;;  %p331_p6 = scmp.lt.u32.totalorder %s327_s27, %s481_s5 }
  0xfe   :  { %p333_p7 = pnand %p331_p6, %p328_p5 }
 0x100   :  { %336 = shalt.err (!%p333_p7)
}
 0x101   :  { %224 = dma.vmem_to_hbm [thread:$0]  %s222_s3, 32, %s481_s5, [#allocation3]  }
 0x102   :  { %s367_s11 = smov [#allocation4]  }
 0x103   :  { %s231_s12 = sshll.u32 %s367_s11, 4  ;;  %s232_s12 = int_to_ptr.vmem [resolvable:$true] %s231_s12 }
 0x104   :  { %s337_s13 = scalar_lea.vmem %s232_s12, 32  ;;  %p342_p9 = scmp.lt.s32.totalorder %s232_s12, %s232_s12 }
 0x105   :  { %p338_p8 = scmp.ne.s32.totalorder %s232_s12, %s337_s13  ;;  %p343_p10 = scmp.lt.s32.totalorder %s337_s13, %s337_s13 }
 0x107   :  { %p344_p11 = por %p343_p10, %p342_p9 }
 0x109   :  { %p345_p12 = pnand %p344_p11, %p338_p8 }
 0x169   :  { %v142_v19 = vpop.permute.xlu0 %141 }
 0x16a   :  { %144 = vst.msk [vmem:[#allocation4] sm:$0x3] %vm138_vm1, %v142_v19 }
 0x16b   :  { %348 = shalt.err (!%p345_p12)
}
 0x16c   :  { %s349_s16 = scalar_lea.hbm %s482_s6, 32 }
 0x16d   :  { %p350_p13 = scmp.ne.s32.totalorder %s482_s6, %s349_s16  ;;  %p353_p0 = scmp.lt.u32.totalorder %s349_s16, %s482_s6 }
 0x16f   :  { %p355_p1 = pnand %p353_p0, %p350_p13 }
 0x171   :  { %358 = shalt.err (!%p355_p1)
}
 0x172   :  { %234 = dma.vmem_to_hbm [thread:$0]  %s232_s12, 32, %s482_s6, [#allocation5]   ;;  %v256_v20 = vld [vmem:[%s480_s4] ss:$0 sm:$0xff] }
 0x1cc   :  { %v207_v21 = vpop.f32.mrb[0].mxu1 }
 0x1cd   :  { %v208_v22 = vadd.f32 %v256_v20, %v207_v21  ;;  %v298_v23 = vpop.f32.mrb[1].mxu1 }
 0x1ce   :  { %v210_v24 = vpop.f32.mrb[2].mxu1 }
 0x1cf   :  { %v213_v25 = vpack.c.bf16 %v208_v22, %v208_v22  ;;  %v299_v26 = vpop.f32.mrb[3].mxu1 }
 0x1d1   :  { %214 = vst [vmem:[%s483_s7] sm:$0x1] %v213_v25 }
 0x1d2   :  { %359 = dma.done.wait [#allocation3], 32  }
 0x1d3   :  { %360 = vsyncadd [#allocation3], 4294967264 }
 0x1d4   :  { %361 = dma.done.wait [#allocation5], 32  }
 0x1d5   :  { %362 = vsyncadd [#allocation5], 4294967264 }
 0x1d6   :  { %245 = vsyncpa [#allocation3], 1 }
 0x1d7   :  { %246 = vsyncpa [#allocation5], 1 }

// kernel: forward.10
= control target key start
LH: loop header
LB: loop body
LE: loop exit
PB: predicated region body
PF: predicated region fallthrough
CT: control target
= control target key end

     0   :  { %v227_v0 = vmov 0   ;;  %vm107_vm0 = vcmask 130048   ;;  %vm151_vm1 = vcmask 261120   ;;  %v175_v38 = vlaneseq  ;;  %s300_s1 = inlined_call_operand.vmem [shape: bf16[144,32], index: 1, kind: input, shape index: {}]   ;;  %s301_s0 = inlined_call_operand.vmem [shape: bf16[8,144], index: 0, kind: input, shape index: {}]   ;;  %s302_s2 = inlined_call_operand.vmem [shape: f32[1,32], index: 2, kind: input, shape index: {}]   ;;  %s303_s3 = inlined_call_operand.vmem [shape: f32[1,32], index: 3, kind: input, shape index: {}]   ;;  %s304_s4 = inlined_call_operand.vmem [shape: f32[1,32], index: 4, kind: input, shape index: {}]   ;;  %s305_s5 = inlined_call_operand.vmem [shape: bf16[8,32], index: 5, kind: output, shape index: {}]  }
   0x1   :  { %111 = vmatprep.subr.bf16.mxu0 %v227_v0  ;;  %v214_v1 = vld [vmem:[%s300_s1] sm:$0xff]   ;;  %v215_v2 = vld [vmem:[%s300_s1 + $0x8] sm:$0xff]   ;;  %v216_v3 = vld [vmem:[%s300_s1 + $0x10] sm:$0xff]   ;;  %vm193_vm3 = vcmask 257024  }
   0x2   :  { %112 = vmatpush1.bf16.msra.mxu0 %v214_v1  ;;  %v21_v4 = vld [vmem:[%s301_s0] sm:$0xff]  ;;  %v217_v5 = vld [vmem:[%s300_s1 + $0x18] sm:$0xff]   ;;  %v219_v8 = vld [vmem:[%s300_s1 + $0x28] sm:$0xff]   ;;  %v176_v39 = vshrl.u32 %v175_v38, 7 }
   0x3   :  { %113 = vmatprep.subr.bf16.mxu0 %v227_v0  ;;  %v201_v6 = vcombine.high %v21_v4, %v21_v4  ;;  %v218_v7 = vld [vmem:[%s300_s1 + $0x20] sm:$0xff]   ;;  %v220_v9 = vld [vmem:[%s300_s1 + $0x30] sm:$0xff]   ;;  %v221_v10 = vld [vmem:[%s300_s1 + $0x38] sm:$0xff]   ;;  %v200_v12 = vcombine.low %v21_v4, %v21_v4 }
   0x4   :  { %v222_v11 = vld [vmem:[%s300_s1 + $0x40] sm:$0xff]   ;;  %v177_v41 = vsub.s32 0, %v176_v39 }
   0x5   :  { %211 = vmatprep.mubr.msk.bf16.mxu0 %vm107_vm0, %v201_v6  ;;  %v199_v13 = vld [vmem:[%s302_s2] ss:$0 sm:$0xff] }
   0x6   :  { %114 = vmatpush1.bf16.msra.mxu0 %v215_v2  ;;  %v170_v40 = vld [vmem:[%s303_s3] sm:$0x1] }
   0x7   :  { %115 = vmatprep.subr.bf16.mxu0 %v227_v0  ;;  %v212_v45 = vld [vmem:[%s304_s4] ss:$0 sm:$0xff] }
   0xa   :  { %116 = vmatpush1.bf16.msra.mxu0 %v216_v3 }
   0xb   :  { %117 = vmatprep.subr.bf16.mxu0 %v227_v0 }
   0xe   :  { %118 = vmatpush1.bf16.msra.mxu0 %v217_v5 }
   0xf   :  { %119 = vmatprep.subr.bf16.mxu0 %v227_v0 }
  0x12   :  { %120 = vmatpush1.bf16.msra.mxu0 %v218_v7 }
  0x13   :  { %121 = vmatprep.subr.bf16.mxu0 %v227_v0 }
  0x16   :  { %122 = vmatpush1.bf16.msra.mxu0 %v219_v8 }
  0x17   :  { %123 = vmatprep.subr.bf16.mxu0 %v227_v0 }
  0x1a   :  { %124 = vmatpush1.bf16.msra.mxu0 %v220_v9 }
  0x1b   :  { %125 = vmatprep.subr.bf16.mxu0 %v227_v0 }
  0x1e   :  { %126 = vmatpush1.bf16.msra.mxu0 %v221_v10 }
  0x1f   :  { %127 = vmatprep.subr.bf16.mxu0 %v227_v0 }
  0x22   :  { %128 = vmatpush1.bf16.msra.mxu0 %v222_v11 }
  0x25   :  { %144 = vmatmul.mubr.bf16.vlgmr.msra.gmra.mrb[0].mxu0 %v200_v12 }
  0xf8   :  { %v145_v14 = vpop.f32.mrb[0].mxu0 }
  0xf9   :  { %v146_v15 = vadd.f32 %v199_v13, %v145_v14  ;;  %v147_v16 = vpop.f32.mrb[1].mxu0 }
  0xfa   :  { %v148_v17 = vpop.f32.mrb[2].mxu0 }
  0xfb   :  { %v152_v18 = vsel %vm151_vm1, %v146_v15, 0.0  ;;  %v149_v19 = vpop.f32.mrb[3].mxu0 }
  0xfc   :  { %v153_v20 = vrot.slane %v152_v18, 4 }
  0xfe   :  { %v154_v21 = vadd.f32 %v153_v20, %v152_v18 }
 0x100   :  { %v155_v22 = vrot.slane %v154_v21, 2 }
 0x102   :  { %v156_v23 = vadd.f32 %v155_v22, %v154_v21 }
 0x104   :  { %v157_v24 = vrot.slane %v156_v23, 1 }
 0x106   :  { %v158_v25 = vadd.f32 %v157_v24, %v156_v23 }
 0x108   :  { %v159_v26 = vmul.f32 0.125, %v158_v25 }
 0x10a   :  { %v160_v27 = vsub.f32 %v146_v15, %v159_v26 }
 0x10c   :  { %v161_v28 = vmul.f32 %v160_v27, %v160_v27 }
 0x10e   :  { %v162_v29 = vsel %vm151_vm1, %v161_v28, 0.0 }
 0x10f   :  { %v163_v30 = vrot.slane %v162_v29, 4 }
 0x111   :  { %v164_v31 = vadd.f32 %v163_v30, %v162_v29 }
 0x113   :  { %v165_v32 = vrot.slane %v164_v31, 2 }
 0x115   :  { %v166_v33 = vadd.f32 %v165_v32, %v164_v31 }
 0x117   :  { %v167_v34 = vrot.slane %v166_v33, 1 }
 0x119   :  { %v168_v35 = vadd.f32 %v167_v34, %v166_v33 }
 0x11b   :  { %v169_v36 = vmul.f32 0.125, %v168_v35 }
 0x11d   :  { %v171_v37 = vadd.f32 1e-05, %v169_v36 }
 0x11f   :  { %225 = vrsqrt.f32 %v171_v37 }
 0x129   :  { %v226_v42 = vpop.eup %225 }
 0x12a   :  { %v173_v43 = vmul.f32 %v226_v42, %v170_v40 }
 0x12c   :  { %v178_v44 = vrot.slane %v173_v43, %v177_v41 }
 0x12e   :  { %v180_v46 = vmul.f32 %v178_v44, %v160_v27 }
 0x130   :  { %v188_v47 = vadd.f32 %v212_v45, %v180_v46 }
 0x132   :  { %vm189_vm2 = vcmp.ge.f32.partialorder %v188_v47, 0.0  ;;  %v190_v48 = vmul.f32 0.01, %v188_v47 }
 0x134   :  { %v191_v49 = vsel %vm189_vm2, %v188_v47, %v190_v48 }
 0x135   :  { %v192_v50 = vpack.c.bf16 %v191_v49, %v191_v49 }
 0x137   :  { %194 = vst.msk [vmem:[%s305_s5] sm:$0xf] %vm193_vm3, %v192_v50 }

// kernel: forward.12
= control target key start
LH: loop header
LB: loop body
LE: loop exit
PB: predicated region body
PF: predicated region fallthrough
CT: control target
= control target key end

     0   :  { %v315_v0 = vmov 0.0   ;;  %vm316_vm0 = vmmov 0   ;;  %vm133_vm1 = vcmask 523264   ;;  %s320_s13 = smov 32   ;;  %s321_s14 = smov 16   ;;  %v171_v30 = vlaneseq  ;;  %s423_s1 = inlined_call_operand.vmem [shape: bf16[128,64], index: 1, kind: input, shape index: {}]   ;;  %s424_s0 = inlined_call_operand.vmem [shape: bf16[8,128], index: 0, kind: input, shape index: {}]   ;;  %s425_s2 = inlined_call_operand.vmem [shape: f32[1,64], index: 2, kind: input, shape index: {}]   ;;  %s426_s3 = inlined_call_operand.vmem [shape: f32[1,16], index: 3, kind: input, shape index: {}]   ;;  %s427_s4 = inlined_call_operand.vmem [shape: f32[1,16], index: 4, kind: input, shape index: {}]   ;;  %s428_s5 = inlined_call_operand.vmem [shape: bf16[8,64], index: 5, kind: output, shape index: {}]  }
   0x1   :  { %277 = vmatprep.subr.bf16.mxu0 %v315_v0  ;;  %v305_v1 = vld [vmem:[%s423_s1] sm:$0xff]   ;;  %293 = vmatprep.mubr.msk.bf16.mxu0 %vm316_vm0, %v315_v0  ;;  %v306_v2 = vld [vmem:[%s423_s1 + $0x8] sm:$0xff]   ;;  %v307_v3 = vld [vmem:[%s423_s1 + $0x10] sm:$0xff]   ;;  %s322_s15 = smov 48   ;;  %vm165_vm2 = vcmask 130048   ;;  %vm167_vm3 = vcmask 261120  }
   0x2   :  { %278 = vmatpush3.bf16.msra.mxu0 %v305_v1  ;;  %v308_v4 = vld [vmem:[%s423_s1 + $0x18] sm:$0xff]   ;;  %v309_v5 = vld [vmem:[%s423_s1 + $0x20] sm:$0xff]   ;;  %v310_v6 = vld [vmem:[%s423_s1 + $0x28] sm:$0xff]   ;;  %v172_v31 = vshrl.u32 %v171_v30, 7  ;;  %vm169_vm4 = vcmask 392192   ;;  %vm253_vm6 = vcmask 519168  }
   0x3   :  { %279 = vmatprep.subr.bf16.mxu0 %v315_v0  ;;  %v311_v7 = vld [vmem:[%s423_s1 + $0x30] sm:$0xff]   ;;  %v312_v8 = vld [vmem:[%s423_s1 + $0x38] sm:$0xff]   ;;  %v21_v9 = vld [vmem:[%s424_s0] sm:$0xf]  ;;  %s317_s0 = smov 80   ;;  %s318_s1 = smov 112  }
   0x4   :  { %v259_v10 = vld [vmem:[%s425_s2] ss:$0 sm:$0xff]  ;;  %s319_s2 = smov 96   ;;  %v173_v35 = vsub.s32 0, %v172_v31 }
   0x5   :  { %v198_v57 = vld [vmem:[%s426_s3] sm:$0x1] }
   0x6   :  { %280 = vmatpush3.bf16.msra.mxu0 %v306_v2  ;;  %v202_v60 = vld [vmem:[%s427_s4] sm:$0x1] }
   0x7   :  { %281 = vmatprep.subr.bf16.mxu0 %v315_v0 }
   0xa   :  { %282 = vmatpush3.bf16.msra.mxu0 %v307_v3 }
   0xb   :  { %283 = vmatprep.subr.bf16.mxu0 %v315_v0 }
   0xe   :  { %284 = vmatpush3.bf16.msra.mxu0 %v308_v4 }
   0xf   :  { %285 = vmatprep.subr.bf16.mxu0 %v315_v0 }
  0x12   :  { %286 = vmatpush3.bf16.msra.mxu0 %v309_v5 }
  0x13   :  { %287 = vmatprep.subr.bf16.mxu0 %v315_v0 }
  0x16   :  { %288 = vmatpush3.bf16.msra.mxu0 %v310_v6 }
  0x17   :  { %289 = vmatprep.subr.bf16.mxu0 %v315_v0 }
  0x1a   :  { %290 = vmatpush3.bf16.msra.mxu0 %v311_v7 }
  0x1b   :  { %291 = vmatprep.subr.bf16.mxu0 %v315_v0 }
  0x1e   :  { %292 = vmatpush3.bf16.msra.mxu0 %v312_v8 }
  0x21   :  { %294 = vmatmul.mubr.bf16.vlgmr.msra.gmra.mrb[0].mxu0 %v21_v9 }
  0xf4   :  { %v127_v11 = vpop.f32.mrb[0].mxu0 }
  0xf5   :  { %v383_v12 = vadd.f32 %v259_v10, %v127_v11  ;;  %v295_v13 = vpop.f32.mrb[1].mxu0 }
  0xf6   :  { %v130_v14 = vpop.f32.mrb[2].mxu0 }
  0xf7   :  { %v134_v15 = vsel %vm133_vm1, %v383_v12, 0.0  ;;  %v296_v16 = vpop.f32.mrb[3].mxu0 }
  0xf8   :  { %v135_v17 = vrot.slane %v134_v15, 4 }
  0xfa   :  { %v136_v18 = vadd.f32 %v135_v17, %v134_v15 }
  0xfc   :  { %v137_v19 = vrot.slane %v136_v18, 2 }
  0xfe   :  { %v138_v20 = vadd.f32 %v137_v19, %v136_v18 }
 0x100   :  { %v139_v21 = vrot.slane %v138_v20, 1 }
 0x102   :  { %v140_v22 = vadd.f32 %v139_v21, %v138_v20 }
 0x104   :  { %150 = vrot.lane.b32.xlu1 %v140_v22, %s317_s0  ;;  %142 = vrot.lane.b32.xlu0 %v140_v22, %s318_s1 }
 0x108   :  { %146 = vrot.lane.b32.xlu0 %v140_v22, %s319_s2 }
 0x176   :  { %v143_v23 = vpop.permute.xlu0 %142  ;;  %v151_v27 = vpop.permute.xlu1 %150 }
 0x177   :  { %v145_v24 = vadd.f32 %v143_v23, %v140_v22 }
 0x17a   :  { %v147_v25 = vpop.permute.xlu0 %146 }
 0x17b   :  { %v149_v26 = vadd.f32 %v147_v25, %v145_v24 }
 0x17d   :  { %v153_v28 = vadd.f32 %v151_v27, %v149_v26 }
 0x17f   :  { %v154_v29 = vmul.f32 0.03125, %v153_v28 }
 0x181   :  { %159 = vrot.lane.b32.xlu0 %v154_v29, %s320_s13  ;;  %156 = vrot.lane.b32.xlu1 %v154_v29, %s321_s14 }
 0x185   :  { %162 = vrot.lane.b32.xlu1 %v154_v29, %s322_s15 }
 0x1f3   :  { %v157_v32 = vpop.permute.xlu1 %156  ;;  %v160_v33 = vpop.permute.xlu0 %159 }
 0x1f4   :  { %v166_v34 = vsel %vm165_vm2, %v154_v29, %v157_v32 }
 0x1f5   :  { %v168_v36 = vsel %vm167_vm3, %v166_v34, %v160_v33 }
 0x1f7   :  { %v163_v37 = vpop.permute.xlu1 %162 }
 0x1f8   :  { %v170_v38 = vsel %vm169_vm4, %v168_v36, %v163_v37 }
 0x1f9   :  { %v174_v39 = vrot.slane %v170_v38, %v173_v35 }
 0x1fb   :  { %v175_v40 = vsub.f32 %v383_v12, %v174_v39 }
 0x1fd   :  { %v176_v41 = vmul.f32 %v175_v40, %v175_v40 }
 0x1ff   :  { %v177_v42 = vsel %vm133_vm1, %v176_v41, 0.0 }
 0x200   :  { %v178_v43 = vrot.slane %v177_v42, 4 }
 0x202   :  { %v179_v44 = vadd.f32 %v178_v43, %v177_v42 }
 0x204   :  { %v180_v45 = vrot.slane %v179_v44, 2 }
 0x206   :  { %v181_v46 = vadd.f32 %v180_v45, %v179_v44 }
 0x208   :  { %v182_v47 = vrot.slane %v181_v46, 1 }
 0x20a   :  { %v183_v48 = vadd.f32 %v182_v47, %v181_v46 }
 0x20c   :  { %189 = vrot.lane.b32.xlu1 %v183_v48, %s319_s2  ;;  %185 = vrot.lane.b32.xlu0 %v183_v48, %s318_s1 }
 0x210   :  { %193 = vrot.lane.b32.xlu0 %v183_v48, %s317_s0 }
 0x27e   :  { %v186_v49 = vpop.permute.xlu0 %185  ;;  %v190_v51 = vpop.permute.xlu1 %189 }
 0x27f   :  { %v188_v50 = vadd.f32 %v186_v49, %v183_v48 }
 0x281   :  { %v192_v52 = vadd.f32 %v190_v51, %v188_v50 }
 0x282   :  { %v194_v53 = vpop.permute.xlu0 %193 }
 0x283   :  { %v196_v54 = vadd.f32 %v194_v53, %v192_v52 }
 0x285   :  { %v197_v55 = vmul.f32 0.03125, %v196_v54 }
 0x287   :  { %v199_v56 = vadd.f32 1e-05, %v197_v55 }
 0x289   :  { %313 = vrsqrt.f32 %v199_v56 }
 0x293   :  { %v314_v58 = vpop.eup %313 }
 0x294   :  { %v201_v59 = vmul.f32 %v314_v58, %v198_v57 }
 0x296   :  { %v209_v61 = vrot.slane %v201_v59, %v173_v35  ;;  %v203_v62 = vmul.f32 %v201_v59, %v154_v29 }
 0x298   :  { %213 = vrot.lane.b32.xlu0 %v209_v61, %s320_s13  ;;  %210 = vrot.lane.b32.xlu1 %v209_v61, %s321_s14  ;;  %v204_v63 = vsub.f32 %v202_v60, %v203_v62 }
 0x29a   :  { %v226_v0 = vrot.slane %v204_v63, %v173_v35 }
 0x29c   :  { %216 = vrot.lane.b32.xlu1 %v209_v61, %s322_s15  ;;  %227 = vrot.lane.b32.xlu0 %v226_v0, %s321_s14 }
 0x2a0   :  { %230 = vrot.lane.b32.xlu1 %v226_v0, %s320_s13  ;;  %233 = vrot.lane.b32.xlu0 %v226_v0, %s322_s15 }
 0x30a   :  { %v214_v1 = vpop.permute.xlu0 %213  ;;  %v211_v2 = vpop.permute.xlu1 %210 }
 0x30b   :  { %v219_v3 = vsel %vm165_vm2, %v201_v59, %v211_v2 }
 0x30c   :  { %v220_v4 = vsel %vm167_vm3, %v219_v3, %v214_v1 }
 0x30e   :  { %v217_v5 = vpop.permute.xlu1 %216  ;;  %v228_v6 = vpop.permute.xlu0 %227 }
 0x30f   :  { %v221_v7 = vsel %vm169_vm4, %v220_v4, %v217_v5  ;;  %v236_v9 = vsel %vm165_vm2, %v204_v63, %v228_v6 }
 0x310   :  { %v242_v8 = vrot.slane %v221_v7, %v173_v35 }
 0x312   :  { %v231_v10 = vpop.permute.xlu1 %230  ;;  %v234_v11 = vpop.permute.xlu0 %233  ;;  %v243_v15 = vmul.f32 %v242_v8, %v383_v12 }
 0x313   :  { %v237_v13 = vsel %vm167_vm3, %v236_v9, %v231_v10 }
 0x314   :  { %v238_v14 = vsel %vm169_vm4, %v237_v13, %v234_v11 }
 0x315   :  { %v247_v16 = vrot.slane %v238_v14, %v173_v35 }
 0x317   :  { %v248_v17 = vadd.f32 %v247_v16, %v243_v15 }
 0x319   :  { %vm249_vm5 = vcmp.ge.f32.partialorder %v248_v17, 0.0  ;;  %v250_v18 = vmul.f32 0.01, %v248_v17 }
 0x31b   :  { %v251_v19 = vsel %vm249_vm5, %v248_v17, %v250_v18 }
 0x31c   :  { %v252_v20 = vpack.c.bf16 %v251_v19, %v251_v19 }
 0x31e   :  { %254 = vst.msk [vmem:[%s428_s5] sm:$0xf] %vm253_vm6, %v252_v20 }

// kernel: forward.14
= control target key start
LH: loop header
LB: loop body
LE: loop exit
PB: predicated region body
PF: predicated region fallthrough
CT: control target
= control target key end

     0   :  { %vm100_vm0 = vcmask 261120   ;;  %s695_s14 = smov 112   ;;  %s696_s15 = smov 16   ;;  %vm283_vm1 = vcmask 64512   ;;  %vm285_vm2 = vcmask 130048   ;;  %vm287_vm3 = vcmask 195584   ;;  %s1006_s1 = inlined_call_operand.vmem [shape: bf16[32,32], index: 1, kind: input, shape index: {}]   ;;  %s1007_s0 = inlined_call_operand.vmem [shape: bf16[128,32], index: 0, kind: input, shape index: {}]   ;;  %s1008_s2 = inlined_call_operand.vmem [shape: f32[1,32], index: 2, kind: input, shape index: {}]   ;;  %s1009_s3 = inlined_call_operand.vmem [shape: f32[1,8], index: 3, kind: input, shape index: {}]   ;;  %s1010_s4 = inlined_call_operand.vmem [shape: f32[1,8], index: 4, kind: input, shape index: {}]   ;;  %s1011_s5 = inlined_call_operand.vmem [shape: bf16[128,32], index: 5, kind: output, shape index: {}]  }
   0x1   :  { %v681_v0 = vld [vmem:[%s1006_s1] sm:$0xff]   ;;  %v682_v1 = vld [vmem:[%s1006_s1 + $0x8] sm:$0xff]   ;;  %v685_v4 = vld [vmem:[%s1007_s0 + $0x10] sm:$0xff]   ;;  %s697_s16 = smov 8   ;;  %s698_s17 = smov 24  }
   0x2   :  { %651 = vmatprep.subr.bf16.mxu0 %v681_v0  ;;  %v683_v2 = vld [vmem:[%s1007_s0] sm:$0xff]   ;;  %671 = vmatprep.subr.bf16.mxu1 %v681_v0  ;;  %v684_v3 = vld [vmem:[%s1007_s0 + $0x8] sm:$0xff]   ;;  %v689_v7 = vld [vmem:[%s1007_s0 + $0x30] sm:$0xff]  }
   0x3   :  { %652 = vmatpush3.bf16.msra.mxu0 %v681_v0  ;;  %673 = vmatpush3.bf16.msra.mxu1 %v681_v0  ;;  %v687_v5 = vld [vmem:[%s1007_s0 + $0x20] sm:$0xff]   ;;  %v688_v6 = vld [vmem:[%s1007_s0 + $0x28] sm:$0xff]   ;;  %v686_v8 = vld [vmem:[%s1007_s0 + $0x18] sm:$0xff]  }
   0x4   :  { %653 = vmatprep.subr.bf16.mxu0 %v682_v1  ;;  %655 = vmatprep.mubr.msk.bf16.mxu0 %vm100_vm0, %v683_v2  ;;  %v690_v9 = vld [vmem:[%s1007_s0 + $0x38] sm:$0xff]   ;;  %v590_v10 = vld [vmem:[%s1008_s2] ss:$0 sm:$0xff]  ;;  %s693_s0 = smov 104   ;;  %s694_s2 = smov 120  }
   0x5   :  { %672 = vmatprep.subr.bf16.mxu1 %v682_v1  ;;  %663 = vmatprep.mubr.msk.bf16.mxu1 %vm100_vm0, %v687_v5 }
   0x7   :  { %654 = vmatpush3.bf16.msra.mxu0 %v682_v1  ;;  %674 = vmatpush3.bf16.msra.mxu1 %v682_v1 }
   0xa   :  { %656 = vmatmul.mubr.msk.bf16.vlgmr.msra.gmra.mrb[0].mxu0 %vm100_vm0, %v684_v3  ;;  %664 = vmatmul.mubr.msk.bf16.vlgmr.msra.gmra.mrb[0].mxu1 %vm100_vm0, %v688_v6 }
   0xb   :  { %659 = vmatprep.mubr.msk.bf16.mxu0 %vm100_vm0, %v685_v4  ;;  %667 = vmatprep.mubr.msk.bf16.mxu1 %vm100_vm0, %v689_v7 }
  0x12   :  { %660 = vmatmul.mubr.msk.bf16.gmra.mrb[4].mxu0 %vm100_vm0, %v686_v8  ;;  %668 = vmatmul.mubr.msk.bf16.gmra.mrb[4].mxu1 %vm100_vm0, %v690_v9 }
  0xdd   :  { %v657_v11 = vpop.f32.mrb[0].mxu0  ;;  %v665_v12 = vpop.f32.mrb[0].mxu1 }
  0xde   :  { %v159_v13 = vpop.f32.mrb[1].mxu0  ;;  %v191_v14 = vpop.f32.mrb[1].mxu1  ;;  %v772_v20 = vadd.f32 %v657_v11, %v590_v10  ;;  %v808_v53 = vadd.f32 %v665_v12, %v590_v10 }
  0xdf   :  { %v770_v15 = vadd.f32 %v590_v10, %v159_v13  ;;  %v658_v16 = vpop.f32.mrb[2].mxu0  ;;  %v666_v17 = vpop.f32.mrb[2].mxu1  ;;  %v798_v45 = vadd.f32 %v590_v10, %v191_v14 }
  0xe0   :  { %v162_v18 = vpop.f32.mrb[3].mxu0  ;;  %v194_v19 = vpop.f32.mrb[3].mxu1  ;;  %v778_v23 = vadd.f32 %v658_v16, %v590_v10  ;;  %v225_v26 = vsel %vm100_vm0, %v772_v20, 0.0  ;;  %v810_v55 = vadd.f32 %v666_v17, %v590_v10  ;;  %v241_v59 = vsel %vm100_vm0, %v808_v53, 0.0 }
  0xe1   :  { %v774_v21 = vadd.f32 %v590_v10, %v162_v18  ;;  %v222_v22 = vsel %vm100_vm0, %v770_v15, 0.0  ;;  %v237_v50 = vsel %vm100_vm0, %v798_v45, 0.0  ;;  %v806_v51 = vadd.f32 %v590_v10, %v194_v19 }
  0xe2   :  { %v227_v32 = vsel %vm100_vm0, %v778_v23, 0.0  ;;  %v243_v61 = vsel %vm100_vm0, %v810_v55, 0.0 }
  0xe3   :  { %v223_v24 = vsel %vm100_vm0, %v774_v21, 0.0  ;;  %v239_v56 = vsel %vm100_vm0, %v806_v51, 0.0 }
  0xe4   :  { %v224_v25 = vadd.f32 %v223_v24, %v222_v22 }
  0xe5   :  { %v661_v27 = vpop.f32.mrb[4].mxu0  ;;  %v669_v28 = vpop.f32.mrb[4].mxu1 }
  0xe6   :  { %v226_v29 = vadd.f32 %v225_v26, %v224_v25  ;;  %v175_v30 = vpop.f32.mrb[5].mxu0  ;;  %v207_v31 = vpop.f32.mrb[5].mxu1  ;;  %v788_v39 = vadd.f32 %v661_v27, %v590_v10  ;;  %v824_v1 = vadd.f32 %v669_v28, %v590_v10  ;;  %v289_v27 = vlaneseq }
  0xe7   :  { %v786_v33 = vadd.f32 %v590_v10, %v175_v30  ;;  %v662_v34 = vpop.f32.mrb[6].mxu0  ;;  %v670_v35 = vpop.f32.mrb[6].mxu1  ;;  %v814_v57 = vadd.f32 %v590_v10, %v207_v31 }
  0xe8   :  { %v228_v36 = vadd.f32 %v227_v32, %v226_v29  ;;  %v178_v37 = vpop.f32.mrb[7].mxu0  ;;  %v210_v38 = vpop.f32.mrb[7].mxu1  ;;  %v794_v43 = vadd.f32 %v662_v34, %v590_v10  ;;  %v233_v47 = vsel %vm100_vm0, %v788_v39, 0.0  ;;  %v826_v3 = vadd.f32 %v670_v35, %v590_v10 }
  0xe9   :  { %v229_v40 = vsel %vm100_vm0, %v786_v33, 0.0  ;;  %v792_v41 = vadd.f32 %v590_v10, %v178_v37  ;;  %v245_v62 = vsel %vm100_vm0, %v814_v57, 0.0  ;;  %v822_v63 = vadd.f32 %v590_v10, %v210_v38 }
  0xea   :  { %v230_v42 = vadd.f32 %v229_v40, %v228_v36  ;;  %v235_v49 = vsel %vm100_vm0, %v794_v43, 0.0  ;;  %v249_v6 = vsel %vm100_vm0, %v824_v1, 0.0  ;;  %v251_v8 = vsel %vm100_vm0, %v826_v3, 0.0 }
  0xeb   :  { %v231_v44 = vsel %vm100_vm0, %v792_v41, 0.0  ;;  %v247_v4 = vsel %vm100_vm0, %v822_v63, 0.0  ;;  %v290_v28 = vshrl.u32 %v289_v27, 7 }
  0xec   :  { %v232_v46 = vadd.f32 %v231_v44, %v230_v42 }
  0xed   :  { %v847_v32 = vsub.s32 0, %v290_v28 }
  0xee   :  { %v234_v48 = vadd.f32 %v233_v47, %v232_v46 }
  0xf0   :  { %v236_v52 = vadd.f32 %v235_v49, %v234_v48 }
  0xf2   :  { %v238_v54 = vadd.f32 %v237_v50, %v236_v52 }
  0xf4   :  { %v240_v58 = vadd.f32 %v239_v56, %v238_v54 }
  0xf6   :  { %v242_v60 = vadd.f32 %v241_v59, %v240_v58 }
  0xf8   :  { %v244_v0 = vadd.f32 %v243_v61, %v242_v60 }
  0xfa   :  { %v246_v2 = vadd.f32 %v245_v62, %v244_v0 }
  0xfc   :  { %v248_v5 = vadd.f32 %v247_v4, %v246_v2 }
  0xfe   :  { %v250_v7 = vadd.f32 %v249_v6, %v248_v5 }
 0x100   :  { %v252_v9 = vadd.f32 %v251_v8, %v250_v7 }
 0x102   :  { %v253_v11 = vrot.slane %v252_v9, 4 }
 0x104   :  { %v254_v12 = vadd.f32 %v253_v11, %v252_v9 }
 0x106   :  { %v255_v13 = vrot.slane %v254_v12, 2 }
 0x108   :  { %v256_v14 = vadd.f32 %v255_v13, %v254_v12 }
 0x10a   :  { %v257_v16 = vrot.slane %v256_v14, 1 }
 0x10c   :  { %v258_v17 = vadd.f32 %v257_v16, %v256_v14 }
 0x10e   :  { %268 = vrot.lane.b32.xlu1 %v258_v17, %s693_s0  ;;  %260 = vrot.lane.b32.xlu0 %v258_v17, %s694_s2 }
 0x112   :  { %264 = vrot.lane.b32.xlu0 %v258_v17, %s695_s14 }
 0x180   :  { %v261_v10 = vpop.permute.xlu0 %260  ;;  %v269_v24 = vpop.permute.xlu1 %268 }
 0x181   :  { %v263_v18 = vadd.f32 %v261_v10, %v258_v17 }
 0x184   :  { %v265_v19 = vpop.permute.xlu0 %264 }
 0x185   :  { %v267_v22 = vadd.f32 %v265_v19, %v263_v18 }
 0x187   :  { %v271_v25 = vadd.f32 %v269_v24, %v267_v22 }
 0x189   :  { %v837_v26 = vmul.f32 0.001953125, %v271_v25 }
 0x18b   :  { %277 = vrot.lane.b32.xlu0 %v837_v26, %s696_s15  ;;  %274 = vrot.lane.b32.xlu1 %v837_v26, %s697_s16 }
 0x18f   :  { %280 = vrot.lane.b32.xlu1 %v837_v26, %s698_s17 }
 0x1fd   :  { %v275_v29 = vpop.permute.xlu1 %274  ;;  %v278_v30 = vpop.permute.xlu0 %277 }
 0x1fe   :  { %v284_v31 = vsel %vm283_vm1, %v837_v26, %v275_v29 }
 0x1ff   :  { %v286_v34 = vsel %vm285_vm2, %v284_v31, %v278_v30 }
 0x201   :  { %v281_v35 = vpop.permute.xlu1 %280 }
 0x202   :  { %v288_v36 = vsel %vm287_vm3, %v286_v34, %v281_v35 }
 0x203   :  { %v292_v37 = vrot.slane %v288_v36, %v847_v32 }
 0x205   :  { %v293_v38 = vsub.f32 %v770_v15, %v292_v37  ;;  %v294_v40 = vsub.f32 %v774_v21, %v292_v37  ;;  %v295_v42 = vsub.f32 %v772_v20, %v292_v37  ;;  %v296_v44 = vsub.f32 %v778_v23, %v292_v37 }
 0x206   :  { %v297_v48 = vsub.f32 %v786_v33, %v292_v37  ;;  %v298_v50 = vsub.f32 %v792_v41, %v292_v37  ;;  %v299_v59 = vsub.f32 %v788_v39, %v292_v37  ;;  %v300_v0 = vsub.f32 %v794_v43, %v292_v37 }
 0x207   :  { %v309_v46 = vmul.f32 %v293_v38, %v293_v38  ;;  %v310_v47 = vmul.f32 %v294_v40, %v294_v40  ;;  %v311_v49 = vmul.f32 %v295_v42, %v295_v42  ;;  %v312_v52 = vmul.f32 %v296_v44, %v296_v44 }
 0x208   :  { %v313_v60 = vmul.f32 %v297_v48, %v297_v48  ;;  %v314_v2 = vmul.f32 %v298_v50, %v298_v50  ;;  %v301_v6 = vsub.f32 %v798_v45, %v292_v37  ;;  %v315_v7 = vmul.f32 %v299_v59, %v299_v59 }
 0x209   :  { %v325_v54 = vsel %vm100_vm0, %v309_v46, 0.0  ;;  %v326_v56 = vsel %vm100_vm0, %v310_v47, 0.0  ;;  %v328_v61 = vsel %vm100_vm0, %v311_v49, 0.0  ;;  %v330_v4 = vsel %vm100_vm0, %v312_v52, 0.0 }
 0x20a   :  { %v327_v58 = vadd.f32 %v326_v56, %v325_v54  ;;  %v332_v8 = vsel %vm100_vm0, %v313_v60, 0.0  ;;  %v302_v11 = vsub.f32 %v806_v51, %v292_v37  ;;  %v316_v12 = vmul.f32 %v300_v0, %v300_v0 }
 0x20b   :  { %v334_v13 = vsel %vm100_vm0, %v314_v2, 0.0  ;;  %v303_v16 = vsub.f32 %v808_v53, %v292_v37  ;;  %v317_v17 = vmul.f32 %v301_v6, %v301_v6  ;;  %v336_v10 = vsel %vm100_vm0, %v315_v7, 0.0 }
 0x20c   :  { %v329_v62 = vadd.f32 %v328_v61, %v327_v58  ;;  %v304_v19 = vsub.f32 %v810_v55, %v292_v37  ;;  %v318_v22 = vmul.f32 %v302_v11, %v302_v11  ;;  %v338_v24 = vsel %vm100_vm0, %v316_v12, 0.0 }
 0x20d   :  { %v305_v27 = vsub.f32 %v814_v57, %v292_v37  ;;  %v319_v28 = vmul.f32 %v303_v16, %v303_v16  ;;  %v340_v29 = vsel %vm100_vm0, %v317_v17, 0.0  ;;  %v306_v31 = vsub.f32 %v822_v63, %v292_v37 }
 0x20e   :  { %v331_v5 = vadd.f32 %v330_v4, %v329_v62  ;;  %v320_v34 = vmul.f32 %v304_v19, %v304_v19  ;;  %v342_v35 = vsel %vm100_vm0, %v318_v22, 0.0  ;;  %v307_v38 = vsub.f32 %v824_v1, %v292_v37  ;;  %v380_v22 = vld [vmem:[%s1010_s4] sm:$0x1] }
 0x20f   :  { %v321_v40 = vmul.f32 %v305_v27, %v305_v27  ;;  %v344_v42 = vsel %vm100_vm0, %v319_v28, 0.0  ;;  %v308_v46 = vsub.f32 %v826_v3, %v292_v37  ;;  %v322_v47 = vmul.f32 %v306_v31, %v306_v31 }
 0x210   :  { %v333_v9 = vadd.f32 %v332_v8, %v331_v5  ;;  %v346_v48 = vsel %vm100_vm0, %v320_v34, 0.0  ;;  %v323_v50 = vmul.f32 %v307_v38, %v307_v38 }
 0x211   :  { %v348_v52 = vsel %vm100_vm0, %v321_v40, 0.0  ;;  %v324_v56 = vmul.f32 %v308_v46, %v308_v46  ;;  %v350_v58 = vsel %vm100_vm0, %v322_v47, 0.0 }
 0x212   :  { %v335_v14 = vadd.f32 %v334_v13, %v333_v9  ;;  %v352_v60 = vsel %vm100_vm0, %v323_v50, 0.0 }
 0x213   :  { %v354_v62 = vsel %vm100_vm0, %v324_v56, 0.0 }
 0x214   :  { %v337_v18 = vadd.f32 %v336_v10, %v335_v14  ;;  %v376_v10 = vld [vmem:[%s1009_s3] sm:$0x1] }
 0x216   :  { %v339_v25 = vadd.f32 %v338_v24, %v337_v18 }
 0x218   :  { %v341_v30 = vadd.f32 %v340_v29, %v339_v25 }
 0x21a   :  { %v343_v36 = vadd.f32 %v342_v35, %v341_v30 }
 0x21c   :  { %v345_v44 = vadd.f32 %v344_v42, %v343_v36 }
 0x21e   :  { %v347_v49 = vadd.f32 %v346_v48, %v345_v44 }
 0x220   :  { %v349_v54 = vadd.f32 %v348_v52, %v347_v49 }
 0x222   :  { %v351_v59 = vadd.f32 %v350_v58, %v349_v54 }
 0x224   :  { %v353_v61 = vadd.f32 %v352_v60, %v351_v59 }
 0x226   :  { %v355_v0 = vadd.f32 %v354_v62, %v353_v61 }
 0x228   :  { %v356_v2 = vrot.slane %v355_v0, 4 }
 0x22a   :  { %v357_v37 = vadd.f32 %v356_v2, %v355_v0 }
 0x22c   :  { %v358_v4 = vrot.slane %v357_v37, 2 }
 0x22e   :  { %v359_v5 = vadd.f32 %v358_v4, %v357_v37 }
 0x230   :  { %v360_v6 = vrot.slane %v359_v5, 1 }
 0x232   :  { %v361_v7 = vadd.f32 %v360_v6, %v359_v5 }
 0x234   :  { %367 = vrot.lane.b32.xlu1 %v361_v7, %s695_s14  ;;  %363 = vrot.lane.b32.xlu0 %v361_v7, %s694_s2 }
 0x238   :  { %371 = vrot.lane.b32.xlu0 %v361_v7, %s693_s0 }
 0x2a6   :  { %v364_v8 = vpop.permute.xlu0 %363  ;;  %v368_v11 = vpop.permute.xlu1 %367 }
 0x2a7   :  { %v366_v9 = vadd.f32 %v364_v8, %v361_v7 }
 0x2a9   :  { %v370_v12 = vadd.f32 %v368_v11, %v366_v9 }
 0x2aa   :  { %v372_v13 = vpop.permute.xlu0 %371 }
 0x2ab   :  { %v374_v14 = vadd.f32 %v372_v13, %v370_v12 }
 0x2ad   :  { %v375_v16 = vmul.f32 0.001953125, %v374_v14 }
 0x2af   :  { %v377_v17 = vadd.f32 1e-05, %v375_v16 }
 0x2b1   :  { %691 = vrsqrt.f32 %v377_v17 }
 0x2bb   :  { %v692_v18 = vpop.eup %691 }
 0x2bc   :  { %v379_v19 = vmul.f32 %v692_v18, %v376_v10 }
 0x2be   :  { %v387_v24 = vrot.slane %v379_v19, %v847_v32  ;;  %v381_v25 = vmul.f32 %v379_v19, %v837_v26 }
 0x2c0   :  { %391 = vrot.lane.b32.xlu0 %v387_v24, %s696_s15  ;;  %388 = vrot.lane.b32.xlu1 %v387_v24, %s697_s16  ;;  %v382_v27 = vsub.f32 %v380_v22, %v381_v25 }
 0x2c2   :  { %v404_v28 = vrot.slane %v382_v27, %v847_v32 }
 0x2c4   :  { %394 = vrot.lane.b32.xlu1 %v387_v24, %s698_s17  ;;  %405 = vrot.lane.b32.xlu0 %v404_v28, %s697_s16 }
 0x2c8   :  { %408 = vrot.lane.b32.xlu1 %v404_v28, %s696_s15  ;;  %411 = vrot.lane.b32.xlu0 %v404_v28, %s698_s17 }
 0x332   :  { %v392_v29 = vpop.permute.xlu0 %391  ;;  %v389_v30 = vpop.permute.xlu1 %388 }
 0x333   :  { %v397_v31 = vsel %vm283_vm1, %v379_v19, %v389_v30 }
 0x334   :  { %v398_v26 = vsel %vm285_vm2, %v397_v31, %v392_v29 }
 0x336   :  { %v395_v34 = vpop.permute.xlu1 %394  ;;  %v406_v35 = vpop.permute.xlu0 %405 }
 0x337   :  { %v399_v36 = vsel %vm287_vm3, %v398_v26, %v395_v34  ;;  %v414_v48 = vsel %vm283_vm1, %v382_v27, %v406_v35 }
 0x338   :  { %v420_v38 = vrot.slane %v399_v36, %v847_v32 }
 0x33a   :  { %v409_v40 = vpop.permute.xlu1 %408  ;;  %v412_v42 = vpop.permute.xlu0 %411  ;;  %v421_v44 = vmul.f32 %v420_v38, %v770_v15  ;;  %v422_v46 = vmul.f32 %v420_v38, %v774_v21  ;;  %v423_v47 = vmul.f32 %v420_v38, %v772_v20  ;;  %v424_v49 = vmul.f32 %v420_v38, %v778_v23 }
 0x33b   :  { %v425_v50 = vmul.f32 %v420_v38, %v786_v33  ;;  %v426_v52 = vmul.f32 %v420_v38, %v792_v41  ;;  %v415_v54 = vsel %vm285_vm2, %v414_v48, %v409_v40  ;;  %v427_v56 = vmul.f32 %v420_v38, %v788_v39 }
 0x33c   :  { %v428_v58 = vmul.f32 %v420_v38, %v794_v43  ;;  %v429_v15 = vmul.f32 %v420_v38, %v798_v45  ;;  %v416_v21 = vsel %vm287_vm3, %v415_v54, %v412_v42  ;;  %v430_v20 = vmul.f32 %v420_v38, %v806_v51 }
 0x33d   :  { %v431_v59 = vmul.f32 %v420_v38, %v808_v53  ;;  %v432_v23 = vmul.f32 %v420_v38, %v810_v55  ;;  %v440_v33 = vrot.slane %v416_v21, %v847_v32  ;;  %v433_v41 = vmul.f32 %v420_v38, %v814_v57 }
 0x33e   :  { %v434_v60 = vmul.f32 %v420_v38, %v822_v63  ;;  %v435_v39 = vmul.f32 %v420_v38, %v824_v1  ;;  %v436_v43 = vmul.f32 %v420_v38, %v826_v3 }
 0x33f   :  { %v441_v61 = vadd.f32 %v440_v33, %v421_v44  ;;  %v442_v45 = vadd.f32 %v440_v33, %v422_v46  ;;  %v443_v62 = vadd.f32 %v440_v33, %v423_v47  ;;  %v444_v0 = vadd.f32 %v440_v33, %v424_v49 }
 0x340   :  { %v445_v2 = vadd.f32 %v440_v33, %v425_v50  ;;  %v446_v51 = vadd.f32 %v440_v33, %v426_v52  ;;  %v447_v37 = vadd.f32 %v440_v33, %v427_v56  ;;  %v448_v53 = vadd.f32 %v440_v33, %v428_v58 }
 0x341   :  { %v449_v4 = vadd.f32 %v440_v33, %v429_v15  ;;  %v450_v55 = vadd.f32 %v440_v33, %v430_v20  ;;  %v451_v5 = vadd.f32 %v440_v33, %v431_v59  ;;  %v452_v32 = vadd.f32 %v440_v33, %v432_v23 }
 0x342   :  { %v453_v6 = vadd.f32 %v440_v33, %v433_v41  ;;  %v454_v57 = vadd.f32 %v440_v33, %v434_v60  ;;  %v455_v7 = vadd.f32 %v440_v33, %v435_v39  ;;  %v456_v63 = vadd.f32 %v440_v33, %v436_v43 }
 0x343   :  { %vm458_vm5 = vcmp.ge.f32.partialorder %v442_v45, 0.0  ;;  %vm459_vm6 = vcmp.ge.f32.partialorder %v443_v62, 0.0  ;;  %vm460_vm7 = vcmp.ge.f32.partialorder %v444_v0, 0.0  ;;  %vm461_vm8 = vcmp.ge.f32.partialorder %v445_v2, 0.0 }
 0x344   :  { %vm462_vm9 = vcmp.ge.f32.partialorder %v446_v51, 0.0  ;;  %vm464_vm11 = vcmp.ge.f32.partialorder %v448_v53, 0.0  ;;  %vm465_vm12 = vcmp.ge.f32.partialorder %v449_v4, 0.0  ;;  %vm466_vm13 = vcmp.ge.f32.partialorder %v450_v55, 0.0 }
 0x345   :  { %vm467_vm14 = vcmp.ge.f32.partialorder %v451_v5, 0.0  ;;  %vm468_vm15 = vcmp.ge.f32.partialorder %v452_v32, 0.0  ;;  %vm469_vm1 = vcmp.ge.f32.partialorder %v453_v6, 0.0  ;;  %vm470_vm2 = vcmp.ge.f32.partialorder %v454_v57, 0.0 }
 0x346   :  { %vm471_vm3 = vcmp.ge.f32.partialorder %v455_v7, 0.0  ;;  %vm472_vm4 = vcmp.ge.f32.partialorder %v456_v63, 0.0  ;;  %v473_v1 = vmul.f32 0.01, %v441_v61  ;;  %v474_v3 = vmul.f32 0.01, %v442_v45 }
 0x347   :  { %v475_v8 = vmul.f32 0.01, %v443_v62  ;;  %v476_v9 = vmul.f32 0.01, %v444_v0  ;;  %v477_v11 = vmul.f32 0.01, %v445_v2 }
 0x348   :  { %v478_v12 = vmul.f32 0.01, %v446_v51  ;;  %v479_v13 = vmul.f32 0.01, %v447_v37  ;;  %v480_v14 = vmul.f32 0.01, %v448_v53  ;;  %v490_v22 = vsel %vm458_vm5, %v442_v45, %v474_v3 }
 0x349   :  { %v481_v16 = vmul.f32 0.01, %v449_v4  ;;  %vm1012_vm10 = vcmp.ge.f32.partialorder %v441_v61, 0.0  ;;  %v482_v10 = vmul.f32 0.01, %v450_v55  ;;  %v491_v28 = vsel %vm459_vm6, %v443_v62, %v475_v8 }
 0x34a   :  { %v489_v17 = vsel %vm1012_vm10, %v441_v61, %v473_v1  ;;  %v483_v18 = vmul.f32 0.01, %v451_v5  ;;  %v484_v19 = vmul.f32 0.01, %v452_v32  ;;  %v485_v24 = vmul.f32 0.01, %v453_v6 }
 0x34b   :  { %v486_v25 = vmul.f32 0.01, %v454_v57  ;;  %v487_v27 = vmul.f32 0.01, %v455_v7  ;;  %v488_v29 = vmul.f32 0.01, %v456_v63  ;;  %v492_v30 = vsel %vm460_vm7, %v444_v0, %v476_v9 }
 0x34c   :  { %v493_v31 = vsel %vm461_vm8, %v445_v2, %v477_v11  ;;  %v494_v26 = vsel %vm462_vm9, %v446_v51, %v478_v12  ;;  %vm1013_vm0 = vcmp.ge.f32.partialorder %v447_v37, 0.0  ;;  %v496_v35 = vsel %vm464_vm11, %v448_v53, %v480_v14 }
 0x34d   :  { %v495_v34 = vsel %vm1013_vm0, %v447_v37, %v479_v13  ;;  %v497_v36 = vsel %vm465_vm12, %v449_v4, %v481_v16  ;;  %v498_v38 = vsel %vm466_vm13, %v450_v55, %v482_v10  ;;  %v499_v40 = vsel %vm467_vm14, %v451_v5, %v483_v18 }
 0x34e   :  { %v500_v42 = vsel %vm468_vm15, %v452_v32, %v484_v19  ;;  %v501_v44 = vsel %vm469_vm1, %v453_v6, %v485_v24  ;;  %v502_v46 = vsel %vm470_vm2, %v454_v57, %v486_v25  ;;  %v503_v47 = vsel %vm471_vm3, %v455_v7, %v487_v27 }
 0x34f   :  { %v504_v48 = vsel %vm472_vm4, %v456_v63, %v488_v29  ;;  %v625_v49 = vpack.c.bf16 %v489_v17, %v489_v17  ;;  %v626_v50 = vpack.c.bf16 %v490_v22, %v490_v22  ;;  %v627_v52 = vpack.c.bf16 %v491_v28, %v491_v28 }
 0x350   :  { %v628_v54 = vpack.c.bf16 %v492_v30, %v492_v30  ;;  %v629_v56 = vpack.c.bf16 %v493_v31, %v493_v31  ;;  %v630_v58 = vpack.c.bf16 %v494_v26, %v494_v26  ;;  %v631_v15 = vpack.c.bf16 %v495_v34, %v495_v34 }
 0x351   :  { %v632_v21 = vpack.c.bf16 %v496_v35, %v496_v35  ;;  %v633_v20 = vpack.c.bf16 %v497_v36, %v497_v36  ;;  %v634_v59 = vpack.c.bf16 %v498_v38, %v498_v38  ;;  %vm1014_vm5 = vcmask 257024  }
 0x352   :  { %570 = vst.msk [vmem:[%s1011_s5] sm:$0xf] %vm1014_vm5, %v625_v49  ;;  %vm1015_vm6 = vmmov %vm1014_vm5  ;;  %v635_v23 = vpack.c.bf16 %v499_v40, %v499_v40  ;;  %v636_v33 = vpack.c.bf16 %v500_v42, %v500_v42  ;;  %v637_v41 = vpack.c.bf16 %v501_v44, %v501_v44  ;;  %v638_v60 = vpack.c.bf16 %v502_v46, %v502_v46 }
 0x353   :  { %571 = vst.msk [vmem:[%s1011_s5 + $0x4] sm:$0xf] %vm1015_vm6, %v626_v50  ;;  %vm1016_vm4 = vmmov %vm1014_vm5  ;;  %v639_v39 = vpack.c.bf16 %v503_v47, %v503_v47  ;;  %v640_v43 = vpack.c.bf16 %v504_v48, %v504_v48 }
 0x354   :  { %572 = vst.msk [vmem:[%s1011_s5 + $0x8] sm:$0xf] %vm1016_vm4, %v627_v52  ;;  %vm1017_vm7 = vmmov %vm1016_vm4 }
 0x355   :  { %573 = vst.msk [vmem:[%s1011_s5 + $0xc] sm:$0xf] %vm1017_vm7, %v628_v54  ;;  %vm1018_vm8 = vmmov %vm1016_vm4 }
 0x356   :  { %574 = vst.msk [vmem:[%s1011_s5 + $0x10] sm:$0xf] %vm1018_vm8, %v629_v56  ;;  %vm1019_vm9 = vmmov %vm1016_vm4 }
 0x357   :  { %575 = vst.msk [vmem:[%s1011_s5 + $0x14] sm:$0xf] %vm1019_vm9, %v630_v58  ;;  %vm1020_vm10 = vmmov %vm1016_vm4 }
 0x358   :  { %576 = vst.msk [vmem:[%s1011_s5 + $0x18] sm:$0xf] %vm1020_vm10, %v631_v15  ;;  %vm1021_vm11 = vmmov %vm1016_vm4 }
 0x359   :  { %577 = vst.msk [vmem:[%s1011_s5 + $0x1c] sm:$0xf] %vm1021_vm11, %v632_v21  ;;  %vm1022_vm12 = vmmov %vm1016_vm4 }
 0x35a   :  { %578 = vst.msk [vmem:[%s1011_s5 + $0x20] sm:$0xf] %vm1022_vm12, %v633_v20  ;;  %vm1023_vm13 = vmmov %vm1016_vm4 }
 0x35b   :  { %579 = vst.msk [vmem:[%s1011_s5 + $0x24] sm:$0xf] %vm1023_vm13, %v634_v59  ;;  %vm1024_vm14 = vmmov %vm1016_vm4 }
 0x35c   :  { %580 = vst.msk [vmem:[%s1011_s5 + $0x28] sm:$0xf] %vm1024_vm14, %v635_v23  ;;  %vm1025_vm15 = vmmov %vm1016_vm4 }
 0x35d   :  { %581 = vst.msk [vmem:[%s1011_s5 + $0x2c] sm:$0xf] %vm1025_vm15, %v636_v33  ;;  %vm1026_vm0 = vmmov %vm1016_vm4 }
 0x35e   :  { %582 = vst.msk [vmem:[%s1011_s5 + $0x30] sm:$0xf] %vm1026_vm0, %v637_v41  ;;  %vm1027_vm1 = vmmov %vm1026_vm0 }
 0x35f   :  { %583 = vst.msk [vmem:[%s1011_s5 + $0x34] sm:$0xf] %vm1027_vm1, %v638_v60  ;;  %vm1028_vm2 = vmmov %vm1026_vm0 }
 0x360   :  { %584 = vst.msk [vmem:[%s1011_s5 + $0x38] sm:$0xf] %vm1028_vm2, %v639_v39  ;;  %vm1029_vm3 = vmmov %vm1026_vm0 }
 0x361   :  { %585 = vst.msk [vmem:[%s1011_s5 + $0x3c] sm:$0xf] %vm1029_vm3, %v640_v43 }

// kernel: forward.13
= control target key start
LH: loop header
LB: loop body
LE: loop exit
PB: predicated region body
PF: predicated region fallthrough
CT: control target
= control target key end

     0   :  { %vm74_vm0 = vcmask 523264   ;;  %vm130_vm1 = vcmask 261120   ;;  %s359_s7 = smov 16   ;;  %s360_s8 = smov 8   ;;  %v174_v35 = vlaneseq  ;;  %vm168_vm2 = vcmask 64512   ;;  %s490_s1 = inlined_call_operand.vmem [shape: bf16[64,32], index: 1, kind: input, shape index: {}]   ;;  %s491_s0 = inlined_call_operand.vmem [shape: bf16[32,64], index: 0, kind: input, shape index: {}]   ;;  %s492_s2 = inlined_call_operand.vmem [shape: f32[1,32], index: 2, kind: input, shape index: {}]   ;;  %s493_s3 = inlined_call_operand.vmem [shape: f32[1,8], index: 3, kind: input, shape index: {}]   ;;  %s494_s4 = inlined_call_operand.vmem [shape: f32[1,8], index: 4, kind: input, shape index: {}]   ;;  %s495_s5 = inlined_call_operand.vmem [shape: bf16[32,32], index: 5, kind: output, shape index: {}]  }
   0x1   :  { %v348_v0 = vld [vmem:[%s490_s1] sm:$0xff]   ;;  %v349_v1 = vld [vmem:[%s490_s1 + $0x8] sm:$0xff]   ;;  %v350_v2 = vld [vmem:[%s490_s1 + $0x10] sm:$0xff]   ;;  %s361_s9 = smov 24   ;;  %vm170_vm3 = vcmask 130048   ;;  %vm172_vm4 = vcmask 195584  }
   0x2   :  { %330 = vmatprep.subr.bf16.mxu0 %v348_v0  ;;  %v352_v3 = vld [vmem:[%s491_s0] sm:$0xff]   ;;  %v351_v4 = vld [vmem:[%s490_s1 + $0x18] sm:$0xff]   ;;  %v353_v5 = vld [vmem:[%s491_s0 + $0x8] sm:$0xff]   ;;  %s356_s0 = smov 104   ;;  %s357_s1 = smov 120   ;;  %v175_v36 = vshrl.u32 %v174_v35, 7 }
   0x3   :  { %331 = vmatpush3.bf16.msra.mxu0 %v348_v0  ;;  %338 = vmatprep.mubr.msk.bf16.mxu0 %vm74_vm0, %v352_v3  ;;  %v307_v6 = vld [vmem:[%s492_s2] ss:$0 sm:$0xff]  ;;  %s358_s2 = smov 112   ;;  %vm298_vm9 = vcmask 257024  }
   0x4   :  { %332 = vmatprep.subr.bf16.mxu0 %v349_v1  ;;  %v436_v40 = vsub.s32 0, %v175_v36 }
   0x7   :  { %333 = vmatpush3.bf16.msra.mxu0 %v349_v1 }
   0x8   :  { %334 = vmatprep.subr.bf16.mxu0 %v350_v2 }
   0xb   :  { %335 = vmatpush3.bf16.msra.mxu0 %v350_v2 }
   0xc   :  { %336 = vmatprep.subr.bf16.mxu0 %v351_v4 }
   0xf   :  { %337 = vmatpush3.bf16.msra.mxu0 %v351_v4 }
  0x12   :  { %339 = vmatmul.mubr.msk.bf16.vlgmr.msra.gmra.mrb[0].mxu0 %vm74_vm0, %v353_v5 }
  0xe5   :  { %v340_v7 = vpop.f32.mrb[0].mxu0 }
  0xe6   :  { %v115_v8 = vpop.f32.mrb[1].mxu0  ;;  %v415_v12 = vadd.f32 %v340_v7, %v307_v6 }
  0xe7   :  { %v413_v9 = vadd.f32 %v307_v6, %v115_v8  ;;  %v341_v10 = vpop.f32.mrb[2].mxu0 }
  0xe8   :  { %v118_v11 = vpop.f32.mrb[3].mxu0  ;;  %v421_v15 = vadd.f32 %v341_v10, %v307_v6  ;;  %v134_v18 = vsel %vm130_vm1, %v415_v12, 0.0 }
  0xe9   :  { %v417_v13 = vadd.f32 %v307_v6, %v118_v11  ;;  %v131_v14 = vsel %vm130_vm1, %v413_v9, 0.0  ;;  %v213_v11 = vld [vmem:[%s493_s3] sm:$0x1] }
  0xea   :  { %v136_v20 = vsel %vm130_vm1, %v421_v15, 0.0 }
  0xeb   :  { %v132_v16 = vsel %vm130_vm1, %v417_v13, 0.0 }
  0xec   :  { %v133_v17 = vadd.f32 %v132_v16, %v131_v14 }
  0xee   :  { %v135_v19 = vadd.f32 %v134_v18, %v133_v17  ;;  %v217_v17 = vld [vmem:[%s494_s4] sm:$0x1] }
  0xf0   :  { %v137_v21 = vadd.f32 %v136_v20, %v135_v19 }
  0xf2   :  { %v138_v22 = vrot.slane %v137_v21, 4 }
  0xf4   :  { %v139_v23 = vadd.f32 %v138_v22, %v137_v21 }
  0xf6   :  { %v140_v24 = vrot.slane %v139_v23, 2 }
  0xf8   :  { %v141_v25 = vadd.f32 %v140_v24, %v139_v23 }
  0xfa   :  { %v142_v26 = vrot.slane %v141_v25, 1 }
  0xfc   :  { %v143_v27 = vadd.f32 %v142_v26, %v141_v25 }
  0xfe   :  { %153 = vrot.lane.b32.xlu1 %v143_v27, %s356_s0  ;;  %145 = vrot.lane.b32.xlu0 %v143_v27, %s357_s1 }
 0x102   :  { %149 = vrot.lane.b32.xlu0 %v143_v27, %s358_s2 }
 0x170   :  { %v146_v28 = vpop.permute.xlu0 %145  ;;  %v154_v32 = vpop.permute.xlu1 %153 }
 0x171   :  { %v148_v29 = vadd.f32 %v146_v28, %v143_v27 }
 0x174   :  { %v150_v30 = vpop.permute.xlu0 %149 }
 0x175   :  { %v152_v31 = vadd.f32 %v150_v30, %v148_v29 }
 0x177   :  { %v156_v33 = vadd.f32 %v154_v32, %v152_v31 }
 0x179   :  { %v157_v34 = vmul.f32 0.0078125, %v156_v33 }
 0x17b   :  { %162 = vrot.lane.b32.xlu0 %v157_v34, %s359_s7  ;;  %159 = vrot.lane.b32.xlu1 %v157_v34, %s360_s8 }
 0x17f   :  { %165 = vrot.lane.b32.xlu1 %v157_v34, %s361_s9 }
 0x1ed   :  { %v160_v37 = vpop.permute.xlu1 %159  ;;  %v163_v38 = vpop.permute.xlu0 %162 }
 0x1ee   :  { %v169_v39 = vsel %vm168_vm2, %v157_v34, %v160_v37 }
 0x1ef   :  { %v171_v41 = vsel %vm170_vm3, %v169_v39, %v163_v38 }
 0x1f1   :  { %v166_v42 = vpop.permute.xlu1 %165 }
 0x1f2   :  { %v173_v43 = vsel %vm172_vm4, %v171_v41, %v166_v42 }
 0x1f3   :  { %v177_v44 = vrot.slane %v173_v43, %v436_v40 }
 0x1f5   :  { %v178_v45 = vsub.f32 %v413_v9, %v177_v44  ;;  %v179_v46 = vsub.f32 %v417_v13, %v177_v44  ;;  %v180_v47 = vsub.f32 %v415_v12, %v177_v44  ;;  %v181_v48 = vsub.f32 %v421_v15, %v177_v44 }
 0x1f7   :  { %v182_v49 = vmul.f32 %v178_v45, %v178_v45  ;;  %v183_v50 = vmul.f32 %v179_v46, %v179_v46  ;;  %v184_v51 = vmul.f32 %v180_v47, %v180_v47  ;;  %v185_v52 = vmul.f32 %v181_v48, %v181_v48 }
 0x1f9   :  { %v186_v53 = vsel %vm130_vm1, %v182_v49, 0.0  ;;  %v187_v54 = vsel %vm130_vm1, %v183_v50, 0.0  ;;  %v189_v56 = vsel %vm130_vm1, %v184_v51, 0.0  ;;  %v191_v58 = vsel %vm130_vm1, %v185_v52, 0.0 }
 0x1fa   :  { %v188_v55 = vadd.f32 %v187_v54, %v186_v53 }
 0x1fc   :  { %v190_v57 = vadd.f32 %v189_v56, %v188_v55 }
 0x1fe   :  { %v192_v59 = vadd.f32 %v191_v58, %v190_v57 }
 0x200   :  { %v193_v60 = vrot.slane %v192_v59, 4 }
 0x202   :  { %v194_v61 = vadd.f32 %v193_v60, %v192_v59 }
 0x204   :  { %v195_v62 = vrot.slane %v194_v61, 2 }
 0x206   :  { %v196_v63 = vadd.f32 %v195_v62, %v194_v61 }
 0x208   :  { %v197_v0 = vrot.slane %v196_v63, 1 }
 0x20a   :  { %v198_v1 = vadd.f32 %v197_v0, %v196_v63 }
 0x20c   :  { %204 = vrot.lane.b32.xlu1 %v198_v1, %s358_s2  ;;  %200 = vrot.lane.b32.xlu0 %v198_v1, %s357_s1 }
 0x210   :  { %208 = vrot.lane.b32.xlu0 %v198_v1, %s356_s0 }
 0x27e   :  { %v201_v2 = vpop.permute.xlu0 %200  ;;  %v205_v4 = vpop.permute.xlu1 %204 }
 0x27f   :  { %v203_v3 = vadd.f32 %v201_v2, %v198_v1 }
 0x281   :  { %v207_v5 = vadd.f32 %v205_v4, %v203_v3 }
 0x282   :  { %v209_v6 = vpop.permute.xlu0 %208 }
 0x283   :  { %v211_v7 = vadd.f32 %v209_v6, %v207_v5 }
 0x285   :  { %v212_v8 = vmul.f32 0.0078125, %v211_v7 }
 0x287   :  { %v214_v10 = vadd.f32 1e-05, %v212_v8 }
 0x289   :  { %354 = vrsqrt.f32 %v214_v10 }
 0x293   :  { %v355_v14 = vpop.eup %354 }
 0x294   :  { %v216_v16 = vmul.f32 %v355_v14, %v213_v11 }
 0x296   :  { %v224_v18 = vrot.slane %v216_v16, %v436_v40  ;;  %v218_v19 = vmul.f32 %v216_v16, %v157_v34 }
 0x298   :  { %228 = vrot.lane.b32.xlu0 %v224_v18, %s359_s7  ;;  %225 = vrot.lane.b32.xlu1 %v224_v18, %s360_s8  ;;  %v219_v20 = vsub.f32 %v217_v17, %v218_v19 }
 0x29a   :  { %v241_v21 = vrot.slane %v219_v20, %v436_v40 }
 0x29c   :  { %231 = vrot.lane.b32.xlu1 %v224_v18, %s361_s9  ;;  %242 = vrot.lane.b32.xlu0 %v241_v21, %s360_s8 }
 0x2a0   :  { %245 = vrot.lane.b32.xlu1 %v241_v21, %s359_s7  ;;  %248 = vrot.lane.b32.xlu0 %v241_v21, %s361_s9 }
 0x30a   :  { %v229_v22 = vpop.permute.xlu0 %228  ;;  %v226_v23 = vpop.permute.xlu1 %225 }
 0x30b   :  { %v234_v24 = vsel %vm168_vm2, %v216_v16, %v226_v23 }
 0x30c   :  { %v235_v25 = vsel %vm170_vm3, %v234_v24, %v229_v22 }
 0x30e   :  { %v232_v26 = vpop.permute.xlu1 %231  ;;  %v243_v27 = vpop.permute.xlu0 %242 }
 0x30f   :  { %v236_v28 = vsel %vm172_vm4, %v235_v25, %v232_v26  ;;  %v251_v30 = vsel %vm168_vm2, %v219_v20, %v243_v27 }
 0x310   :  { %v257_v29 = vrot.slane %v236_v28, %v436_v40 }
 0x312   :  { %v246_v31 = vpop.permute.xlu1 %245  ;;  %v249_v32 = vpop.permute.xlu0 %248  ;;  %v258_v34 = vmul.f32 %v257_v29, %v413_v9  ;;  %v259_v36 = vmul.f32 %v257_v29, %v417_v13  ;;  %v260_v37 = vmul.f32 %v257_v29, %v415_v12  ;;  %v261_v38 = vmul.f32 %v257_v29, %v421_v15 }
 0x313   :  { %v252_v33 = vsel %vm170_vm3, %v251_v30, %v246_v31 }
 0x314   :  { %v253_v35 = vsel %vm172_vm4, %v252_v33, %v249_v32 }
 0x315   :  { %v265_v39 = vrot.slane %v253_v35, %v436_v40 }
 0x317   :  { %v266_v41 = vadd.f32 %v265_v39, %v258_v34  ;;  %v267_v42 = vadd.f32 %v265_v39, %v259_v36  ;;  %v268_v43 = vadd.f32 %v265_v39, %v260_v37  ;;  %v269_v44 = vadd.f32 %v265_v39, %v261_v38 }
 0x319   :  { %vm270_vm5 = vcmp.ge.f32.partialorder %v266_v41, 0.0  ;;  %vm271_vm6 = vcmp.ge.f32.partialorder %v267_v42, 0.0  ;;  %vm272_vm7 = vcmp.ge.f32.partialorder %v268_v43, 0.0  ;;  %vm273_vm8 = vcmp.ge.f32.partialorder %v269_v44, 0.0 }
 0x31a   :  { %v274_v45 = vmul.f32 0.01, %v266_v41  ;;  %v275_v9 = vmul.f32 0.01, %v267_v42  ;;  %v276_v46 = vmul.f32 0.01, %v268_v43 }
 0x31b   :  { %v277_v47 = vmul.f32 0.01, %v269_v44 }
 0x31c   :  { %v278_v13 = vsel %vm270_vm5, %v266_v41, %v274_v45  ;;  %v279_v48 = vsel %vm271_vm6, %v267_v42, %v275_v9  ;;  %v280_v12 = vsel %vm272_vm7, %v268_v43, %v276_v46 }
 0x31d   :  { %v281_v49 = vsel %vm273_vm8, %v269_v44, %v277_v47  ;;  %v320_v15 = vpack.c.bf16 %v278_v13, %v278_v13  ;;  %v321_v50 = vpack.c.bf16 %v279_v48, %v279_v48  ;;  %v322_v40 = vpack.c.bf16 %v280_v12, %v280_v12 }
 0x31e   :  { %v323_v51 = vpack.c.bf16 %v281_v49, %v281_v49 }
 0x31f   :  { %299 = vst.msk [vmem:[%s495_s5] sm:$0xf] %vm298_vm9, %v320_v15  ;;  %300 = vst.msk [vmem:[%s495_s5 + $0x4] sm:$0xf] %vm298_vm9, %v321_v50 }
 0x320   :  { %301 = vst.msk [vmem:[%s495_s5 + $0x8] sm:$0xf] %vm298_vm9, %v322_v40  ;;  %302 = vst.msk [vmem:[%s495_s5 + $0xc] sm:$0xf] %vm298_vm9, %v323_v51 }

// kernel: forward.15
= control target key start
LH: loop header
LB: loop body
LE: loop exit
PB: predicated region body
PF: predicated region fallthrough
CT: control target
= control target key end

     0   :  { %vm284_vm0 = vcmask 588800   ;;  %vm381_vm1 = vcmask 1043456   ;;  %vm674_vm2 = vcmask 39936   ;;  %s2698_s1 = inlined_call_operand.vmem [shape: bf16[72,5], index: 1, kind: input, shape index: {}]   ;;  %s2699_s0 = inlined_call_operand.vmem [shape: bf16[512,72], index: 0, kind: input, shape index: {}]   ;;  %s2700_s2 = inlined_call_operand.vmem [shape: f32[1,5], index: 2, kind: input, shape index: {}]   ;;  %s2701_s3 = inlined_call_operand.vmem [shape: f32[512,5], index: 3, kind: output, shape index: {0}]   ;;  %s2702_s4 = inlined_call_operand.vmem [shape: f32[512,5], index: 4, kind: output, shape index: {1}]  }
   0x1   :  { %v1452_v0 = vld [vmem:[%s2698_s1] sm:$0xff]   ;;  %v1453_v1 = vld [vmem:[%s2698_s1 + $0x8] sm:$0xff]   ;;  %v1454_v2 = vld [vmem:[%s2698_s1 + $0x10] sm:$0xff]  }
   0x2   :  { %1366 = vmatprep.subr.bf16.mxu0 %v1452_v0  ;;  %1440 = vmatprep.subr.bf16.mxu1 %v1452_v0  ;;  %v1457_v3 = vld [vmem:[%s2699_s0] sm:$0xff]   ;;  %v1455_v5 = vld [vmem:[%s2698_s1 + $0x18] sm:$0xff]   ;;  %v1459_v8 = vld [vmem:[%s2699_s0 + $0x8] sm:$0xff]  }
   0x3   :  { %1367 = vmatpush3.bf16.msra.mxu0 %v1452_v0  ;;  %1445 = vmatpush3.bf16.msra.mxu1 %v1452_v0  ;;  %v1458_v4 = vld [vmem:[%s2699_s0 + $0x80] sm:$0xff]   ;;  %v1460_v9 = vld [vmem:[%s2699_s0 + $0x88] sm:$0xff]   ;;  %v1461_v10 = vld [vmem:[%s2699_s0 + $0x10] sm:$0xff]  }
   0x4   :  { %1368 = vmatprep.subr.bf16.mxu0 %v1453_v1  ;;  %1441 = vmatprep.subr.bf16.mxu1 %v1453_v1  ;;  %v1456_v6 = vld [vmem:[%s2698_s1 + $0x20] ss:$0 sps:$4 sm:$0xff]   ;;  %v1462_v11 = vld [vmem:[%s2699_s0 + $0x90] sm:$0xff]   ;;  %v1463_v12 = vld [vmem:[%s2699_s0 + $0x18] sm:$0xff]  }
   0x5   :  { %1376 = vmatprep.mubr.msk.bf16.mxu0 %vm284_vm0, %v1457_v3  ;;  %1408 = vmatprep.mubr.msk.bf16.mxu1 %vm284_vm0, %v1458_v4  ;;  %v383_v7 = vsel %vm381_vm1, %v1456_v6, 0  ;;  %v1464_v13 = vld [vmem:[%s2699_s0 + $0x98] sm:$0xff]   ;;  %v1465_v14 = vld [vmem:[%s2699_s0 + $0x20] sm:$0xff]   ;;  %v1467_v16 = vld [vmem:[%s2699_s0 + $0x28] sm:$0xff]  }
   0x6   :  { %v1466_v15 = vld [vmem:[%s2699_s0 + $0xa0] sm:$0xff]   ;;  %v1468_v17 = vld [vmem:[%s2699_s0 + $0xa8] sm:$0xff]   ;;  %v1469_v18 = vld [vmem:[%s2699_s0 + $0x30] sm:$0xff]  }
   0x7   :  { %1369 = vmatpush3.bf16.msra.mxu0 %v1453_v1  ;;  %1446 = vmatpush3.bf16.msra.mxu1 %v1453_v1  ;;  %v1470_v19 = vld [vmem:[%s2699_s0 + $0xb0] sm:$0xff]   ;;  %v1471_v20 = vld [vmem:[%s2699_s0 + $0x38] sm:$0xff]   ;;  %v1473_v22 = vld [vmem:[%s2699_s0 + $0x40] sm:$0xff]  }
   0x8   :  { %1370 = vmatprep.subr.bf16.mxu0 %v1454_v2  ;;  %1442 = vmatprep.subr.bf16.mxu1 %v1454_v2  ;;  %v1472_v21 = vld [vmem:[%s2699_s0 + $0xb8] sm:$0xff]   ;;  %v1474_v23 = vld [vmem:[%s2699_s0 + $0xc0] sm:$0xff]   ;;  %v1475_v24 = vld [vmem:[%s2699_s0 + $0x48] sm:$0xff]  }
   0x9   :  { %v1476_v25 = vld [vmem:[%s2699_s0 + $0xc8] sm:$0xff]   ;;  %v1477_v26 = vld [vmem:[%s2699_s0 + $0x50] sm:$0xff]   ;;  %v1479_v28 = vld [vmem:[%s2699_s0 + $0x58] sm:$0xff]  }
   0xa   :  { %v1478_v27 = vld [vmem:[%s2699_s0 + $0xd0] sm:$0xff]   ;;  %v1480_v29 = vld [vmem:[%s2699_s0 + $0xd8] sm:$0xff]   ;;  %v1481_v30 = vld [vmem:[%s2699_s0 + $0x60] sm:$0xff]  }
   0xb   :  { %1371 = vmatpush3.bf16.msra.mxu0 %v1454_v2  ;;  %1447 = vmatpush3.bf16.msra.mxu1 %v1454_v2  ;;  %v1482_v31 = vld [vmem:[%s2699_s0 + $0xe0] sm:$0xff]   ;;  %v1483_v32 = vld [vmem:[%s2699_s0 + $0x68] sm:$0xff]   ;;  %v1485_v34 = vld [vmem:[%s2699_s0 + $0x70] sm:$0xff]  }
   0xc   :  { %1372 = vmatprep.subr.bf16.mxu0 %v1455_v5  ;;  %1443 = vmatprep.subr.bf16.mxu1 %v1455_v5  ;;  %v1484_v33 = vld [vmem:[%s2699_s0 + $0xe8] sm:$0xff]   ;;  %v1486_v35 = vld [vmem:[%s2699_s0 + $0xf0] sm:$0xff]   ;;  %v1487_v36 = vld [vmem:[%s2699_s0 + $0x78] sm:$0xff]  }
   0xd   :  { %v1488_v37 = vld [vmem:[%s2699_s0 + $0xf8] sm:$0xff]   ;;  %v1916_v38 = vld [vmem:[%s2700_s2] ss:$0 sm:$0xff] }
   0xf   :  { %1373 = vmatpush3.bf16.msra.mxu0 %v1455_v5  ;;  %1448 = vmatpush3.bf16.msra.mxu1 %v1455_v5 }
  0x10   :  { %1450 = vmatprep.subr.msk.bf16.mxu0 %vm381_vm1, %v1456_v6  ;;  %1451 = vmatprep.subr.msk.bf16.mxu1 %vm381_vm1, %v1456_v6 }
  0x13   :  { %1375 = vmatpush3.bf16.msra.mxu0 %v383_v7  ;;  %1449 = vmatpush3.bf16.msra.mxu1 %v383_v7 }
  0x16   :  { %1377 = vmatmul.mubr.msk.bf16.vlgmr.msra.gmra.mrb[0].mxu0 %vm284_vm0, %v1459_v8  ;;  %1409 = vmatmul.mubr.msk.bf16.vlgmr.msra.gmra.mrb[0].mxu1 %vm284_vm0, %v1460_v9 }
  0x17   :  { %1380 = vmatprep.mubr.msk.bf16.mxu0 %vm284_vm0, %v1461_v10  ;;  %1412 = vmatprep.mubr.msk.bf16.mxu1 %vm284_vm0, %v1462_v11 }
  0x1e   :  { %1381 = vmatmul.mubr.msk.bf16.gmra.mrb[4].mxu0 %vm284_vm0, %v1463_v12  ;;  %1413 = vmatmul.mubr.msk.bf16.gmra.mrb[4].mxu1 %vm284_vm0, %v1464_v13 }
  0x1f   :  { %1384 = vmatprep.mubr.msk.bf16.mxu0 %vm284_vm0, %v1465_v14  ;;  %1416 = vmatprep.mubr.msk.bf16.mxu1 %vm284_vm0, %v1466_v15 }
  0x26   :  { %1385 = vmatmul.mubr.msk.bf16.gmra.mrb[8].mxu0 %vm284_vm0, %v1467_v16  ;;  %1417 = vmatmul.mubr.msk.bf16.gmra.mrb[8].mxu1 %vm284_vm0, %v1468_v17 }
  0x27   :  { %1388 = vmatprep.mubr.msk.bf16.mxu0 %vm284_vm0, %v1469_v18  ;;  %1420 = vmatprep.mubr.msk.bf16.mxu1 %vm284_vm0, %v1470_v19 }
  0x2e   :  { %1389 = vmatmul.mubr.msk.bf16.gmra.mrb[12].mxu0 %vm284_vm0, %v1471_v20  ;;  %1421 = vmatmul.mubr.msk.bf16.gmra.mrb[12].mxu1 %vm284_vm0, %v1472_v21 }
  0x2f   :  { %1392 = vmatprep.mubr.msk.bf16.mxu0 %vm284_vm0, %v1473_v22  ;;  %1424 = vmatprep.mubr.msk.bf16.mxu1 %vm284_vm0, %v1474_v23 }
  0x36   :  { %1393 = vmatmul.mubr.msk.bf16.gmra.mrb[16].mxu0 %vm284_vm0, %v1475_v24  ;;  %1425 = vmatmul.mubr.msk.bf16.gmra.mrb[16].mxu1 %vm284_vm0, %v1476_v25 }
  0x37   :  { %1396 = vmatprep.mubr.msk.bf16.mxu0 %vm284_vm0, %v1477_v26  ;;  %1428 = vmatprep.mubr.msk.bf16.mxu1 %vm284_vm0, %v1478_v27 }
  0x3e   :  { %1397 = vmatmul.mubr.msk.bf16.gmra.mrb[20].mxu0 %vm284_vm0, %v1479_v28  ;;  %1429 = vmatmul.mubr.msk.bf16.gmra.mrb[20].mxu1 %vm284_vm0, %v1480_v29 }
  0x3f   :  { %1400 = vmatprep.mubr.msk.bf16.mxu0 %vm284_vm0, %v1481_v30  ;;  %1432 = vmatprep.mubr.msk.bf16.mxu1 %vm284_vm0, %v1482_v31 }
  0x46   :  { %1401 = vmatmul.mubr.msk.bf16.gmra.mrb[24].mxu0 %vm284_vm0, %v1483_v32  ;;  %1433 = vmatmul.mubr.msk.bf16.gmra.mrb[24].mxu1 %vm284_vm0, %v1484_v33 }
  0x47   :  { %1404 = vmatprep.mubr.msk.bf16.mxu0 %vm284_vm0, %v1485_v34  ;;  %1436 = vmatprep.mubr.msk.bf16.mxu1 %vm284_vm0, %v1486_v35 }
  0x4e   :  { %1405 = vmatmul.mubr.msk.bf16.gmra.mrb[28].mxu0 %vm284_vm0, %v1487_v36  ;;  %1437 = vmatmul.mubr.msk.bf16.gmra.mrb[28].mxu1 %vm284_vm0, %v1488_v37 }
  0xe9   :  { %v1378_v39 = vpop.f32.mrb[0].mxu0  ;;  %v1410_v40 = vpop.f32.mrb[0].mxu1 }
  0xea   :  { %v428_v41 = vadd.f32 %v1378_v39, %v1916_v38  ;;  %v556_v42 = vadd.f32 %v1410_v40, %v1916_v38  ;;  %v419_v43 = vpop.f32.mrb[1].mxu0  ;;  %v547_v44 = vpop.f32.mrb[1].mxu1 }
  0xeb   :  { %v420_v45 = vadd.f32 %v1916_v38, %v419_v43  ;;  %v548_v46 = vadd.f32 %v1916_v38, %v547_v44  ;;  %v1379_v47 = vpop.f32.mrb[2].mxu0  ;;  %v1411_v48 = vpop.f32.mrb[2].mxu1 }
  0xec   :  { %677 = vst.msk [vmem:[%s2701_s3 + $0x10] sm:$0xff] %vm674_vm2, %v428_v41  ;;  %v1267_v49 = vmul.f32 -1.442695, %v428_v41  ;;  %709 = vst.msk [vmem:[%s2701_s3 + $0x110] sm:$0xff] %vm674_vm2, %v556_v42  ;;  %v1299_v50 = vmul.f32 -1.442695, %v556_v42  ;;  %v431_v51 = vadd.f32 %v1379_v47, %v1916_v38  ;;  %v559_v52 = vadd.f32 %v1411_v48, %v1916_v38 }
  0xed   :  { %v422_v53 = vpop.f32.mrb[3].mxu0  ;;  %v550_v54 = vpop.f32.mrb[3].mxu1  ;;  %675 = vst.msk [vmem:[%s2701_s3] sm:$0xff] %vm674_vm2, %v420_v45  ;;  %v1265_v55 = vmul.f32 -1.442695, %v420_v45  ;;  %707 = vst.msk [vmem:[%s2701_s3 + $0x100] sm:$0xff] %vm674_vm2, %v548_v46 }
  0xee   :  { %v1297_v56 = vmul.f32 -1.442695, %v548_v46  ;;  %v423_v57 = vadd.f32 %v1916_v38, %v422_v53  ;;  %v551_v58 = vadd.f32 %v1916_v38, %v550_v54  ;;  %1489 = vpow2.f32 %v1267_v49  ;;  %678 = vst.msk [vmem:[%s2701_s3 + $0x18] sm:$0xff] %vm674_vm2, %v431_v51  ;;  %710 = vst.msk [vmem:[%s2701_s3 + $0x118] sm:$0xff] %vm674_vm2, %v559_v52 }
  0xef   :  { %v1268_v59 = vmul.f32 -1.442695, %v431_v51  ;;  %1491 = vpow2.f32 %v1299_v50  ;;  %v1300_v60 = vmul.f32 -1.442695, %v559_v52 }
  0xf0   :  { %676 = vst.msk [vmem:[%s2701_s3 + $0x8] sm:$0xff] %vm674_vm2, %v423_v57  ;;  %708 = vst.msk [vmem:[%s2701_s3 + $0x108] sm:$0xff] %vm674_vm2, %v551_v58  ;;  %1493 = vpow2.f32 %v1265_v55  ;;  %v1266_v61 = vmul.f32 -1.442695, %v423_v57  ;;  %v1298_v62 = vmul.f32 -1.442695, %v551_v58 }
  0xf1   :  { %1495 = vpow2.f32 %v1297_v56  ;;  %v1382_v63 = vpop.f32.mrb[4].mxu0  ;;  %v1414_v0 = vpop.f32.mrb[4].mxu1 }
  0xf2   :  { %1497 = vpow2.f32 %v1268_v59  ;;  %v444_v1 = vadd.f32 %v1382_v63, %v1916_v38  ;;  %v572_v2 = vadd.f32 %v1414_v0, %v1916_v38  ;;  %v435_v3 = vpop.f32.mrb[5].mxu0  ;;  %v563_v4 = vpop.f32.mrb[5].mxu1 }
  0xf3   :  { %1499 = vpow2.f32 %v1300_v60  ;;  %v436_v5 = vadd.f32 %v1916_v38, %v435_v3  ;;  %v564_v6 = vadd.f32 %v1916_v38, %v563_v4  ;;  %v1383_v7 = vpop.f32.mrb[6].mxu0  ;;  %v1415_v8 = vpop.f32.mrb[6].mxu1 }
  0xf4   :  { %1501 = vpow2.f32 %v1266_v61  ;;  %681 = vst.msk [vmem:[%s2701_s3 + $0x30] sm:$0xff] %vm674_vm2, %v444_v1  ;;  %v1271_v9 = vmul.f32 -1.442695, %v444_v1  ;;  %713 = vst.msk [vmem:[%s2701_s3 + $0x130] sm:$0xff] %vm674_vm2, %v572_v2  ;;  %v1303_v10 = vmul.f32 -1.442695, %v572_v2  ;;  %v447_v11 = vadd.f32 %v1383_v7, %v1916_v38 }
  0xf5   :  { %v438_v12 = vpop.f32.mrb[7].mxu0  ;;  %v566_v13 = vpop.f32.mrb[7].mxu1  ;;  %1503 = vpow2.f32 %v1298_v62  ;;  %679 = vst.msk [vmem:[%s2701_s3 + $0x20] sm:$0xff] %vm674_vm2, %v436_v5  ;;  %v1269_v14 = vmul.f32 -1.442695, %v436_v5  ;;  %711 = vst.msk [vmem:[%s2701_s3 + $0x120] sm:$0xff] %vm674_vm2, %v564_v6  ;;  %v1980_v16 = vadd.f32 %v1415_v8, %v1916_v38 }
  0xf6   :  { %v1301_v15 = vmul.f32 -1.442695, %v564_v6  ;;  %1505 = vpow2.f32 %v1271_v9  ;;  %682 = vst.msk [vmem:[%s2701_s3 + $0x38] sm:$0xff] %vm674_vm2, %v447_v11  ;;  %v1272_v17 = vmul.f32 -1.442695, %v447_v11  ;;  %v1987_v18 = vadd.f32 %v1916_v38, %v438_v12 }
  0xf7   :  { %v1990_v19 = vadd.f32 %v1916_v38, %v566_v13  ;;  %1507 = vpow2.f32 %v1303_v10  ;;  %714 = vst.msk [vmem:[%s2701_s3 + $0x138] sm:$0xff] %vm674_vm2, %v1980_v16  ;;  %v1304_v6 = vmul.f32 -1.442695, %v1980_v16 }
  0xf8   :  { %v1490_v20 = vpop.eup %1489  ;;  %1509 = vpow2.f32 %v1269_v14  ;;  %680 = vst.msk [vmem:[%s2701_s3 + $0x28] sm:$0xff] %vm674_vm2, %v1987_v18  ;;  %v1270_v12 = vmul.f32 -1.442695, %v1987_v18 }
  0xf9   :  { %712 = vst.msk [vmem:[%s2701_s3 + $0x128] sm:$0xff] %vm674_vm2, %v1990_v19  ;;  %v1492_v21 = vpop.eup %1491  ;;  %v933_v22 = vadd.f32 1.0, %v1490_v20  ;;  %1511 = vpow2.f32 %v1301_v15  ;;  %v1386_v23 = vpop.f32.mrb[8].mxu0  ;;  %v1302_v15 = vmul.f32 -1.442695, %v1990_v19 }
  0xfa   :  { %v1418_v24 = vpop.f32.mrb[8].mxu1  ;;  %v1494_v25 = vpop.eup %1493  ;;  %v965_v26 = vadd.f32 1.0, %v1492_v21  ;;  %1513 = vpow2.f32 %v1272_v17  ;;  %v2008_v27 = vadd.f32 %v1386_v23, %v1916_v38 }
  0xfb   :  { %v2011_v28 = vadd.f32 %v1418_v24, %v1916_v38  ;;  %v451_v29 = vpop.f32.mrb[9].mxu0  ;;  %v579_v30 = vpop.f32.mrb[9].mxu1  ;;  %1515 = vrcp.f32 %v933_v22  ;;  %v931_v32 = vadd.f32 1.0, %v1494_v25 }
  0xfc   :  { %v1496_v31 = vpop.eup %1495  ;;  %v2014_v33 = vadd.f32 %v1916_v38, %v451_v29  ;;  %v2017_v34 = vadd.f32 %v1916_v38, %v579_v30  ;;  %v1387_v35 = vpop.f32.mrb[10].mxu0  ;;  %1517 = vrcp.f32 %v965_v26  ;;  %685 = vst.msk [vmem:[%s2701_s3 + $0x50] sm:$0xff] %vm674_vm2, %v2008_v27  ;;  %v1275_v19 = vmul.f32 -1.442695, %v2008_v27 }
  0xfd   :  { %v1419_v36 = vpop.f32.mrb[10].mxu1  ;;  %v1498_v37 = vpop.eup %1497  ;;  %v963_v39 = vadd.f32 1.0, %v1496_v31  ;;  %717 = vst.msk [vmem:[%s2701_s3 + $0x150] sm:$0xff] %vm674_vm2, %v2011_v28  ;;  %1519 = vrcp.f32 %v931_v32  ;;  %v2040_v46 = vadd.f32 %v1387_v35, %v1916_v38  ;;  %v1307_v23 = vmul.f32 -1.442695, %v2011_v28 }
  0xfe   :  { %v454_v40 = vpop.f32.mrb[11].mxu0  ;;  %v1500_v41 = vpop.eup %1499  ;;  %v934_v42 = vadd.f32 1.0, %v1498_v37  ;;  %683 = vst.msk [vmem:[%s2701_s3 + $0x40] sm:$0xff] %vm674_vm2, %v2014_v33  ;;  %715 = vst.msk [vmem:[%s2701_s3 + $0x140] sm:$0xff] %vm674_vm2, %v2017_v34  ;;  %v2043_v47 = vadd.f32 %v1419_v36, %v1916_v38  ;;  %v1273_v25 = vmul.f32 -1.442695, %v2014_v33 }
  0xff   :  { %v582_v43 = vpop.f32.mrb[11].mxu1  ;;  %v1502_v44 = vpop.eup %1501  ;;  %1521 = vrcp.f32 %v963_v39  ;;  %v966_v45 = vadd.f32 1.0, %v1500_v41  ;;  %v2046_v50 = vadd.f32 %v1916_v38, %v454_v40  ;;  %686 = vst.msk [vmem:[%s2701_s3 + $0x58] sm:$0xff] %vm674_vm2, %v2040_v46  ;;  %v1305_v29 = vmul.f32 -1.442695, %v2017_v34 }
 0x100   :  { %v1504_v48 = vpop.eup %1503  ;;  %1523 = vrcp.f32 %v934_v42  ;;  %v932_v49 = vadd.f32 1.0, %v1502_v44  ;;  %v2049_v51 = vadd.f32 %v1916_v38, %v582_v43  ;;  %718 = vst.msk [vmem:[%s2701_s3 + $0x158] sm:$0xff] %vm674_vm2, %v2043_v47  ;;  %v1276_v36 = vmul.f32 -1.442695, %v2040_v46 }
 0x101   :  { %v1506_v52 = vpop.eup %1505  ;;  %1525 = vrcp.f32 %v966_v45  ;;  %v964_v53 = vadd.f32 1.0, %v1504_v48  ;;  %684 = vst.msk [vmem:[%s2701_s3 + $0x48] sm:$0xff] %vm674_vm2, %v2046_v50  ;;  %v1390_v56 = vpop.f32.mrb[12].mxu0  ;;  %v1308_v42 = vmul.f32 -1.442695, %v2043_v47 }
 0x102   :  { %v1508_v54 = vpop.eup %1507  ;;  %1527 = vrcp.f32 %v932_v49  ;;  %v937_v55 = vadd.f32 1.0, %v1506_v52  ;;  %716 = vst.msk [vmem:[%s2701_s3 + $0x148] sm:$0xff] %vm674_vm2, %v2049_v51  ;;  %v2072_v59 = vadd.f32 %v1390_v56, %v1916_v38  ;;  %v1422_v60 = vpop.f32.mrb[12].mxu1  ;;  %v1274_v47 = vmul.f32 -1.442695, %v2046_v50 }
 0x103   :  { %v1510_v57 = vpop.eup %1509  ;;  %1529 = vrcp.f32 %v964_v53  ;;  %v969_v58 = vadd.f32 1.0, %v1508_v54  ;;  %v467_v61 = vpop.f32.mrb[13].mxu0  ;;  %v2075_v0 = vadd.f32 %v1422_v60, %v1916_v38  ;;  %v1306_v50 = vmul.f32 -1.442695, %v2049_v51 }
 0x104   :  { %v1512_v62 = vpop.eup %1511  ;;  %1531 = vrcp.f32 %v937_v55  ;;  %v935_v63 = vadd.f32 1.0, %v1510_v57  ;;  %v2078_v1 = vadd.f32 %v1916_v38, %v467_v61  ;;  %v595_v2 = vpop.f32.mrb[13].mxu1  ;;  %689 = vst.msk [vmem:[%s2701_s3 + $0x70] sm:$0xff] %vm674_vm2, %v2072_v59  ;;  %v1279_v51 = vmul.f32 -1.442695, %v2072_v59 }
 0x105   :  { %v1391_v3 = vpop.f32.mrb[14].mxu0  ;;  %v1514_v4 = vpop.eup %1513  ;;  %1533 = vrcp.f32 %v969_v58  ;;  %v967_v5 = vadd.f32 1.0, %v1512_v62  ;;  %v2087_v7 = vadd.f32 %v1916_v38, %v595_v2  ;;  %721 = vst.msk [vmem:[%s2701_s3 + $0x170] sm:$0xff] %vm674_vm2, %v2075_v0  ;;  %v1311_v56 = vmul.f32 -1.442695, %v2075_v0 }
 0x106   :  { %v1423_v8 = vpop.f32.mrb[14].mxu1  ;;  %v470_v9 = vpop.f32.mrb[15].mxu0  ;;  %1535 = vrcp.f32 %v935_v63  ;;  %v938_v11 = vadd.f32 1.0, %v1514_v4  ;;  %687 = vst.msk [vmem:[%s2701_s3 + $0x60] sm:$0xff] %vm674_vm2, %v2078_v1  ;;  %v2111_v16 = vadd.f32 %v1391_v3, %v1916_v38 }
 0x107   :  { %v1516_v10 = vpop.eup %1515  ;;  %v598_v13 = vpop.f32.mrb[15].mxu1  ;;  %1537 = vrcp.f32 %v967_v5  ;;  %719 = vst.msk [vmem:[%s2701_s3 + $0x160] sm:$0xff] %vm674_vm2, %v2087_v7  ;;  %v2114_v17 = vadd.f32 %v1423_v8, %v1916_v38  ;;  %v2122_v20 = vadd.f32 %v1916_v38, %v470_v9 }
 0x108   :  { %v1518_v14 = vpop.eup %1517  ;;  %1125 = vst.msk [vmem:[%s2702_s4 + $0x10] sm:$0xff] %vm674_vm2, %v1516_v10  ;;  %1539 = vrcp.f32 %v938_v11  ;;  %v2125_v21 = vadd.f32 %v1916_v38, %v598_v13  ;;  %690 = vst.msk [vmem:[%s2701_s3 + $0x78] sm:$0xff] %vm674_vm2, %v2111_v16 }
 0x109   :  { %v1520_v18 = vpop.eup %1519  ;;  %1157 = vst.msk [vmem:[%s2702_s4 + $0x110] sm:$0xff] %vm674_vm2, %v1518_v14  ;;  %1541 = vpow2.f32 %v1304_v6  ;;  %722 = vst.msk [vmem:[%s2701_s3 + $0x178] sm:$0xff] %vm674_vm2, %v2114_v17  ;;  %v1394_v26 = vpop.f32.mrb[16].mxu0 }
 0x10a   :  { %v1522_v22 = vpop.eup %1521  ;;  %1123 = vst.msk [vmem:[%s2702_s4] sm:$0xff] %vm674_vm2, %v1520_v18  ;;  %1543 = vpow2.f32 %v1270_v12  ;;  %688 = vst.msk [vmem:[%s2701_s3 + $0x68] sm:$0xff] %vm674_vm2, %v2122_v20  ;;  %v1426_v27 = vpop.f32.mrb[16].mxu1  ;;  %v2163_v30 = vadd.f32 %v1394_v26, %v1916_v38 }
 0x10b   :  { %v1524_v24 = vpop.eup %1523  ;;  %1155 = vst.msk [vmem:[%s2702_s4 + $0x100] sm:$0xff] %vm674_vm2, %v1522_v22  ;;  %720 = vst.msk [vmem:[%s2701_s3 + $0x168] sm:$0xff] %vm674_vm2, %v2125_v21  ;;  %1545 = vpow2.f32 %v1302_v15  ;;  %v2166_v31 = vadd.f32 %v1426_v27, %v1916_v38  ;;  %v483_v32 = vpop.f32.mrb[17].mxu0 }
 0x10c   :  { %v1526_v28 = vpop.eup %1525  ;;  %1126 = vst.msk [vmem:[%s2702_s4 + $0x18] sm:$0xff] %vm674_vm2, %v1524_v24  ;;  %v611_v33 = vpop.f32.mrb[17].mxu1  ;;  %1547 = vpow2.f32 %v1275_v19  ;;  %v2174_v37 = vadd.f32 %v1916_v38, %v483_v32  ;;  %693 = vst.msk [vmem:[%s2701_s3 + $0x90] sm:$0xff] %vm674_vm2, %v2163_v30 }
 0x10d   :  { %v1528_v35 = vpop.eup %1527  ;;  %1158 = vst.msk [vmem:[%s2702_s4 + $0x118] sm:$0xff] %vm674_vm2, %v1526_v28  ;;  %v2177_v34 = vadd.f32 %v1916_v38, %v611_v33  ;;  %v1395_v39 = vpop.f32.mrb[18].mxu0  ;;  %1549 = vpow2.f32 %v1307_v23  ;;  %725 = vst.msk [vmem:[%s2701_s3 + $0x190] sm:$0xff] %vm674_vm2, %v2166_v31 }
 0x10e   :  { %v1427_v40 = vpop.f32.mrb[18].mxu1  ;;  %v1530_v41 = vpop.eup %1529  ;;  %1124 = vst.msk [vmem:[%s2702_s4 + $0x8] sm:$0xff] %vm674_vm2, %v1528_v35  ;;  %v2195_v43 = vadd.f32 %v1395_v39, %v1916_v38  ;;  %1551 = vpow2.f32 %v1273_v25  ;;  %691 = vst.msk [vmem:[%s2701_s3 + $0x80] sm:$0xff] %vm674_vm2, %v2174_v37 }
 0x10f   :  { %v486_v44 = vpop.f32.mrb[19].mxu0  ;;  %v614_v45 = vpop.f32.mrb[19].mxu1  ;;  %1156 = vst.msk [vmem:[%s2702_s4 + $0x108] sm:$0xff] %vm674_vm2, %v1530_v41  ;;  %723 = vst.msk [vmem:[%s2701_s3 + $0x180] sm:$0xff] %vm674_vm2, %v2177_v34  ;;  %v2213_v48 = vadd.f32 %v1427_v40, %v1916_v38  ;;  %1553 = vpow2.f32 %v1305_v29 }
 0x110   :  { %v1532_v46 = vpop.eup %1531  ;;  %694 = vst.msk [vmem:[%s2701_s3 + $0x98] sm:$0xff] %vm674_vm2, %v2195_v43  ;;  %v2226_v52 = vadd.f32 %v1916_v38, %v486_v44  ;;  %v2229_v53 = vadd.f32 %v1916_v38, %v614_v45  ;;  %1555 = vpow2.f32 %v1276_v36 }
 0x111   :  { %v1534_v49 = vpop.eup %1533  ;;  %1129 = vst.msk [vmem:[%s2702_s4 + $0x30] sm:$0xff] %vm674_vm2, %v1532_v46  ;;  %726 = vst.msk [vmem:[%s2701_s3 + $0x198] sm:$0xff] %vm674_vm2, %v2213_v48  ;;  %1557 = vpow2.f32 %v1308_v42  ;;  %v1398_v58 = vpop.f32.mrb[20].mxu0 }
 0x112   :  { %v1536_v54 = vpop.eup %1535  ;;  %1161 = vst.msk [vmem:[%s2702_s4 + $0x130] sm:$0xff] %vm674_vm2, %v1534_v49  ;;  %692 = vst.msk [vmem:[%s2701_s3 + $0x88] sm:$0xff] %vm674_vm2, %v2226_v52  ;;  %1559 = vpow2.f32 %v1274_v47  ;;  %v1430_v59 = vpop.f32.mrb[20].mxu1  ;;  %v2265_v61 = vadd.f32 %v1398_v58, %v1916_v38 }
 0x113   :  { %v1538_v55 = vpop.eup %1537  ;;  %1127 = vst.msk [vmem:[%s2702_s4 + $0x20] sm:$0xff] %vm674_vm2, %v1536_v54  ;;  %724 = vst.msk [vmem:[%s2701_s3 + $0x188] sm:$0xff] %vm674_vm2, %v2229_v53  ;;  %1561 = vpow2.f32 %v1306_v50  ;;  %v2268_v62 = vadd.f32 %v1430_v59, %v1916_v38  ;;  %v499_v63 = vpop.f32.mrb[21].mxu0  ;;  %v1277_v59 = vmul.f32 -1.442695, %v2078_v1 }
 0x114   :  { %v1540_v57 = vpop.eup %1539  ;;  %1159 = vst.msk [vmem:[%s2702_s4 + $0x120] sm:$0xff] %vm674_vm2, %v1538_v55  ;;  %v627_v0 = vpop.f32.mrb[21].mxu1  ;;  %1563 = vpow2.f32 %v1279_v51  ;;  %v2271_v4 = vadd.f32 %v1916_v38, %v499_v63  ;;  %697 = vst.msk [vmem:[%s2701_s3 + $0xb0] sm:$0xff] %vm674_vm2, %v2265_v61 }
 0x115   :  { %v1542_v60 = vpop.eup %1541  ;;  %1130 = vst.msk [vmem:[%s2702_s4 + $0x38] sm:$0xff] %vm674_vm2, %v1540_v57  ;;  %v2274_v5 = vadd.f32 %v1916_v38, %v627_v0  ;;  %v1399_v6 = vpop.f32.mrb[22].mxu0  ;;  %1565 = vpow2.f32 %v1311_v56  ;;  %729 = vst.msk [vmem:[%s2701_s3 + $0x1b0] sm:$0xff] %vm674_vm2, %v2268_v62 }
 0x116   :  { %v1544_v2 = vpop.eup %1543  ;;  %v970_v3 = vadd.f32 1.0, %v1542_v60  ;;  %v1431_v8 = vpop.f32.mrb[22].mxu1  ;;  %695 = vst.msk [vmem:[%s2701_s3 + $0xa0] sm:$0xff] %vm674_vm2, %v2271_v4  ;;  %v2297_v19 = vadd.f32 %v1399_v6, %v1916_v38 }
 0x117   :  { %v1546_v9 = vpop.eup %1545  ;;  %v936_v10 = vadd.f32 1.0, %v1544_v2  ;;  %v502_v11 = vpop.f32.mrb[23].mxu0  ;;  %727 = vst.msk [vmem:[%s2701_s3 + $0x1a0] sm:$0xff] %vm674_vm2, %v2274_v5  ;;  %v2300_v22 = vadd.f32 %v1431_v8, %v1916_v38  ;;  %v1309_v2 = vmul.f32 -1.442695, %v2087_v7 }
 0x118   :  { %v1548_v12 = vpop.eup %1547  ;;  %1567 = vrcp.f32 %v970_v3  ;;  %v968_v13 = vadd.f32 1.0, %v1546_v9  ;;  %v630_v14 = vpop.f32.mrb[23].mxu1  ;;  %v2303_v25 = vadd.f32 %v1916_v38, %v502_v11  ;;  %698 = vst.msk [vmem:[%s2701_s3 + $0xb8] sm:$0xff] %vm674_vm2, %v2297_v19  ;;  %v1280_v7 = vmul.f32 -1.442695, %v2111_v16 }
 0x119   :  { %v1550_v15 = vpop.eup %1549  ;;  %1569 = vrcp.f32 %v936_v10  ;;  %v941_v18 = vadd.f32 1.0, %v1548_v12  ;;  %v2306_v26 = vadd.f32 %v1916_v38, %v630_v14  ;;  %730 = vst.msk [vmem:[%s2701_s3 + $0x1b8] sm:$0xff] %vm674_vm2, %v2300_v22  ;;  %v1402_v33 = vpop.f32.mrb[24].mxu0 }
 0x11a   :  { %v1552_v23 = vpop.eup %1551  ;;  %1571 = vrcp.f32 %v968_v13  ;;  %v973_v24 = vadd.f32 1.0, %v1550_v15  ;;  %696 = vst.msk [vmem:[%s2701_s3 + $0xa8] sm:$0xff] %vm674_vm2, %v2303_v25  ;;  %v2329_v39 = vadd.f32 %v1402_v33, %v1916_v38  ;;  %v1434_v40 = vpop.f32.mrb[24].mxu1  ;;  %v1312_v13 = vmul.f32 -1.442695, %v2114_v17 }
 0x11b   :  { %v1554_v27 = vpop.eup %1553  ;;  %1573 = vrcp.f32 %v941_v18  ;;  %v939_v28 = vadd.f32 1.0, %v1552_v23  ;;  %728 = vst.msk [vmem:[%s2701_s3 + $0x1a8] sm:$0xff] %vm674_vm2, %v2306_v26  ;;  %v515_v41 = vpop.f32.mrb[25].mxu0  ;;  %v2332_v45 = vadd.f32 %v1434_v40, %v1916_v38  ;;  %v1278_v17 = vmul.f32 -1.442695, %v2122_v20 }
 0x11c   :  { %v1556_v29 = vpop.eup %1555  ;;  %1575 = vrcp.f32 %v973_v24  ;;  %v971_v32 = vadd.f32 1.0, %v1554_v27  ;;  %v2335_v46 = vadd.f32 %v1916_v38, %v515_v41  ;;  %v643_v47 = vpop.f32.mrb[25].mxu1  ;;  %701 = vst.msk [vmem:[%s2701_s3 + $0xd0] sm:$0xff] %vm674_vm2, %v2329_v39  ;;  %v1310_v20 = vmul.f32 -1.442695, %v2125_v21 }
 0x11d   :  { %v1558_v35 = vpop.eup %1557  ;;  %1577 = vrcp.f32 %v939_v28  ;;  %v942_v36 = vadd.f32 1.0, %v1556_v29  ;;  %v1403_v49 = vpop.f32.mrb[26].mxu0  ;;  %v2343_v51 = vadd.f32 %v1916_v38, %v643_v47  ;;  %733 = vst.msk [vmem:[%s2701_s3 + $0x1d0] sm:$0xff] %vm674_vm2, %v2332_v45  ;;  %v1283_v40 = vmul.f32 -1.442695, %v2163_v30 }
 0x11e   :  { %v1560_v42 = vpop.eup %1559  ;;  %1579 = vrcp.f32 %v971_v32  ;;  %v974_v44 = vadd.f32 1.0, %v1558_v35  ;;  %v1435_v55 = vpop.f32.mrb[26].mxu1  ;;  %699 = vst.msk [vmem:[%s2701_s3 + $0xc0] sm:$0xff] %vm674_vm2, %v2335_v46  ;;  %v2363_v1 = vadd.f32 %v1403_v49, %v1916_v38  ;;  %v1315_v30 = vmul.f32 -1.442695, %v2166_v31 }
 0x11f   :  { %v1562_v50 = vpop.eup %1561  ;;  %1581 = vrcp.f32 %v942_v36  ;;  %v940_v54 = vadd.f32 1.0, %v1560_v42  ;;  %v518_v56 = vpop.f32.mrb[27].mxu0  ;;  %731 = vst.msk [vmem:[%s2701_s3 + $0x1c0] sm:$0xff] %vm674_vm2, %v2343_v51  ;;  %v2366_v8 = vadd.f32 %v1435_v55, %v1916_v38  ;;  %v1281_v31 = vmul.f32 -1.442695, %v2174_v37 }
 0x120   :  { %v1564_v57 = vpop.eup %1563  ;;  %1583 = vrcp.f32 %v974_v44  ;;  %v972_v58 = vadd.f32 1.0, %v1562_v50  ;;  %v646_v60 = vpop.f32.mrb[27].mxu1  ;;  %v2369_v9 = vadd.f32 %v1916_v38, %v518_v56  ;;  %702 = vst.msk [vmem:[%s2701_s3 + $0xd8] sm:$0xff] %vm674_vm2, %v2363_v1  ;;  %v1313_v37 = vmul.f32 -1.442695, %v2177_v34 }
 0x121   :  { %v1566_v63 = vpop.eup %1565  ;;  %1585 = vrcp.f32 %v940_v54  ;;  %v945_v0 = vadd.f32 1.0, %v1564_v57  ;;  %v2382_v11 = vadd.f32 %v1916_v38, %v646_v60  ;;  %734 = vst.msk [vmem:[%s2701_s3 + $0x1d8] sm:$0xff] %vm674_vm2, %v2366_v8  ;;  %v1406_v16 = vpop.f32.mrb[28].mxu0 }
 0x122   :  { %v1568_v3 = vpop.eup %1567  ;;  %1587 = vrcp.f32 %v972_v58  ;;  %v977_v6 = vadd.f32 1.0, %v1566_v63  ;;  %700 = vst.msk [vmem:[%s2701_s3 + $0xc8] sm:$0xff] %vm674_vm2, %v2369_v9  ;;  %v1438_v14 = vpop.f32.mrb[28].mxu1  ;;  %v2410_v18 = vadd.f32 %v1406_v16, %v1916_v38  ;;  %v1282_v58 = vmul.f32 -1.442695, %v2226_v52 }
 0x123   :  { %v1570_v10 = vpop.eup %1569  ;;  %1162 = vst.msk [vmem:[%s2702_s4 + $0x138] sm:$0xff] %vm674_vm2, %v1568_v3  ;;  %1589 = vrcp.f32 %v945_v0  ;;  %732 = vst.msk [vmem:[%s2701_s3 + $0x1c8] sm:$0xff] %vm674_vm2, %v2382_v11  ;;  %v2413_v23 = vadd.f32 %v1438_v14, %v1916_v38  ;;  %v531_v24 = vpop.f32.mrb[29].mxu0 }
 0x124   :  { %v1572_v12 = vpop.eup %1571  ;;  %1128 = vst.msk [vmem:[%s2702_s4 + $0x28] sm:$0xff] %vm674_vm2, %v1570_v10  ;;  %1591 = vrcp.f32 %v977_v6  ;;  %v659_v27 = vpop.f32.mrb[29].mxu1  ;;  %v2421_v29 = vadd.f32 %v1916_v38, %v531_v24  ;;  %705 = vst.msk [vmem:[%s2701_s3 + $0xf0] sm:$0xff] %vm674_vm2, %v2410_v18 }
 0x125   :  { %v1574_v15 = vpop.eup %1573  ;;  %1160 = vst.msk [vmem:[%s2702_s4 + $0x128] sm:$0xff] %vm674_vm2, %v1572_v12  ;;  %1593 = vpow2.f32 %v1277_v59  ;;  %v2424_v32 = vadd.f32 %v1916_v38, %v659_v27  ;;  %v1407_v33 = vpop.f32.mrb[30].mxu0  ;;  %737 = vst.msk [vmem:[%s2701_s3 + $0x1f0] sm:$0xff] %vm674_vm2, %v2413_v23 }
 0x126   :  { %v1576_v28 = vpop.eup %1575  ;;  %1133 = vst.msk [vmem:[%s2702_s4 + $0x50] sm:$0xff] %vm674_vm2, %v1574_v15  ;;  %1595 = vpow2.f32 %v1309_v2  ;;  %v1439_v35 = vpop.f32.mrb[30].mxu1  ;;  %v2442_v21 = vadd.f32 %v1407_v33, %v1916_v38  ;;  %703 = vst.msk [vmem:[%s2701_s3 + $0xe0] sm:$0xff] %vm674_vm2, %v2421_v29 }
 0x127   :  { %v1578_v36 = vpop.eup %1577  ;;  %1165 = vst.msk [vmem:[%s2702_s4 + $0x150] sm:$0xff] %vm674_vm2, %v1576_v28  ;;  %1597 = vpow2.f32 %v1280_v7  ;;  %v534_v41 = vpop.f32.mrb[31].mxu0  ;;  %735 = vst.msk [vmem:[%s2701_s3 + $0x1e0] sm:$0xff] %vm674_vm2, %v2424_v32  ;;  %v2460_v47 = vadd.f32 %v1439_v35, %v1916_v38 }
 0x128   :  { %v662_v42 = vpop.f32.mrb[31].mxu1  ;;  %v1580_v44 = vpop.eup %1579  ;;  %1131 = vst.msk [vmem:[%s2702_s4 + $0x40] sm:$0xff] %vm674_vm2, %v1578_v36  ;;  %1599 = vpow2.f32 %v1312_v13  ;;  %706 = vst.msk [vmem:[%s2701_s3 + $0xf8] sm:$0xff] %vm674_vm2, %v2442_v21  ;;  %v2473_v50 = vadd.f32 %v1916_v38, %v534_v41 }
 0x129   :  { %v1582_v49 = vpop.eup %1581  ;;  %1163 = vst.msk [vmem:[%s2702_s4 + $0x140] sm:$0xff] %vm674_vm2, %v1580_v44  ;;  %1601 = vpow2.f32 %v1278_v17  ;;  %v2476_v54 = vadd.f32 %v1916_v38, %v662_v42  ;;  %738 = vst.msk [vmem:[%s2701_s3 + $0x1f8] sm:$0xff] %vm674_vm2, %v2460_v47  ;;  %v1284_v38 = vmul.f32 -1.442695, %v2195_v43  ;;  %v1316_v43 = vmul.f32 -1.442695, %v2213_v48 }
 0x12a   :  { %v1584_v55 = vpop.eup %1583  ;;  %1134 = vst.msk [vmem:[%s2702_s4 + $0x58] sm:$0xff] %vm674_vm2, %v1582_v49  ;;  %1603 = vpow2.f32 %v1310_v20  ;;  %704 = vst.msk [vmem:[%s2701_s3 + $0xe8] sm:$0xff] %vm674_vm2, %v2473_v50  ;;  %v1314_v42 = vmul.f32 -1.442695, %v2229_v53  ;;  %v1287_v49 = vmul.f32 -1.442695, %v2265_v61 }
 0x12b   :  { %v1586_v56 = vpop.eup %1585  ;;  %1166 = vst.msk [vmem:[%s2702_s4 + $0x158] sm:$0xff] %vm674_vm2, %v1584_v55  ;;  %1605 = vpow2.f32 %v1283_v40  ;;  %736 = vst.msk [vmem:[%s2701_s3 + $0x1e8] sm:$0xff] %vm674_vm2, %v2476_v54  ;;  %v1319_v55 = vmul.f32 -1.442695, %v2268_v62  ;;  %v1285_v53 = vmul.f32 -1.442695, %v2271_v4 }
 0x12c   :  { %v1588_v34 = vpop.eup %1587  ;;  %1132 = vst.msk [vmem:[%s2702_s4 + $0x48] sm:$0xff] %vm674_vm2, %v1586_v56  ;;  %1607 = vpow2.f32 %v1315_v30  ;;  %v1317_v61 = vmul.f32 -1.442695, %v2274_v5  ;;  %v1288_v62 = vmul.f32 -1.442695, %v2297_v19 }
 0x12d   :  { %v1590_v57 = vpop.eup %1589  ;;  %1164 = vst.msk [vmem:[%s2702_s4 + $0x148] sm:$0xff] %vm674_vm2, %v1588_v34  ;;  %1609 = vpow2.f32 %v1281_v31  ;;  %v1320_v4 = vmul.f32 -1.442695, %v2300_v22  ;;  %v1286_v5 = vmul.f32 -1.442695, %v2303_v25 }
 0x12e   :  { %v1592_v59 = vpop.eup %1591  ;;  %1137 = vst.msk [vmem:[%s2702_s4 + $0x70] sm:$0xff] %vm674_vm2, %v1590_v57  ;;  %1611 = vpow2.f32 %v1313_v37  ;;  %v1318_v19 = vmul.f32 -1.442695, %v2306_v26  ;;  %v1291_v22 = vmul.f32 -1.442695, %v2329_v39 }
 0x12f   :  { %v1594_v60 = vpop.eup %1593  ;;  %1169 = vst.msk [vmem:[%s2702_s4 + $0x170] sm:$0xff] %vm674_vm2, %v1592_v59  ;;  %1613 = vpow2.f32 %v1284_v38  ;;  %v1323_v25 = vmul.f32 -1.442695, %v2332_v45  ;;  %v1289_v26 = vmul.f32 -1.442695, %v2335_v46 }
 0x130   :  { %v1596_v48 = vpop.eup %1595  ;;  %v943_v63 = vadd.f32 1.0, %v1594_v60  ;;  %1615 = vpow2.f32 %v1316_v43  ;;  %v1321_v39 = vmul.f32 -1.442695, %v2343_v51 }
 0x131   :  { %v1598_v0 = vpop.eup %1597  ;;  %v975_v2 = vadd.f32 1.0, %v1596_v48  ;;  %1617 = vpow2.f32 %v1282_v58 }
 0x132   :  { %v1600_v52 = vpop.eup %1599  ;;  %1619 = vrcp.f32 %v943_v63  ;;  %v946_v3 = vadd.f32 1.0, %v1598_v0 }
 0x133   :  { %v1602_v6 = vpop.eup %1601  ;;  %1621 = vrcp.f32 %v975_v2  ;;  %v978_v10 = vadd.f32 1.0, %v1600_v52 }
 0x134   :  { %v1604_v7 = vpop.eup %1603  ;;  %1623 = vrcp.f32 %v946_v3  ;;  %v944_v12 = vadd.f32 1.0, %v1602_v6 }
 0x135   :  { %v1606_v13 = vpop.eup %1605  ;;  %1625 = vrcp.f32 %v978_v10  ;;  %v976_v16 = vadd.f32 1.0, %v1604_v7 }
 0x136   :  { %v1608_v14 = vpop.eup %1607  ;;  %1627 = vrcp.f32 %v944_v12  ;;  %v949_v15 = vadd.f32 1.0, %v1606_v13 }
 0x137   :  { %v1610_v17 = vpop.eup %1609  ;;  %1629 = vrcp.f32 %v976_v16  ;;  %v981_v24 = vadd.f32 1.0, %v1608_v14 }
 0x138   :  { %v1612_v27 = vpop.eup %1611  ;;  %1631 = vrcp.f32 %v949_v15  ;;  %v947_v28 = vadd.f32 1.0, %v1610_v17 }
 0x139   :  { %v1614_v20 = vpop.eup %1613  ;;  %1633 = vrcp.f32 %v981_v24  ;;  %v979_v33 = vadd.f32 1.0, %v1612_v27 }
 0x13a   :  { %v1616_v35 = vpop.eup %1615  ;;  %1635 = vrcp.f32 %v947_v28  ;;  %v950_v36 = vadd.f32 1.0, %v1614_v20 }
 0x13b   :  { %v1618_v40 = vpop.eup %1617  ;;  %1637 = vrcp.f32 %v979_v33  ;;  %v982_v41 = vadd.f32 1.0, %v1616_v35 }
 0x13c   :  { %v1620_v44 = vpop.eup %1619  ;;  %1639 = vrcp.f32 %v950_v36  ;;  %v948_v30 = vadd.f32 1.0, %v1618_v40 }
 0x13d   :  { %v1622_v31 = vpop.eup %1621  ;;  %1135 = vst.msk [vmem:[%s2702_s4 + $0x60] sm:$0xff] %vm674_vm2, %v1620_v44  ;;  %1641 = vrcp.f32 %v982_v41 }
 0x13e   :  { %v1624_v37 = vpop.eup %1623  ;;  %1167 = vst.msk [vmem:[%s2702_s4 + $0x160] sm:$0xff] %vm674_vm2, %v1622_v31  ;;  %1643 = vrcp.f32 %v948_v30 }
 0x13f   :  { %v1626_v56 = vpop.eup %1625  ;;  %1138 = vst.msk [vmem:[%s2702_s4 + $0x78] sm:$0xff] %vm674_vm2, %v1624_v37  ;;  %1645 = vpow2.f32 %v1314_v42  ;;  %v1292_v42 = vmul.f32 -1.442695, %v2363_v1  ;;  %v1322_v1 = vmul.f32 -1.442695, %v2382_v11 }
 0x140   :  { %v1628_v38 = vpop.eup %1627  ;;  %1170 = vst.msk [vmem:[%s2702_s4 + $0x178] sm:$0xff] %vm674_vm2, %v1626_v56  ;;  %1647 = vpow2.f32 %v1287_v49  ;;  %v1324_v49 = vmul.f32 -1.442695, %v2366_v8  ;;  %v1295_v8 = vmul.f32 -1.442695, %v2410_v18 }
 0x141   :  { %v1630_v34 = vpop.eup %1629  ;;  %1136 = vst.msk [vmem:[%s2702_s4 + $0x68] sm:$0xff] %vm674_vm2, %v1628_v38  ;;  %1649 = vpow2.f32 %v1319_v55  ;;  %v1290_v55 = vmul.f32 -1.442695, %v2369_v9  ;;  %v1327_v9 = vmul.f32 -1.442695, %v2413_v23 }
 0x142   :  { %v1632_v43 = vpop.eup %1631  ;;  %1168 = vst.msk [vmem:[%s2702_s4 + $0x168] sm:$0xff] %vm674_vm2, %v1630_v34  ;;  %1651 = vpow2.f32 %v1285_v53  ;;  %v1293_v11 = vmul.f32 -1.442695, %v2421_v29  ;;  %v1325_v18 = vmul.f32 -1.442695, %v2424_v32 }
 0x143   :  { %v1634_v57 = vpop.eup %1633  ;;  %1141 = vst.msk [vmem:[%s2702_s4 + $0x90] sm:$0xff] %vm674_vm2, %v1632_v43  ;;  %1653 = vpow2.f32 %v1317_v61  ;;  %v1296_v23 = vmul.f32 -1.442695, %v2442_v21  ;;  %v1328_v29 = vmul.f32 -1.442695, %v2460_v47 }
 0x144   :  { %v1636_v58 = vpop.eup %1635  ;;  %1173 = vst.msk [vmem:[%s2702_s4 + $0x190] sm:$0xff] %vm674_vm2, %v1634_v57  ;;  %1655 = vpow2.f32 %v1288_v62  ;;  %v1294_v32 = vmul.f32 -1.442695, %v2473_v50  ;;  %v1326_v21 = vmul.f32 -1.442695, %v2476_v54 }
 0x145   :  { %v1638_v59 = vpop.eup %1637  ;;  %1139 = vst.msk [vmem:[%s2702_s4 + $0x80] sm:$0xff] %vm674_vm2, %v1636_v58  ;;  %1657 = vpow2.f32 %v1320_v4 }
 0x146   :  { %v1640_v60 = vpop.eup %1639  ;;  %1171 = vst.msk [vmem:[%s2702_s4 + $0x180] sm:$0xff] %vm674_vm2, %v1638_v59  ;;  %1659 = vpow2.f32 %v1286_v5 }
 0x147   :  { %v1642_v48 = vpop.eup %1641  ;;  %1142 = vst.msk [vmem:[%s2702_s4 + $0x98] sm:$0xff] %vm674_vm2, %v1640_v60  ;;  %1661 = vpow2.f32 %v1318_v19 }
 0x148   :  { %v1644_v63 = vpop.eup %1643  ;;  %1174 = vst.msk [vmem:[%s2702_s4 + $0x198] sm:$0xff] %vm674_vm2, %v1642_v48  ;;  %1663 = vpow2.f32 %v1291_v22 }
 0x149   :  { %v1646_v45 = vpop.eup %1645  ;;  %1140 = vst.msk [vmem:[%s2702_s4 + $0x88] sm:$0xff] %vm674_vm2, %v1644_v63  ;;  %1665 = vpow2.f32 %v1323_v25 }
 0x14a   :  { %v1648_v46 = vpop.eup %1647  ;;  %v980_v0 = vadd.f32 1.0, %v1646_v45  ;;  %1667 = vpow2.f32 %v1289_v26 }
 0x14b   :  { %v1650_v2 = vpop.eup %1649  ;;  %v953_v52 = vadd.f32 1.0, %v1648_v46  ;;  %1669 = vpow2.f32 %v1321_v39 }
 0x14c   :  { %v1652_v51 = vpop.eup %1651  ;;  %1671 = vrcp.f32 %v980_v0  ;;  %v985_v3 = vadd.f32 1.0, %v1650_v2 }
 0x14d   :  { %v1654_v6 = vpop.eup %1653  ;;  %1673 = vrcp.f32 %v953_v52  ;;  %v951_v10 = vadd.f32 1.0, %v1652_v51 }
 0x14e   :  { %v1656_v7 = vpop.eup %1655  ;;  %1675 = vrcp.f32 %v985_v3  ;;  %v983_v12 = vadd.f32 1.0, %v1654_v6 }
 0x14f   :  { %v1658_v13 = vpop.eup %1657  ;;  %1677 = vrcp.f32 %v951_v10  ;;  %v954_v16 = vadd.f32 1.0, %v1656_v7 }
 0x150   :  { %v1660_v14 = vpop.eup %1659  ;;  %1679 = vrcp.f32 %v983_v12  ;;  %v986_v15 = vadd.f32 1.0, %v1658_v13 }
 0x151   :  { %v1662_v17 = vpop.eup %1661  ;;  %1681 = vrcp.f32 %v954_v16  ;;  %v952_v24 = vadd.f32 1.0, %v1660_v14 }
 0x152   :  { %v1664_v27 = vpop.eup %1663  ;;  %1683 = vrcp.f32 %v986_v15  ;;  %v984_v28 = vadd.f32 1.0, %v1662_v17 }
 0x153   :  { %v1666_v20 = vpop.eup %1665  ;;  %1685 = vrcp.f32 %v952_v24  ;;  %v957_v33 = vadd.f32 1.0, %v1664_v27 }
 0x154   :  { %v1668_v35 = vpop.eup %1667  ;;  %1687 = vrcp.f32 %v984_v28  ;;  %v989_v36 = vadd.f32 1.0, %v1666_v20 }
 0x155   :  { %v1670_v40 = vpop.eup %1669  ;;  %1689 = vrcp.f32 %v957_v33  ;;  %v955_v41 = vadd.f32 1.0, %v1668_v35 }
 0x156   :  { %v1672_v44 = vpop.eup %1671  ;;  %1691 = vrcp.f32 %v989_v36  ;;  %v987_v30 = vadd.f32 1.0, %v1670_v40 }
 0x157   :  { %v1674_v31 = vpop.eup %1673  ;;  %1172 = vst.msk [vmem:[%s2702_s4 + $0x188] sm:$0xff] %vm674_vm2, %v1672_v44  ;;  %1693 = vrcp.f32 %v955_v41 }
 0x158   :  { %v1676_v37 = vpop.eup %1675  ;;  %1145 = vst.msk [vmem:[%s2702_s4 + $0xb0] sm:$0xff] %vm674_vm2, %v1674_v31  ;;  %1695 = vrcp.f32 %v987_v30 }
 0x159   :  { %v1678_v53 = vpop.eup %1677  ;;  %1177 = vst.msk [vmem:[%s2702_s4 + $0x1b0] sm:$0xff] %vm674_vm2, %v1676_v37  ;;  %1697 = vpow2.f32 %v1292_v42 }
 0x15a   :  { %v1680_v56 = vpop.eup %1679  ;;  %1143 = vst.msk [vmem:[%s2702_s4 + $0xa0] sm:$0xff] %vm674_vm2, %v1678_v53  ;;  %1699 = vpow2.f32 %v1324_v49 }
 0x15b   :  { %v1682_v61 = vpop.eup %1681  ;;  %1175 = vst.msk [vmem:[%s2702_s4 + $0x1a0] sm:$0xff] %vm674_vm2, %v1680_v56  ;;  %1701 = vpow2.f32 %v1290_v55 }
 0x15c   :  { %v1684_v38 = vpop.eup %1683  ;;  %1146 = vst.msk [vmem:[%s2702_s4 + $0xb8] sm:$0xff] %vm674_vm2, %v1682_v61  ;;  %1703 = vpow2.f32 %v1322_v1 }
 0x15d   :  { %v1686_v62 = vpop.eup %1685  ;;  %1178 = vst.msk [vmem:[%s2702_s4 + $0x1b8] sm:$0xff] %vm674_vm2, %v1684_v38  ;;  %1705 = vpow2.f32 %v1295_v8 }
 0x15e   :  { %v1688_v34 = vpop.eup %1687  ;;  %1144 = vst.msk [vmem:[%s2702_s4 + $0xa8] sm:$0xff] %vm674_vm2, %v1686_v62  ;;  %1707 = vpow2.f32 %v1327_v9 }
 0x15f   :  { %v1690_v4 = vpop.eup %1689  ;;  %1176 = vst.msk [vmem:[%s2702_s4 + $0x1a8] sm:$0xff] %vm674_vm2, %v1688_v34  ;;  %1709 = vpow2.f32 %v1293_v11 }
 0x160   :  { %v1692_v43 = vpop.eup %1691  ;;  %1149 = vst.msk [vmem:[%s2702_s4 + $0xd0] sm:$0xff] %vm674_vm2, %v1690_v4  ;;  %1711 = vpow2.f32 %v1325_v18 }
 0x161   :  { %v1694_v5 = vpop.eup %1693  ;;  %1181 = vst.msk [vmem:[%s2702_s4 + $0x1d0] sm:$0xff] %vm674_vm2, %v1692_v43  ;;  %1713 = vpow2.f32 %v1296_v23 }
 0x162   :  { %v1696_v47 = vpop.eup %1695  ;;  %1147 = vst.msk [vmem:[%s2702_s4 + $0xc0] sm:$0xff] %vm674_vm2, %v1694_v5  ;;  %1715 = vpow2.f32 %v1328_v29 }
 0x163   :  { %v1698_v50 = vpop.eup %1697  ;;  %1179 = vst.msk [vmem:[%s2702_s4 + $0x1c0] sm:$0xff] %vm674_vm2, %v1696_v47  ;;  %1717 = vpow2.f32 %v1294_v32 }
 0x164   :  { %v1700_v54 = vpop.eup %1699  ;;  %v958_v57 = vadd.f32 1.0, %v1698_v50  ;;  %1719 = vpow2.f32 %v1326_v21 }
 0x165   :  { %v1702_v19 = vpop.eup %1701  ;;  %v990_v58 = vadd.f32 1.0, %v1700_v54 }
 0x166   :  { %v1704_v22 = vpop.eup %1703  ;;  %1721 = vrcp.f32 %v958_v57  ;;  %v956_v59 = vadd.f32 1.0, %v1702_v19 }
 0x167   :  { %v1706_v25 = vpop.eup %1705  ;;  %1723 = vrcp.f32 %v990_v58  ;;  %v988_v60 = vadd.f32 1.0, %v1704_v22 }
 0x168   :  { %v1708_v26 = vpop.eup %1707  ;;  %1725 = vrcp.f32 %v956_v59  ;;  %v961_v48 = vadd.f32 1.0, %v1706_v25 }
 0x169   :  { %v1710_v39 = vpop.eup %1709  ;;  %1727 = vrcp.f32 %v988_v60  ;;  %v993_v63 = vadd.f32 1.0, %v1708_v26 }
 0x16a   :  { %v1712_v45 = vpop.eup %1711  ;;  %1729 = vrcp.f32 %v961_v48  ;;  %v959_v46 = vadd.f32 1.0, %v1710_v39 }
 0x16b   :  { %v1714_v0 = vpop.eup %1713  ;;  %1731 = vrcp.f32 %v993_v63  ;;  %v991_v2 = vadd.f32 1.0, %v1712_v45 }
 0x16c   :  { %v1716_v52 = vpop.eup %1715  ;;  %1733 = vrcp.f32 %v959_v46  ;;  %v962_v51 = vadd.f32 1.0, %v1714_v0 }
 0x16d   :  { %v1718_v3 = vpop.eup %1717  ;;  %1735 = vrcp.f32 %v991_v2  ;;  %v994_v6 = vadd.f32 1.0, %v1716_v52 }
 0x16e   :  { %v1720_v10 = vpop.eup %1719  ;;  %1737 = vrcp.f32 %v962_v51  ;;  %v960_v7 = vadd.f32 1.0, %v1718_v3 }
 0x16f   :  { %1739 = vrcp.f32 %v994_v6  ;;  %v992_v12 = vadd.f32 1.0, %v1720_v10 }
 0x170   :  { %v1722_v13 = vpop.eup %1721  ;;  %1741 = vrcp.f32 %v960_v7 }
 0x171   :  { %v1724_v16 = vpop.eup %1723  ;;  %1150 = vst.msk [vmem:[%s2702_s4 + $0xd8] sm:$0xff] %vm674_vm2, %v1722_v13  ;;  %1743 = vrcp.f32 %v992_v12 }
 0x172   :  { %v1726_v14 = vpop.eup %1725  ;;  %1182 = vst.msk [vmem:[%s2702_s4 + $0x1d8] sm:$0xff] %vm674_vm2, %v1724_v16 }
 0x173   :  { %v1728_v15 = vpop.eup %1727  ;;  %1148 = vst.msk [vmem:[%s2702_s4 + $0xc8] sm:$0xff] %vm674_vm2, %v1726_v14 }
 0x174   :  { %v1730_v17 = vpop.eup %1729  ;;  %1180 = vst.msk [vmem:[%s2702_s4 + $0x1c8] sm:$0xff] %vm674_vm2, %v1728_v15 }
 0x175   :  { %v1732_v24 = vpop.eup %1731  ;;  %1153 = vst.msk [vmem:[%s2702_s4 + $0xf0] sm:$0xff] %vm674_vm2, %v1730_v17 }
 0x176   :  { %v1734_v27 = vpop.eup %1733  ;;  %1185 = vst.msk [vmem:[%s2702_s4 + $0x1f0] sm:$0xff] %vm674_vm2, %v1732_v24 }
 0x177   :  { %v1736_v28 = vpop.eup %1735  ;;  %1151 = vst.msk [vmem:[%s2702_s4 + $0xe0] sm:$0xff] %vm674_vm2, %v1734_v27 }
 0x178   :  { %v1738_v20 = vpop.eup %1737  ;;  %1183 = vst.msk [vmem:[%s2702_s4 + $0x1e0] sm:$0xff] %vm674_vm2, %v1736_v28 }
 0x179   :  { %v1740_v33 = vpop.eup %1739  ;;  %1154 = vst.msk [vmem:[%s2702_s4 + $0xf8] sm:$0xff] %vm674_vm2, %v1738_v20 }
 0x17a   :  { %v1742_v35 = vpop.eup %1741  ;;  %1186 = vst.msk [vmem:[%s2702_s4 + $0x1f8] sm:$0xff] %vm674_vm2, %v1740_v33 }
 0x17b   :  { %v1744_v36 = vpop.eup %1743  ;;  %1152 = vst.msk [vmem:[%s2702_s4 + $0xe8] sm:$0xff] %vm674_vm2, %v1742_v35 }
 0x17c   :  { %1184 = vst.msk [vmem:[%s2702_s4 + $0x1e8] sm:$0xff] %vm674_vm2, %v1744_v36 }

</bundles_post_ra>
